<compile_context>
chip_gen: v7x
topology: tpu7x:2x2x1
jax: 0.10.0
libtpu: 0.0.40
codegen_flags: <defaults>
</compile_context>

<pallas_src>
import jax
import jax.numpy as jnp
from jax.experimental import pallas as pl
from jax.experimental.pallas import tpu as pltpu


# ---------------------------------------------------------------------------
# Tiling helpers.
# ---------------------------------------------------------------------------
def _round_up(x, m):
    return ((x + m - 1) // m) * m


def _pick_tile(m, cap):
    """Row tile: <= cap, sublane-aligned when partial, and split into >=2 grid
    steps when m is large enough to be worth sharding across v7x's 2 TCs."""
    if m <= cap:
        if m >= 1024:
            return min(cap, _round_up(pl.cdiv(m, 2), 256))
        return m          # single full-extent block (no divisibility constraint)
    return cap            # cap is a multiple of 256


# ---------------------------------------------------------------------------
# Pallas kernel 1: tiled matmul + bias + ReLU (im2col convolutions 1 and 2).
# x,w are bf16 (MXU native); accumulation / bias / ReLU in f32.
# ---------------------------------------------------------------------------
def _matmul_bias_relu_kernel(x_ref, w_ref, b_ref, o_ref):
    acc = jnp.dot(x_ref[...], w_ref[...], preferred_element_type=jnp.float32)
    o_ref[...] = jnp.maximum(acc + b_ref[...], 0.0).astype(o_ref.dtype)


def matmul_bias_relu(x, w, b2, *, tile_m=2048, out_dtype=jnp.bfloat16):
    """y = relu(x @ w + b).  x:(M,K) bf16, w:(K,N) bf16, b2:(1,N) f32."""
    M, K = x.shape
    Kw, N = w.shape
    assert K == Kw, (K, Kw)
    tm = _pick_tile(M, tile_m)
    grid = (pl.cdiv(M, tm),)
    return pl.pallas_call(
        _matmul_bias_relu_kernel,
        out_shape=jax.ShapeDtypeStruct((M, N), out_dtype),
        grid=grid,
        in_specs=[
            pl.BlockSpec((tm, K), lambda i: (i, 0)),
            pl.BlockSpec((K, N), lambda i: (0, 0)),   # weights resident across M tiles
            pl.BlockSpec((1, N), lambda i: (0, 0)),
        ],
        out_specs=pl.BlockSpec((tm, N), lambda i: (i, 0)),
        compiler_params=pltpu.CompilerParams(
            dimension_semantics=("parallel",)),
    )(x, w, b2)


# ---------------------------------------------------------------------------
# Pallas kernel 2: fused conv3 + flatten + linear(1024->512) + linear1 +
# linear2 + v.  Input: per-image row of 16 lane-aligned 640-wide conv3 patch
# slots.  conv3 runs as 16 (tb,640)@(640,64) matmuls; the torch NCHW flatten is
# absorbed by the regrouped (pixel-major) linear weight, so the (tb,1024)
# feature is never materialized — each pixel's 64 channels contract directly
# with its own (64,512) weight slab into a shared f32 accumulator.
# The (B,1) value head is a VPU multiply + lane reduce, stored lane-dense as a
# (1, tb) row.
# ---------------------------------------------------------------------------
_N_PIX = 16        # conv3 output pixels per image (4x4)
_KPAD = 640        # per-pixel patch width, 576 (3*3*64) zero-padded to 5*128 lanes


def _conv3_head_kernel(p_ref, w3_ref, b3_ref, wl_ref, bl_ref,
                       w1_ref, b1_ref, w2_ref, b2_ref, vw_ref, vb_ref, o_ref):
    tb = p_ref.shape[0]
    acc = jnp.zeros((tb, 512), jnp.float32)
    for p in range(_N_PIX):
        xp = p_ref[:, p * _KPAD:(p + 1) * _KPAD]                  # (tb, 640) bf16
        h3 = jnp.dot(xp, w3_ref[...], preferred_element_type=jnp.float32)
        h3 = jnp.maximum(h3 + b3_ref[...], 0.0)                   # conv3+ReLU (tb,64)
        acc = acc + jnp.dot(h3.astype(jnp.bfloat16),
                            wl_ref[p * 64:(p + 1) * 64, :],       # (64,512) slab
                            preferred_element_type=jnp.float32)
    h = jnp.maximum(acc + bl_ref[...], 0.0)                       # linear+ReLU (tb,512)

    h = jnp.dot(h.astype(jnp.bfloat16), w1_ref[...],
                preferred_element_type=jnp.float32)
    h = jnp.maximum(h + b1_ref[...], 0.0)                         # linear1+ReLU (tb,64)

    h = jnp.dot(h.astype(jnp.bfloat16), w2_ref[...],
                preferred_element_type=jnp.float32)
    h = jnp.maximum(h + b2_ref[...], 0.0)                         # linear2+ReLU (tb,64)

    v = jnp.sum(h * vw_ref[...], axis=-1)                         # v head on VPU (tb,)
    o_ref[...] = (v[None, :] + vb_ref[...]).astype(o_ref.dtype)   # (1,tb) lane-dense


def conv3_head(patches, p, *, tile_b=256):
    """patches: (B, 16*640) bf16 -> (B, 1) f32."""
    B, KP = patches.shape
    tb = _pick_tile(B, tile_b)
    nb = pl.cdiv(B, tb)
    b_pad = nb * tb
    if b_pad != B:
        patches = jnp.pad(patches, ((0, b_pad - B), (0, 0)))

    const = lambda i: (0, 0)
    weights = (p["cnn3_w"], p["cnn3_b"], p["lin_w"], p["lin_b"],
               p["lin1_w"], p["lin1_b"], p["lin2_w"], p["lin2_b"],
               p["v_w"], p["v_b"])
    out = pl.pallas_call(
        _conv3_head_kernel,
        out_shape=jax.ShapeDtypeStruct((nb, tb), jnp.float32),
        grid=(nb,),
        in_specs=[pl.BlockSpec((tb, KP), lambda i: (i, 0))]
                + [pl.BlockSpec(w.shape, const) for w in weights],
        out_specs=pl.BlockSpec((1, tb), lambda i: (i, 0)),        # lane-dense store
        compiler_params=pltpu.CompilerParams(
            dimension_semantics=("parallel",)),
    )(patches, *weights)
    return out.reshape(b_pad, 1)[:B]


# ---------------------------------------------------------------------------
# im2col glue (pure slicing + lane-dense concatenate in XLA); conv compute is
# always inside a Pallas kernel.  Patch feature order is (kh, kw, Cin).
# ---------------------------------------------------------------------------
def _im2col_concat(x, k, stride):
    B, H, W, C = x.shape
    oh = (H - k) // stride + 1
    ow = (W - k) // stride + 1
    cols = []
    for i in range(k):
        for j in range(k):
            cols.append(x[:, i:i + stride * oh:stride, j:j + stride * ow:stride, :])
    patches = jnp.concatenate(cols, axis=-1)              # (B, oh, ow, k*k*C) lane-dense
    return patches.reshape(B * oh * ow, k * k * C), oh, ow


def _conv3_patches(x):
    """x: (B,6,6,64) -> (B, 16*640): 16 lane-aligned 640-wide patch slots/row."""
    B = x.shape[0]
    pats, oh, ow = _im2col_concat(x, 3, 1)                        # (B*16, 576)
    pats = jnp.pad(pats, ((0, 0), (0, _KPAD - 576)))              # align to 128 lanes
    return pats.reshape(B, oh * ow * _KPAD)                       # (B, 10240), free


# ---------------------------------------------------------------------------
# Parameter construction: same shapes as the nn.Module, stored matmul-ready:
# conv wmats (kh*kw*Cin, Cout) bf16 (rows in concat-im2col order, conv3 padded
# to 640 rows), biases (1,N) f32, and lin_w rows regrouped per conv3 pixel so
# the flatten permutation is free.
# ---------------------------------------------------------------------------
def init_params(key, input_dims=512, hidden_sizes=(64, 64)):
    def u(k, shape, bound):
        return jax.random.uniform(k, shape, jnp.float32, -bound, bound)

    ks = jax.random.split(key, 14)
    h0, h1 = hidden_sizes
    p = {}

    def conv(kw_, kb_, cout, cin, ksz, pad_k_to=None):
        fan_in = cin * ksz * ksz
        bound = 1.0 / fan_in ** 0.5
        w = u(kw_, (cout, cin, ksz, ksz), bound)                  # torch layout
        b = u(kb_, (cout,), bound)
        wmat = w.transpose(2, 3, 1, 0).reshape(fan_in, cout)      # (kh,kw,Cin) rows
        if pad_k_to is not None and pad_k_to > fan_in:
            wmat = jnp.pad(wmat, ((0, pad_k_to - fan_in), (0, 0)))
        return wmat.astype(jnp.bfloat16), b.reshape(1, cout).astype(jnp.float32)

    p["cnn1_w"], p["cnn1_b"] = conv(ks[0], ks[1], 32, 1, 8)                  # Conv2d(1,32,8,4)
    p["cnn2_w"], p["cnn2_b"] = conv(ks[2], ks[3], 64, 32, 4)                 # Conv2d(32,64,4,2)
    p["cnn3_w"], p["cnn3_b"] = conv(ks[4], ks[5], 64, 64, 3, pad_k_to=_KPAD)  # Conv2d(64,64,3,1)

    # linear: Linear(1024, 512).  Torch flattens conv3 NCHW as c*16 + p; we
    # regroup rows pixel-major (p*64 + c) so the NHWC/per-pixel contraction in
    # the fused kernel needs no activation reshape or transpose.
    bound = 1.0 / 1024 ** 0.5
    lw = u(ks[6], (1024, 512), bound)                             # rows = torch index c*16+p
    lw = lw.reshape(64, 16, 512).transpose(1, 0, 2).reshape(1024, 512)
    p["lin_w"] = lw.astype(jnp.bfloat16)
    p["lin_b"] = u(ks[7], (512,), bound).reshape(1, 512).astype(jnp.float32)

    bound = 1.0 / input_dims ** 0.5
    p["lin1_w"] = u(ks[8], (input_dims, h0), bound).astype(jnp.bfloat16)
    p["lin1_b"] = u(ks[9], (h0,), bound).reshape(1, h0).astype(jnp.float32)

    bound = 1.0 / h0 ** 0.5
    p["lin2_w"] = u(ks[10], (h0, h1), bound).astype(jnp.bfloat16)
    p["lin2_b"] = u(ks[11], (h1,), bound).reshape(1, h1).astype(jnp.float32)

    # v: Linear(h1, 1) with uniform(-0.003, 0.003); kept f32, used on the VPU.
    p["v_w"] = u(ks[12], (h1, 1), 0.003).reshape(1, h1).astype(jnp.float32)
    p["v_b"] = u(ks[13], (1,), 0.003).reshape(1, 1).astype(jnp.float32)
    return p


# ---------------------------------------------------------------------------
# Forward pass (mirrors ValueNetwork.forward).
# ---------------------------------------------------------------------------
def value_network_forward(state, params):
    # torch: img = state[:, :1]; img.view(-1,1,64,64) is then a shape no-op,
    # so the forward uses channel 0 only and returns one value per batch row.
    x = state[:, 0, :, :][..., None].astype(jnp.bfloat16)          # NHWC (B,64,64,1)
    B = x.shape[0]

    p1, oh, ow = _im2col_concat(x, 8, 4)                           # (B*225, 64)
    x = matmul_bias_relu(p1, params["cnn1_w"], params["cnn1_b"], tile_m=2048)
    x = x.reshape(B, oh, ow, 32)                                   # (B,15,15,32)

    p2, oh, ow = _im2col_concat(x, 4, 2)                           # (B*36, 512)
    x = matmul_bias_relu(p2, params["cnn2_w"], params["cnn2_b"], tile_m=2048)
    x = x.reshape(B, oh, ow, 64)                                   # (B,6,6,64)

    p3 = _conv3_patches(x)                                         # (B, 10240) bf16
    return conv3_head(p3, params)                                  # (B,1) f32


# ---------------------------------------------------------------------------
# Pure-JAX f32 reference (same stored parameters) for a numerical sanity check.
# ---------------------------------------------------------------------------
def reference_forward(state, p):
    def dense_relu(x, w, b):
        return jnp.maximum(x @ w.astype(jnp.float32) + b, 0.0)

    x = state[:, 0, :, :][..., None].astype(jnp.float32)
    B = x.shape[0]
    pat, oh, ow = _im2col_concat(x, 8, 4)
    x = dense_relu(pat, p["cnn1_w"], p["cnn1_b"]).reshape(B, oh, ow, 32)
    pat, oh, ow = _im2col_concat(x, 4, 2)
    x = dense_relu(pat, p["cnn2_w"], p["cnn2_b"]).reshape(B, oh, ow, 64)
    pat = _conv3_patches(x).reshape(B * _N_PIX, _KPAD)
    x = dense_relu(pat, p["cnn3_w"], p["cnn3_b"]).reshape(B, 1024)  # pixel-major feature
    x = dense_relu(x, p["lin_w"], p["lin_b"])
    x = dense_relu(x, p["lin1_w"], p["lin1_b"])
    x = dense_relu(x, p["lin2_w"], p["lin2_b"])
    return jnp.sum(x * p["v_w"].astype(jnp.float32), axis=-1, keepdims=True) + p["v_b"]


if __name__ == "__main__":
    key = jax.random.PRNGKey(0)
    kp, kx = jax.random.split(key)

    # Forward implies 64x64 images (view(-1,1,64,64)); batch=2, channels=4.
    state = jax.random.normal(kx, (2, 4, 64, 64), dtype=jnp.float32)
    params = init_params(kp, input_dims=512, hidden_sizes=(64, 64))

    fwd = jax.jit(value_network_forward)
    v = jax.block_until_ready(fwd(state, params))

    v_ref = reference_forward(state, params)
    assert v.shape == (2, 1), v.shape
    assert bool(jnp.all(jnp.isfinite(v)))
    assert float(jnp.max(jnp.abs(v - v_ref))) < 1e-3, (v, v_ref)
    print("KERNEL_OK")
</pallas_src>

<mosaic_0001>
module attributes {stable_mosaic.version = 11 : i64} {
  func.func @_matmul_bias_relu_kernel(%arg0: i32, %arg1: memref<450x64xbf16, #tpu.memory_space<vmem>>, %arg2: memref<64x32xbf16, #tpu.memory_space<vmem>>, %arg3: memref<1x32xf32, #tpu.memory_space<vmem>>, %arg4: memref<450x32xbf16, #tpu.memory_space<vmem>>) attributes {dimension_semantics = [#tpu.dimension_semantics<parallel>], iteration_bounds = array<i64: 1>, scalar_prefetch = 0 : i64, scratch_operands = 0 : i64, tpu.core_type = #tpu.core_type<tc>, window_params = [{transform_indices = @transform_0, window_bounds = array<i64: 450, 64>}, {pipeline_mode = #tpu.pipeline_mode<synchronous>, transform_indices = @transform_1, window_bounds = array<i64: 64, 32>}, {pipeline_mode = #tpu.pipeline_mode<synchronous>, transform_indices = @transform_2, window_bounds = array<i64: 1, 32>}, {transform_indices = @transform_3, window_bounds = array<i64: 450, 32>}]} {
    %c0 = arith.constant 0 : index
    %c0_0 = arith.constant 0 : index
    %0 = vector.load %arg1[%c0, %c0_0] : memref<450x64xbf16, #tpu.memory_space<vmem>>, vector<450x64xbf16>
    %c0_1 = arith.constant 0 : index
    %c0_2 = arith.constant 0 : index
    %1 = vector.load %arg2[%c0_1, %c0_2] : memref<64x32xbf16, #tpu.memory_space<vmem>>, vector<64x32xbf16>
    %cst = arith.constant dense<0.000000e+00> : vector<450x32xf32>
    %2 = tpu.matmul %0, %1, %cst {dimension_numbers = #tpu.dot_dimension_numbers<[1], [0], [0], [1], [0, 0, 1, 1], [], []>} : vector<450x64xbf16>, vector<64x32xbf16>, vector<450x32xf32> -> vector<450x32xf32>
    %c0_3 = arith.constant 0 : index
    %c0_4 = arith.constant 0 : index
    %3 = vector.load %arg3[%c0_3, %c0_4] : memref<1x32xf32, #tpu.memory_space<vmem>>, vector<1x32xf32>
    %4 = vector.broadcast %3 : vector<1x32xf32> to vector<450x32xf32>
    %5 = arith.addf %2, %4 : vector<450x32xf32>
    %cst_5 = arith.constant 0.000000e+00 : f32
    %6 = vector.broadcast %cst_5 : f32 to vector<450x32xf32>
    %7 = arith.maximumf %5, %6 : vector<450x32xf32>
    %8 = arith.truncf %7 : vector<450x32xf32> to vector<450x32xbf16>
    %c0_6 = arith.constant 0 : index
    %c0_7 = arith.constant 0 : index
    %9 = vector.load %arg4[%c0_6, %c0_7] : memref<450x32xbf16, #tpu.memory_space<vmem>>, vector<450x32xbf16>
    tpu.vector_store %arg4[%c0_6, %c0_7], %8 {strides = array<i32>} : memref<450x32xbf16, #tpu.memory_space<vmem>>, vector<450x32xbf16>,
    return
  }
  func.func @transform_0(%arg0: i32) -> (i32, i32) {
    %c0_i32 = arith.constant 0 : i32
    %c0_i32_0 = arith.constant 0 : i32
    return %arg0, %c0_i32 : i32, i32
  }
  func.func @transform_1(%arg0: i32) -> (i32, i32) {
    %c0_i32 = arith.constant 0 : i32
    %c0_i32_0 = arith.constant 0 : i32
    %c0_i32_1 = arith.constant 0 : i32
    return %c0_i32, %c0_i32_0 : i32, i32
  }
  func.func @transform_2(%arg0: i32) -> (i32, i32) {
    %c0_i32 = arith.constant 0 : i32
    %c0_i32_0 = arith.constant 0 : i32
    %c0_i32_1 = arith.constant 0 : i32
    return %c0_i32, %c0_i32_0 : i32, i32
  }
  func.func @transform_3(%arg0: i32) -> (i32, i32) {
    %c0_i32 = arith.constant 0 : i32
    %c0_i32_0 = arith.constant 0 : i32
    return %arg0, %c0_i32 : i32, i32
  }
}

module attributes {stable_mosaic.version = 11 : i64} {
  func.func @_matmul_bias_relu_kernel(%arg0: i32, %arg1: memref<72x512xbf16, #tpu.memory_space<vmem>>, %arg2: memref<512x64xbf16, #tpu.memory_space<vmem>>, %arg3: memref<1x64xf32, #tpu.memory_space<vmem>>, %arg4: memref<72x64xbf16, #tpu.memory_space<vmem>>) attributes {dimension_semantics = [#tpu.dimension_semantics<parallel>], iteration_bounds = array<i64: 1>, scalar_prefetch = 0 : i64, scratch_operands = 0 : i64, tpu.core_type = #tpu.core_type<tc>, window_params = [{transform_indices = @transform_0, window_bounds = array<i64: 72, 512>}, {pipeline_mode = #tpu.pipeline_mode<synchronous>, transform_indices = @transform_1, window_bounds = array<i64: 512, 64>}, {pipeline_mode = #tpu.pipeline_mode<synchronous>, transform_indices = @transform_2, window_bounds = array<i64: 1, 64>}, {transform_indices = @transform_3, window_bounds = array<i64: 72, 64>}]} {
    %c0 = arith.constant 0 : index
    %c0_0 = arith.constant 0 : index
    %0 = vector.load %arg1[%c0, %c0_0] : memref<72x512xbf16, #tpu.memory_space<vmem>>, vector<72x512xbf16>
    %c0_1 = arith.constant 0 : index
    %c0_2 = arith.constant 0 : index
    %1 = vector.load %arg2[%c0_1, %c0_2] : memref<512x64xbf16, #tpu.memory_space<vmem>>, vector<512x64xbf16>
    %cst = arith.constant dense<0.000000e+00> : vector<72x64xf32>
    %2 = tpu.matmul %0, %1, %cst {dimension_numbers = #tpu.dot_dimension_numbers<[1], [0], [0], [1], [0, 0, 1, 1], [], []>} : vector<72x512xbf16>, vector<512x64xbf16>, vector<72x64xf32> -> vector<72x64xf32>
    %c0_3 = arith.constant 0 : index
    %c0_4 = arith.constant 0 : index
    %3 = vector.load %arg3[%c0_3, %c0_4] : memref<1x64xf32, #tpu.memory_space<vmem>>, vector<1x64xf32>
    %4 = vector.broadcast %3 : vector<1x64xf32> to vector<72x64xf32>
    %5 = arith.addf %2, %4 : vector<72x64xf32>
    %cst_5 = arith.constant 0.000000e+00 : f32
    %6 = vector.broadcast %cst_5 : f32 to vector<72x64xf32>
    %7 = arith.maximumf %5, %6 : vector<72x64xf32>
    %8 = arith.truncf %7 : vector<72x64xf32> to vector<72x64xbf16>
    %c0_6 = arith.constant 0 : index
    %c0_7 = arith.constant 0 : index
    %9 = vector.load %arg4[%c0_6, %c0_7] : memref<72x64xbf16, #tpu.memory_space<vmem>>, vector<72x64xbf16>
    tpu.vector_store %arg4[%c0_6, %c0_7], %8 {strides = array<i32>} : memref<72x64xbf16, #tpu.memory_space<vmem>>, vector<72x64xbf16>,
    return
  }
  func.func @transform_0(%arg0: i32) -> (i32, i32) {
    %c0_i32 = arith.constant 0 : i32
    %c0_i32_0 = arith.constant 0 : i32
    return %arg0, %c0_i32 : i32, i32
  }
  func.func @transform_1(%arg0: i32) -> (i32, i32) {
    %c0_i32 = arith.constant 0 : i32
    %c0_i32_0 = arith.constant 0 : i32
    %c0_i32_1 = arith.constant 0 : i32
    return %c0_i32, %c0_i32_0 : i32, i32
  }
  func.func @transform_2(%arg0: i32) -> (i32, i32) {
    %c0_i32 = arith.constant 0 : i32
    %c0_i32_0 = arith.constant 0 : i32
    %c0_i32_1 = arith.constant 0 : i32
    return %c0_i32, %c0_i32_0 : i32, i32
  }
  func.func @transform_3(%arg0: i32) -> (i32, i32) {
    %c0_i32 = arith.constant 0 : i32
    %c0_i32_0 = arith.constant 0 : i32
    return %arg0, %c0_i32 : i32, i32
  }
}

module attributes {stable_mosaic.version = 11 : i64} {
  func.func @_conv3_head_kernel(%arg0: i32, %arg1: memref<2x10240xbf16, #tpu.memory_space<vmem>>, %arg2: memref<640x64xbf16, #tpu.memory_space<vmem>>, %arg3: memref<1x64xf32, #tpu.memory_space<vmem>>, %arg4: memref<1024x512xbf16, #tpu.memory_space<vmem>>, %arg5: memref<1x512xf32, #tpu.memory_space<vmem>>, %arg6: memref<512x64xbf16, #tpu.memory_space<vmem>>, %arg7: memref<1x64xf32, #tpu.memory_space<vmem>>, %arg8: memref<64x64xbf16, #tpu.memory_space<vmem>>, %arg9: memref<1x64xf32, #tpu.memory_space<vmem>>, %arg10: memref<1x64xf32, #tpu.memory_space<vmem>>, %arg11: memref<1x1xf32, #tpu.memory_space<vmem>>, %arg12: memref<1x2xf32, #tpu.memory_space<vmem>>) attributes {dimension_semantics = [#tpu.dimension_semantics<parallel>], iteration_bounds = array<i64: 1>, scalar_prefetch = 0 : i64, scratch_operands = 0 : i64, tpu.core_type = #tpu.core_type<tc>, window_params = [{transform_indices = @transform_0, window_bounds = array<i64: 2, 10240>}, {pipeline_mode = #tpu.pipeline_mode<synchronous>, transform_indices = @transform_1, window_bounds = array<i64: 640, 64>}, {pipeline_mode = #tpu.pipeline_mode<synchronous>, transform_indices = @transform_2, window_bounds = array<i64: 1, 64>}, {pipeline_mode = #tpu.pipeline_mode<synchronous>, transform_indices = @transform_3, window_bounds = array<i64: 1024, 512>}, {pipeline_mode = #tpu.pipeline_mode<synchronous>, transform_indices = @transform_4, window_bounds = array<i64: 1, 512>}, {pipeline_mode = #tpu.pipeline_mode<synchronous>, transform_indices = @transform_5, window_bounds = array<i64: 512, 64>}, {pipeline_mode = #tpu.pipeline_mode<synchronous>, transform_indices = @transform_6, window_bounds = array<i64: 1, 64>}, {pipeline_mode = #tpu.pipeline_mode<synchronous>, transform_indices = @transform_7, window_bounds = array<i64: 64, 64>}, {pipeline_mode = #tpu.pipeline_mode<synchronous>, transform_indices = @transform_8, window_bounds = array<i64: 1, 64>}, {pipeline_mode = #tpu.pipeline_mode<synchronous>, transform_indices = @transform_9, window_bounds = array<i64: 1, 64>}, {pipeline_mode = #tpu.pipeline_mode<synchronous>, transform_indices = @transform_10, window_bounds = array<i64: 1, 1>}, {transform_indices = @transform_11, window_bounds = array<i64: 1, 2>}]} {
    %cst = arith.constant 0.000000e+00 : f32
    %0 = vector.broadcast %cst : f32 to vector<2x512xf32>
    %c0 = arith.constant 0 : index
    %c0_0 = arith.constant 0 : index
    %1 = vector.load %arg1[%c0, %c0_0] : memref<2x10240xbf16, #tpu.memory_space<vmem>>, vector<2x640xbf16>
    %c0_1 = arith.constant 0 : index
    %c0_2 = arith.constant 0 : index
    %2 = vector.load %arg2[%c0_1, %c0_2] : memref<640x64xbf16, #tpu.memory_space<vmem>>, vector<640x64xbf16>
    %cst_3 = arith.constant dense<0.000000e+00> : vector<2x64xf32>
    %3 = tpu.matmul %1, %2, %cst_3 {dimension_numbers = #tpu.dot_dimension_numbers<[1], [0], [0], [1], [0, 0, 1, 1], [], []>} : vector<2x640xbf16>, vector<640x64xbf16>, vector<2x64xf32> -> vector<2x64xf32>
    %c0_4 = arith.constant 0 : index
    %c0_5 = arith.constant 0 : index
    %4 = vector.load %arg3[%c0_4, %c0_5] : memref<1x64xf32, #tpu.memory_space<vmem>>, vector<1x64xf32>
    %5 = vector.broadcast %4 : vector<1x64xf32> to vector<2x64xf32>
    %6 = arith.addf %3, %5 : vector<2x64xf32>
    %cst_6 = arith.constant 0.000000e+00 : f32
    %7 = vector.broadcast %cst_6 : f32 to vector<2x64xf32>
    %8 = arith.maximumf %6, %7 : vector<2x64xf32>
    %9 = arith.truncf %8 : vector<2x64xf32> to vector<2x64xbf16>
    %c0_7 = arith.constant 0 : index
    %c0_8 = arith.constant 0 : index
    %10 = vector.load %arg4[%c0_7, %c0_8] : memref<1024x512xbf16, #tpu.memory_space<vmem>>, vector<64x512xbf16>
    %cst_9 = arith.constant dense<0.000000e+00> : vector<2x512xf32>
    %11 = tpu.matmul %9, %10, %cst_9 {dimension_numbers = #tpu.dot_dimension_numbers<[1], [0], [0], [1], [0, 0, 1, 1], [], []>} : vector<2x64xbf16>, vector<64x512xbf16>, vector<2x512xf32> -> vector<2x512xf32>
    %12 = arith.addf %0, %11 : vector<2x512xf32>
    %c0_10 = arith.constant 0 : index
    %c640 = arith.constant 640 : index
    %13 = vector.load %arg1[%c0_10, %c640] : memref<2x10240xbf16, #tpu.memory_space<vmem>>, vector<2x640xbf16>
    %c0_11 = arith.constant 0 : index
    %c0_12 = arith.constant 0 : index
    %14 = vector.load %arg2[%c0_11, %c0_12] : memref<640x64xbf16, #tpu.memory_space<vmem>>, vector<640x64xbf16>
    %cst_13 = arith.constant dense<0.000000e+00> : vector<2x64xf32>
    %15 = tpu.matmul %13, %14, %cst_13 {dimension_numbers = #tpu.dot_dimension_numbers<[1], [0], [0], [1], [0, 0, 1, 1], [], []>} : vector<2x640xbf16>, vector<640x64xbf16>, vector<2x64xf32> -> vector<2x64xf32>
    %c0_14 = arith.constant 0 : index
    %c0_15 = arith.constant 0 : index
    %16 = vector.load %arg3[%c0_14, %c0_15] : memref<1x64xf32, #tpu.memory_space<vmem>>, vector<1x64xf32>
    %17 = vector.broadcast %16 : vector<1x64xf32> to vector<2x64xf32>
    %18 = arith.addf %15, %17 : vector<2x64xf32>
    %cst_16 = arith.constant 0.000000e+00 : f32
    %19 = vector.broadcast %cst_16 : f32 to vector<2x64xf32>
    %20 = arith.maximumf %18, %19 : vector<2x64xf32>
    %21 = arith.truncf %20 : vector<2x64xf32> to vector<2x64xbf16>
    %c64 = arith.constant 64 : index
    %c0_17 = arith.constant 0 : index
    %22 = vector.load %arg4[%c64, %c0_17] : memref<1024x512xbf16, #tpu.memory_space<vmem>>, vector<64x512xbf16>
    %cst_18 = arith.constant dense<0.000000e+00> : vector<2x512xf32>
    %23 = tpu.matmul %21, %22, %cst_18 {dimension_numbers = #tpu.dot_dimension_numbers<[1], [0], [0], [1], [0, 0, 1, 1], [], []>} : vector<2x64xbf16>, vector<64x512xbf16>, vector<2x512xf32> -> vector<2x512xf32>
    %24 = arith.addf %12, %23 : vector<2x512xf32>
    %c0_19 = arith.constant 0 : index
    %c1280 = arith.constant 1280 : index
    %25 = vector.load %arg1[%c0_19, %c1280] : memref<2x10240xbf16, #tpu.memory_space<vmem>>, vector<2x640xbf16>
    %c0_20 = arith.constant 0 : index
    %c0_21 = arith.constant 0 : index
    %26 = vector.load %arg2[%c0_20, %c0_21] : memref<640x64xbf16, #tpu.memory_space<vmem>>, vector<640x64xbf16>
    %cst_22 = arith.constant dense<0.000000e+00> : vector<2x64xf32>
    %27 = tpu.matmul %25, %26, %cst_22 {dimension_numbers = #tpu.dot_dimension_numbers<[1], [0], [0], [1], [0, 0, 1, 1], [], []>} : vector<2x640xbf16>, vector<640x64xbf16>, vector<2x64xf32> -> vector<2x64xf32>
    %c0_23 = arith.constant 0 : index
    %c0_24 = arith.constant 0 : index
    %28 = vector.load %arg3[%c0_23, %c0_24] : memref<1x64xf32, #tpu.memory_space<vmem>>, vector<1x64xf32>
    %29 = vector.broadcast %28 : vector<1x64xf32> to vector<2x64xf32>
    %30 = arith.addf %27, %29 : vector<2x64xf32>
    %cst_25 = arith.constant 0.000000e+00 : f32
    %31 = vector.broadcast %cst_25 : f32 to vector<2x64xf32>
    %32 = arith.maximumf %30, %31 : vector<2x64xf32>
    %33 = arith.truncf %32 : vector<2x64xf32> to vector<2x64xbf16>
    %c128 = arith.constant 128 : index
    %c0_26 = arith.constant 0 : index
    %34 = vector.load %arg4[%c128, %c0_26] : memref<1024x512xbf16, #tpu.memory_space<vmem>>, vector<64x512xbf16>
    %cst_27 = arith.constant dense<0.000000e+00> : vector<2x512xf32>
    %35 = tpu.matmul %33, %34, %cst_27 {dimension_numbers = #tpu.dot_dimension_numbers<[1], [0], [0], [1], [0, 0, 1, 1], [], []>} : vector<2x64xbf16>, vector<64x512xbf16>, vector<2x512xf32> -> vector<2x512xf32>
    %36 = arith.addf %24, %35 : vector<2x512xf32>
    %c0_28 = arith.constant 0 : index
    %c1920 = arith.constant 1920 : index
    %37 = vector.load %arg1[%c0_28, %c1920] : memref<2x10240xbf16, #tpu.memory_space<vmem>>, vector<2x640xbf16>
    %c0_29 = arith.constant 0 : index
    %c0_30 = arith.constant 0 : index
    %38 = vector.load %arg2[%c0_29, %c0_30] : memref<640x64xbf16, #tpu.memory_space<vmem>>, vector<640x64xbf16>
    %cst_31 = arith.constant dense<0.000000e+00> : vector<2x64xf32>
    %39 = tpu.matmul %37, %38, %cst_31 {dimension_numbers = #tpu.dot_dimension_numbers<[1], [0], [0], [1], [0, 0, 1, 1], [], []>} : vector<2x640xbf16>, vector<640x64xbf16>, vector<2x64xf32> -> vector<2x64xf32>
    %c0_32 = arith.constant 0 : index
    %c0_33 = arith.constant 0 : index
    %40 = vector.load %arg3[%c0_32, %c0_33] : memref<1x64xf32, #tpu.memory_space<vmem>>, vector<1x64xf32>
    %41 = vector.broadcast %40 : vector<1x64xf32> to vector<2x64xf32>
    %42 = arith.addf %39, %41 : vector<2x64xf32>
    %cst_34 = arith.constant 0.000000e+00 : f32
    %43 = vector.broadcast %cst_34 : f32 to vector<2x64xf32>
    %44 = arith.maximumf %42, %43 : vector<2x64xf32>
    %45 = arith.truncf %44 : vector<2x64xf32> to vector<2x64xbf16>
    %c192 = arith.constant 192 : index
    %c0_35 = arith.constant 0 : index
    %46 = vector.load %arg4[%c192, %c0_35] : memref<1024x512xbf16, #tpu.memory_space<vmem>>, vector<64x512xbf16>
    %cst_36 = arith.constant dense<0.000000e+00> : vector<2x512xf32>
    %47 = tpu.matmul %45, %46, %cst_36 {dimension_numbers = #tpu.dot_dimension_numbers<[1], [0], [0], [1], [0, 0, 1, 1], [], []>} : vector<2x64xbf16>, vector<64x512xbf16>, vector<2x512xf32> -> vector<2x512xf32>
    %48 = arith.addf %36, %47 : vector<2x512xf32>
    %c0_37 = arith.constant 0 : index
    %c2560 = arith.constant 2560 : index
    %49 = vector.load %arg1[%c0_37, %c2560] : memref<2x10240xbf16, #tpu.memory_space<vmem>>, vector<2x640xbf16>
    %c0_38 = arith.constant 0 : index
    %c0_39 = arith.constant 0 : index
    %50 = vector.load %arg2[%c0_38, %c0_39] : memref<640x64xbf16, #tpu.memory_space<vmem>>, vector<640x64xbf16>
    %cst_40 = arith.constant dense<0.000000e+00> : vector<2x64xf32>
    %51 = tpu.matmul %49, %50, %cst_40 {dimension_numbers = #tpu.dot_dimension_numbers<[1], [0], [0], [1], [0, 0, 1, 1], [], []>} : vector<2x640xbf16>, vector<640x64xbf16>, vector<2x64xf32> -> vector<2x64xf32>
    %c0_41 = arith.constant 0 : index
    %c0_42 = arith.constant 0 : index
    %52 = vector.load %arg3[%c0_41, %c0_42] : memref<1x64xf32, #tpu.memory_space<vmem>>, vector<1x64xf32>
    %53 = vector.broadcast %52 : vector<1x64xf32> to vector<2x64xf32>
    %54 = arith.addf %51, %53 : vector<2x64xf32>
    %cst_43 = arith.constant 0.000000e+00 : f32
    %55 = vector.broadcast %cst_43 : f32 to vector<2x64xf32>
    %56 = arith.maximumf %54, %55 : vector<2x64xf32>
    %57 = arith.truncf %56 : vector<2x64xf32> to vector<2x64xbf16>
    %c256 = arith.constant 256 : index
    %c0_44 = arith.constant 0 : index
    %58 = vector.load %arg4[%c256, %c0_44] : memref<1024x512xbf16, #tpu.memory_space<vmem>>, vector<64x512xbf16>
    %cst_45 = arith.constant dense<0.000000e+00> : vector<2x512xf32>
    %59 = tpu.matmul %57, %58, %cst_45 {dimension_numbers = #tpu.dot_dimension_numbers<[1], [0], [0], [1], [0, 0, 1, 1], [], []>} : vector<2x64xbf16>, vector<64x512xbf16>, vector<2x512xf32> -> vector<2x512xf32>
    %60 = arith.addf %48, %59 : vector<2x512xf32>
    %c0_46 = arith.constant 0 : index
    %c3200 = arith.constant 3200 : index
    %61 = vector.load %arg1[%c0_46, %c3200] : memref<2x10240xbf16, #tpu.memory_space<vmem>>, vector<2x640xbf16>
    %c0_47 = arith.constant 0 : index
    %c0_48 = arith.constant 0 : index
    %62 = vector.load %arg2[%c0_47, %c0_48] : memref<640x64xbf16, #tpu.memory_space<vmem>>, vector<640x64xbf16>
    %cst_49 = arith.constant dense<0.000000e+00> : vector<2x64xf32>
    %63 = tpu.matmul %61, %62, %cst_49 {dimension_numbers = #tpu.dot_dimension_numbers<[1], [0], [0], [1], [0, 0, 1, 1], [], []>} : vector<2x640xbf16>, vector<640x64xbf16>, vector<2x64xf32> -> vector<2x64xf32>
    %c0_50 = arith.constant 0 : index
    %c0_51 = arith.constant 0 : index
    %64 = vector.load %arg3[%c0_50, %c0_51] : memref<1x64xf32, #tpu.memory_space<vmem>>, vector<1x64xf32>
    %65 = vector.broadcast %64 : vector<1x64xf32> to vector<2x64xf32>
    %66 = arith.addf %63, %65 : vector<2x64xf32>
    %cst_52 = arith.constant 0.000000e+00 : f32
    %67 = vector.broadcast %cst_52 : f32 to vector<2x64xf32>
    %68 = arith.maximumf %66, %67 : vector<2x64xf32>
    %69 = arith.truncf %68 : vector<2x64xf32> to vector<2x64xbf16>
    %c320 = arith.constant 320 : index
    %c0_53 = arith.constant 0 : index
    %70 = vector.load %arg4[%c320, %c0_53] : memref<1024x512xbf16, #tpu.memory_space<vmem>>, vector<64x512xbf16>
    %cst_54 = arith.constant dense<0.000000e+00> : vector<2x512xf32>
    %71 = tpu.matmul %69, %70, %cst_54 {dimension_numbers = #tpu.dot_dimension_numbers<[1], [0], [0], [1], [0, 0, 1, 1], [], []>} : vector<2x64xbf16>, vector<64x512xbf16>, vector<2x512xf32> -> vector<2x512xf32>
    %72 = arith.addf %60, %71 : vector<2x512xf32>
    %c0_55 = arith.constant 0 : index
    %c3840 = arith.constant 3840 : index
    %73 = vector.load %arg1[%c0_55, %c3840] : memref<2x10240xbf16, #tpu.memory_space<vmem>>, vector<2x640xbf16>
    %c0_56 = arith.constant 0 : index
    %c0_57 = arith.constant 0 : index
    %74 = vector.load %arg2[%c0_56, %c0_57] : memref<640x64xbf16, #tpu.memory_space<vmem>>, vector<640x64xbf16>
    %cst_58 = arith.constant dense<0.000000e+00> : vector<2x64xf32>
    %75 = tpu.matmul %73, %74, %cst_58 {dimension_numbers = #tpu.dot_dimension_numbers<[1], [0], [0], [1], [0, 0, 1, 1], [], []>} : vector<2x640xbf16>, vector<640x64xbf16>, vector<2x64xf32> -> vector<2x64xf32>
    %c0_59 = arith.constant 0 : index
    %c0_60 = arith.constant 0 : index
    %76 = vector.load %arg3[%c0_59, %c0_60] : memref<1x64xf32, #tpu.memory_space<vmem>>, vector<1x64xf32>
    %77 = vector.broadcast %76 : vector<1x64xf32> to vector<2x64xf32>
    %78 = arith.addf %75, %77 : vector<2x64xf32>
    %cst_61 = arith.constant 0.000000e+00 : f32
    %79 = vector.broadcast %cst_61 : f32 to vector<2x64xf32>
    %80 = arith.maximumf %78, %79 : vector<2x64xf32>
    %81 = arith.truncf %80 : vector<2x64xf32> to vector<2x64xbf16>
    %c384 = arith.constant 384 : index
    %c0_62 = arith.constant 0 : index
    %82 = vector.load %arg4[%c384, %c0_62] : memref<1024x512xbf16, #tpu.memory_space<vmem>>, vector<64x512xbf16>
    %cst_63 = arith.constant dense<0.000000e+00> : vector<2x512xf32>
    %83 = tpu.matmul %81, %82, %cst_63 {dimension_numbers = #tpu.dot_dimension_numbers<[1], [0], [0], [1], [0, 0, 1, 1], [], []>} : vector<2x64xbf16>, vector<64x512xbf16>, vector<2x512xf32> -> vector<2x512xf32>
    %84 = arith.addf %72, %83 : vector<2x512xf32>
    %c0_64 = arith.constant 0 : index
    %c4480 = arith.constant 4480 : index
    %85 = vector.load %arg1[%c0_64, %c4480] : memref<2x10240xbf16, #tpu.memory_space<vmem>>, vector<2x640xbf16>
    %c0_65 = arith.constant 0 : index
    %c0_66 = arith.constant 0 : index
    %86 = vector.load %arg2[%c0_65, %c0_66] : memref<640x64xbf16, #tpu.memory_space<vmem>>, vector<640x64xbf16>
    %cst_67 = arith.constant dense<0.000000e+00> : vector<2x64xf32>
    %87 = tpu.matmul %85, %86, %cst_67 {dimension_numbers = #tpu.dot_dimension_numbers<[1], [0], [0], [1], [0, 0, 1, 1], [], []>} : vector<2x640xbf16>, vector<640x64xbf16>, vector<2x64xf32> -> vector<2x64xf32>
    %c0_68 = arith.constant 0 : index
    %c0_69 = arith.constant 0 : index
    %88 = vector.load %arg3[%c0_68, %c0_69] : memref<1x64xf32, #tpu.memory_space<vmem>>, vector<1x64xf32>
    %89 = vector.broadcast %88 : vector<1x64xf32> to vector<2x64xf32>
    %90 = arith.addf %87, %89 : vector<2x64xf32>
    %cst_70 = arith.constant 0.000000e+00 : f32
    %91 = vector.broadcast %cst_70 : f32 to vector<2x64xf32>
    %92 = arith.maximumf %90, %91 : vector<2x64xf32>
    %93 = arith.truncf %92 : vector<2x64xf32> to vector<2x64xbf16>
    %c448 = arith.constant 448 : index
    %c0_71 = arith.constant 0 : index
    %94 = vector.load %arg4[%c448, %c0_71] : memref<1024x512xbf16, #tpu.memory_space<vmem>>, vector<64x512xbf16>
    %cst_72 = arith.constant dense<0.000000e+00> : vector<2x512xf32>
    %95 = tpu.matmul %93, %94, %cst_72 {dimension_numbers = #tpu.dot_dimension_numbers<[1], [0], [0], [1], [0, 0, 1, 1], [], []>} : vector<2x64xbf16>, vector<64x512xbf16>, vector<2x512xf32> -> vector<2x512xf32>
    %96 = arith.addf %84, %95 : vector<2x512xf32>
    %c0_73 = arith.constant 0 : index
    %c5120 = arith.constant 5120 : index
    %97 = vector.load %arg1[%c0_73, %c5120] : memref<2x10240xbf16, #tpu.memory_space<vmem>>, vector<2x640xbf16>
    %c0_74 = arith.constant 0 : index
    %c0_75 = arith.constant 0 : index
    %98 = vector.load %arg2[%c0_74, %c0_75] : memref<640x64xbf16, #tpu.memory_space<vmem>>, vector<640x64xbf16>
    %cst_76 = arith.constant dense<0.000000e+00> : vector<2x64xf32>
    %99 = tpu.matmul %97, %98, %cst_76 {dimension_numbers = #tpu.dot_dimension_numbers<[1], [0], [0], [1], [0, 0, 1, 1], [], []>} : vector<2x640xbf16>, vector<640x64xbf16>, vector<2x64xf32> -> vector<2x64xf32>
    %c0_77 = arith.constant 0 : index
    %c0_78 = arith.constant 0 : index
    %100 = vector.load %arg3[%c0_77, %c0_78] : memref<1x64xf32, #tpu.memory_space<vmem>>, vector<1x64xf32>
    %101 = vector.broadcast %100 : vector<1x64xf32> to vector<2x64xf32>
    %102 = arith.addf %99, %101 : vector<2x64xf32>
    %cst_79 = arith.constant 0.000000e+00 : f32
    %103 = vector.broadcast %cst_79 : f32 to vector<2x64xf32>
    %104 = arith.maximumf %102, %103 : vector<2x64xf32>
    %105 = arith.truncf %104 : vector<2x64xf32> to vector<2x64xbf16>
    %c512 = arith.constant 512 : index
    %c0_80 = arith.constant 0 : index
    %106 = vector.load %arg4[%c512, %c0_80] : memref<1024x512xbf16, #tpu.memory_space<vmem>>, vector<64x512xbf16>
    %cst_81 = arith.constant dense<0.000000e+00> : vector<2x512xf32>
    %107 = tpu.matmul %105, %106, %cst_81 {dimension_numbers = #tpu.dot_dimension_numbers<[1], [0], [0], [1], [0, 0, 1, 1], [], []>} : vector<2x64xbf16>, vector<64x512xbf16>, vector<2x512xf32> -> vector<2x512xf32>
    %108 = arith.addf %96, %107 : vector<2x512xf32>
    %c0_82 = arith.constant 0 : index
    %c5760 = arith.constant 5760 : index
    %109 = vector.load %arg1[%c0_82, %c5760] : memref<2x10240xbf16, #tpu.memory_space<vmem>>, vector<2x640xbf16>
    %c0_83 = arith.constant 0 : index
    %c0_84 = arith.constant 0 : index
    %110 = vector.load %arg2[%c0_83, %c0_84] : memref<640x64xbf16, #tpu.memory_space<vmem>>, vector<640x64xbf16>
    %cst_85 = arith.constant dense<0.000000e+00> : vector<2x64xf32>
    %111 = tpu.matmul %109, %110, %cst_85 {dimension_numbers = #tpu.dot_dimension_numbers<[1], [0], [0], [1], [0, 0, 1, 1], [], []>} : vector<2x640xbf16>, vector<640x64xbf16>, vector<2x64xf32> -> vector<2x64xf32>
    %c0_86 = arith.constant 0 : index
    %c0_87 = arith.constant 0 : index
    %112 = vector.load %arg3[%c0_86, %c0_87] : memref<1x64xf32, #tpu.memory_space<vmem>>, vector<1x64xf32>
    %113 = vector.broadcast %112 : vector<1x64xf32> to vector<2x64xf32>
    %114 = arith.addf %111, %113 : vector<2x64xf32>
    %cst_88 = arith.constant 0.000000e+00 : f32
    %115 = vector.broadcast %cst_88 : f32 to vector<2x64xf32>
    %116 = arith.maximumf %114, %115 : vector<2x64xf32>
    %117 = arith.truncf %116 : vector<2x64xf32> to vector<2x64xbf16>
    %c576 = arith.constant 576 : index
    %c0_89 = arith.constant 0 : index
    %118 = vector.load %arg4[%c576, %c0_89] : memref<1024x512xbf16, #tpu.memory_space<vmem>>, vector<64x512xbf16>
    %cst_90 = arith.constant dense<0.000000e+00> : vector<2x512xf32>
    %119 = tpu.matmul %117, %118, %cst_90 {dimension_numbers = #tpu.dot_dimension_numbers<[1], [0], [0], [1], [0, 0, 1, 1], [], []>} : vector<2x64xbf16>, vector<64x512xbf16>, vector<2x512xf32> -> vector<2x512xf32>
    %120 = arith.addf %108, %119 : vector<2x512xf32>
    %c0_91 = arith.constant 0 : index
    %c6400 = arith.constant 6400 : index
    %121 = vector.load %arg1[%c0_91, %c6400] : memref<2x10240xbf16, #tpu.memory_space<vmem>>, vector<2x640xbf16>
    %c0_92 = arith.constant 0 : index
    %c0_93 = arith.constant 0 : index
    %122 = vector.load %arg2[%c0_92, %c0_93] : memref<640x64xbf16, #tpu.memory_space<vmem>>, vector<640x64xbf16>
    %cst_94 = arith.constant dense<0.000000e+00> : vector<2x64xf32>
    %123 = tpu.matmul %121, %122, %cst_94 {dimension_numbers = #tpu.dot_dimension_numbers<[1], [0], [0], [1], [0, 0, 1, 1], [], []>} : vector<2x640xbf16>, vector<640x64xbf16>, vector<2x64xf32> -> vector<2x64xf32>
    %c0_95 = arith.constant 0 : index
    %c0_96 = arith.constant 0 : index
    %124 = vector.load %arg3[%c0_95, %c0_96] : memref<1x64xf32, #tpu.memory_space<vmem>>, vector<1x64xf32>
    %125 = vector.broadcast %124 : vector<1x64xf32> to vector<2x64xf32>
    %126 = arith.addf %123, %125 : vector<2x64xf32>
    %cst_97 = arith.constant 0.000000e+00 : f32
    %127 = vector.broadcast %cst_97 : f32 to vector<2x64xf32>
    %128 = arith.maximumf %126, %127 : vector<2x64xf32>
    %129 = arith.truncf %128 : vector<2x64xf32> to vector<2x64xbf16>
    %c640_98 = arith.constant 640 : index
    %c0_99 = arith.constant 0 : index
    %130 = vector.load %arg4[%c640_98, %c0_99] : memref<1024x512xbf16, #tpu.memory_space<vmem>>, vector<64x512xbf16>
    %cst_100 = arith.constant dense<0.000000e+00> : vector<2x512xf32>
    %131 = tpu.matmul %129, %130, %cst_100 {dimension_numbers = #tpu.dot_dimension_numbers<[1], [0], [0], [1], [0, 0, 1, 1], [], []>} : vector<2x64xbf16>, vector<64x512xbf16>, vector<2x512xf32> -> vector<2x512xf32>
    %132 = arith.addf %120, %131 : vector<2x512xf32>
    %c0_101 = arith.constant 0 : index
    %c7040 = arith.constant 7040 : index
    %133 = vector.load %arg1[%c0_101, %c7040] : memref<2x10240xbf16, #tpu.memory_space<vmem>>, vector<2x640xbf16>
    %c0_102 = arith.constant 0 : index
    %c0_103 = arith.constant 0 : index
    %134 = vector.load %arg2[%c0_102, %c0_103] : memref<640x64xbf16, #tpu.memory_space<vmem>>, vector<640x64xbf16>
    %cst_104 = arith.constant dense<0.000000e+00> : vector<2x64xf32>
    %135 = tpu.matmul %133, %134, %cst_104 {dimension_numbers = #tpu.dot_dimension_numbers<[1], [0], [0], [1], [0, 0, 1, 1], [], []>} : vector<2x640xbf16>, vector<640x64xbf16>, vector<2x64xf32> -> vector<2x64xf32>
    %c0_105 = arith.constant 0 : index
    %c0_106 = arith.constant 0 : index
    %136 = vector.load %arg3[%c0_105, %c0_106] : memref<1x64xf32, #tpu.memory_space<vmem>>, vector<1x64xf32>
    %137 = vector.broadcast %136 : vector<1x64xf32> to vector<2x64xf32>
    %138 = arith.addf %135, %137 : vector<2x64xf32>
    %cst_107 = arith.constant 0.000000e+00 : f32
    %139 = vector.broadcast %cst_107 : f32 to vector<2x64xf32>
    %140 = arith.maximumf %138, %139 : vector<2x64xf32>
    %141 = arith.truncf %140 : vector<2x64xf32> to vector<2x64xbf16>
    %c704 = arith.constant 704 : index
    %c0_108 = arith.constant 0 : index
    %142 = vector.load %arg4[%c704, %c0_108] : memref<1024x512xbf16, #tpu.memory_space<vmem>>, vector<64x512xbf16>
    %cst_109 = arith.constant dense<0.000000e+00> : vector<2x512xf32>
    %143 = tpu.matmul %141, %142, %cst_109 {dimension_numbers = #tpu.dot_dimension_numbers<[1], [0], [0], [1], [0, 0, 1, 1], [], []>} : vector<2x64xbf16>, vector<64x512xbf16>, vector<2x512xf32> -> vector<2x512xf32>
    %144 = arith.addf %132, %143 : vector<2x512xf32>
    %c0_110 = arith.constant 0 : index
    %c7680 = arith.constant 7680 : index
    %145 = vector.load %arg1[%c0_110, %c7680] : memref<2x10240xbf16, #tpu.memory_space<vmem>>, vector<2x640xbf16>
    %c0_111 = arith.constant 0 : index
    %c0_112 = arith.constant 0 : index
    %146 = vector.load %arg2[%c0_111, %c0_112] : memref<640x64xbf16, #tpu.memory_space<vmem>>, vector<640x64xbf16>
    %cst_113 = arith.constant dense<0.000000e+00> : vector<2x64xf32>
    %147 = tpu.matmul %145, %146, %cst_113 {dimension_numbers = #tpu.dot_dimension_numbers<[1], [0], [0], [1], [0, 0, 1, 1], [], []>} : vector<2x640xbf16>, vector<640x64xbf16>, vector<2x64xf32> -> vector<2x64xf32>
    %c0_114 = arith.constant 0 : index
    %c0_115 = arith.constant 0 : index
    %148 = vector.load %arg3[%c0_114, %c0_115] : memref<1x64xf32, #tpu.memory_space<vmem>>, vector<1x64xf32>
    %149 = vector.broadcast %148 : vector<1x64xf32> to vector<2x64xf32>
    %150 = arith.addf %147, %149 : vector<2x64xf32>
    %cst_116 = arith.constant 0.000000e+00 : f32
    %151 = vector.broadcast %cst_116 : f32 to vector<2x64xf32>
    %152 = arith.maximumf %150, %151 : vector<2x64xf32>
    %153 = arith.truncf %152 : vector<2x64xf32> to vector<2x64xbf16>
    %c768 = arith.constant 768 : index
    %c0_117 = arith.constant 0 : index
    %154 = vector.load %arg4[%c768, %c0_117] : memref<1024x512xbf16, #tpu.memory_space<vmem>>, vector<64x512xbf16>
    %cst_118 = arith.constant dense<0.000000e+00> : vector<2x512xf32>
    %155 = tpu.matmul %153, %154, %cst_118 {dimension_numbers = #tpu.dot_dimension_numbers<[1], [0], [0], [1], [0, 0, 1, 1], [], []>} : vector<2x64xbf16>, vector<64x512xbf16>, vector<2x512xf32> -> vector<2x512xf32>
    %156 = arith.addf %144, %155 : vector<2x512xf32>
    %c0_119 = arith.constant 0 : index
    %c8320 = arith.constant 8320 : index
    %157 = vector.load %arg1[%c0_119, %c8320] : memref<2x10240xbf16, #tpu.memory_space<vmem>>, vector<2x640xbf16>
    %c0_120 = arith.constant 0 : index
    %c0_121 = arith.constant 0 : index
    %158 = vector.load %arg2[%c0_120, %c0_121] : memref<640x64xbf16, #tpu.memory_space<vmem>>, vector<640x64xbf16>
    %cst_122 = arith.constant dense<0.000000e+00> : vector<2x64xf32>
    %159 = tpu.matmul %157, %158, %cst_122 {dimension_numbers = #tpu.dot_dimension_numbers<[1], [0], [0], [1], [0, 0, 1, 1], [], []>} : vector<2x640xbf16>, vector<640x64xbf16>, vector<2x64xf32> -> vector<2x64xf32>
    %c0_123 = arith.constant 0 : index
    %c0_124 = arith.constant 0 : index
    %160 = vector.load %arg3[%c0_123, %c0_124] : memref<1x64xf32, #tpu.memory_space<vmem>>, vector<1x64xf32>
    %161 = vector.broadcast %160 : vector<1x64xf32> to vector<2x64xf32>
    %162 = arith.addf %159, %161 : vector<2x64xf32>
    %cst_125 = arith.constant 0.000000e+00 : f32
    %163 = vector.broadcast %cst_125 : f32 to vector<2x64xf32>
    %164 = arith.maximumf %162, %163 : vector<2x64xf32>
    %165 = arith.truncf %164 : vector<2x64xf32> to vector<2x64xbf16>
    %c832 = arith.constant 832 : index
    %c0_126 = arith.constant 0 : index
    %166 = vector.load %arg4[%c832, %c0_126] : memref<1024x512xbf16, #tpu.memory_space<vmem>>, vector<64x512xbf16>
    %cst_127 = arith.constant dense<0.000000e+00> : vector<2x512xf32>
    %167 = tpu.matmul %165, %166, %cst_127 {dimension_numbers = #tpu.dot_dimension_numbers<[1], [0], [0], [1], [0, 0, 1, 1], [], []>} : vector<2x64xbf16>, vector<64x512xbf16>, vector<2x512xf32> -> vector<2x512xf32>
    %168 = arith.addf %156, %167 : vector<2x512xf32>
    %c0_128 = arith.constant 0 : index
    %c8960 = arith.constant 8960 : index
    %169 = vector.load %arg1[%c0_128, %c8960] : memref<2x10240xbf16, #tpu.memory_space<vmem>>, vector<2x640xbf16>
    %c0_129 = arith.constant 0 : index
    %c0_130 = arith.constant 0 : index
    %170 = vector.load %arg2[%c0_129, %c0_130] : memref<640x64xbf16, #tpu.memory_space<vmem>>, vector<640x64xbf16>
    %cst_131 = arith.constant dense<0.000000e+00> : vector<2x64xf32>
    %171 = tpu.matmul %169, %170, %cst_131 {dimension_numbers = #tpu.dot_dimension_numbers<[1], [0], [0], [1], [0, 0, 1, 1], [], []>} : vector<2x640xbf16>, vector<640x64xbf16>, vector<2x64xf32> -> vector<2x64xf32>
    %c0_132 = arith.constant 0 : index
    %c0_133 = arith.constant 0 : index
    %172 = vector.load %arg3[%c0_132, %c0_133] : memref<1x64xf32, #tpu.memory_space<vmem>>, vector<1x64xf32>
    %173 = vector.broadcast %172 : vector<1x64xf32> to vector<2x64xf32>
    %174 = arith.addf %171, %173 : vector<2x64xf32>
    %cst_134 = arith.constant 0.000000e+00 : f32
    %175 = vector.broadcast %cst_134 : f32 to vector<2x64xf32>
    %176 = arith.maximumf %174, %175 : vector<2x64xf32>
    %177 = arith.truncf %176 : vector<2x64xf32> to vector<2x64xbf16>
    %c896 = arith.constant 896 : index
    %c0_135 = arith.constant 0 : index
    %178 = vector.load %arg4[%c896, %c0_135] : memref<1024x512xbf16, #tpu.memory_space<vmem>>, vector<64x512xbf16>
    %cst_136 = arith.constant dense<0.000000e+00> : vector<2x512xf32>
    %179 = tpu.matmul %177, %178, %cst_136 {dimension_numbers = #tpu.dot_dimension_numbers<[1], [0], [0], [1], [0, 0, 1, 1], [], []>} : vector<2x64xbf16>, vector<64x512xbf16>, vector<2x512xf32> -> vector<2x512xf32>
    %180 = arith.addf %168, %179 : vector<2x512xf32>
    %c0_137 = arith.constant 0 : index
    %c9600 = arith.constant 9600 : index
    %181 = vector.load %arg1[%c0_137, %c9600] : memref<2x10240xbf16, #tpu.memory_space<vmem>>, vector<2x640xbf16>
    %c0_138 = arith.constant 0 : index
    %c0_139 = arith.constant 0 : index
    %182 = vector.load %arg2[%c0_138, %c0_139] : memref<640x64xbf16, #tpu.memory_space<vmem>>, vector<640x64xbf16>
    %cst_140 = arith.constant dense<0.000000e+00> : vector<2x64xf32>
    %183 = tpu.matmul %181, %182, %cst_140 {dimension_numbers = #tpu.dot_dimension_numbers<[1], [0], [0], [1], [0, 0, 1, 1], [], []>} : vector<2x640xbf16>, vector<640x64xbf16>, vector<2x64xf32> -> vector<2x64xf32>
    %c0_141 = arith.constant 0 : index
    %c0_142 = arith.constant 0 : index
    %184 = vector.load %arg3[%c0_141, %c0_142] : memref<1x64xf32, #tpu.memory_space<vmem>>, vector<1x64xf32>
    %185 = vector.broadcast %184 : vector<1x64xf32> to vector<2x64xf32>
    %186 = arith.addf %183, %185 : vector<2x64xf32>
    %cst_143 = arith.constant 0.000000e+00 : f32
    %187 = vector.broadcast %cst_143 : f32 to vector<2x64xf32>
    %188 = arith.maximumf %186, %187 : vector<2x64xf32>
    %189 = arith.truncf %188 : vector<2x64xf32> to vector<2x64xbf16>
    %c960 = arith.constant 960 : index
    %c0_144 = arith.constant 0 : index
    %190 = vector.load %arg4[%c960, %c0_144] : memref<1024x512xbf16, #tpu.memory_space<vmem>>, vector<64x512xbf16>
    %cst_145 = arith.constant dense<0.000000e+00> : vector<2x512xf32>
    %191 = tpu.matmul %189, %190, %cst_145 {dimension_numbers = #tpu.dot_dimension_numbers<[1], [0], [0], [1], [0, 0, 1, 1], [], []>} : vector<2x64xbf16>, vector<64x512xbf16>, vector<2x512xf32> -> vector<2x512xf32>
    %192 = arith.addf %180, %191 : vector<2x512xf32>
    %c0_146 = arith.constant 0 : index
    %c0_147 = arith.constant 0 : index
    %193 = vector.load %arg5[%c0_146, %c0_147] : memref<1x512xf32, #tpu.memory_space<vmem>>, vector<1x512xf32>
    %194 = vector.broadcast %193 : vector<1x512xf32> to vector<2x512xf32>
    %195 = arith.addf %192, %194 : vector<2x512xf32>
    %cst_148 = arith.constant 0.000000e+00 : f32
    %196 = vector.broadcast %cst_148 : f32 to vector<2x512xf32>
    %197 = arith.maximumf %195, %196 : vector<2x512xf32>
    %198 = arith.truncf %197 : vector<2x512xf32> to vector<2x512xbf16>
    %c0_149 = arith.constant 0 : index
    %c0_150 = arith.constant 0 : index
    %199 = vector.load %arg6[%c0_149, %c0_150] : memref<512x64xbf16, #tpu.memory_space<vmem>>, vector<512x64xbf16>
    %cst_151 = arith.constant dense<0.000000e+00> : vector<2x64xf32>
    %200 = tpu.matmul %198, %199, %cst_151 {dimension_numbers = #tpu.dot_dimension_numbers<[1], [0], [0], [1], [0, 0, 1, 1], [], []>} : vector<2x512xbf16>, vector<512x64xbf16>, vector<2x64xf32> -> vector<2x64xf32>
    %c0_152 = arith.constant 0 : index
    %c0_153 = arith.constant 0 : index
    %201 = vector.load %arg7[%c0_152, %c0_153] : memref<1x64xf32, #tpu.memory_space<vmem>>, vector<1x64xf32>
    %202 = vector.broadcast %201 : vector<1x64xf32> to vector<2x64xf32>
    %203 = arith.addf %200, %202 : vector<2x64xf32>
    %cst_154 = arith.constant 0.000000e+00 : f32
    %204 = vector.broadcast %cst_154 : f32 to vector<2x64xf32>
    %205 = arith.maximumf %203, %204 : vector<2x64xf32>
    %206 = arith.truncf %205 : vector<2x64xf32> to vector<2x64xbf16>
    %c0_155 = arith.constant 0 : index
    %c0_156 = arith.constant 0 : index
    %207 = vector.load %arg8[%c0_155, %c0_156] : memref<64x64xbf16, #tpu.memory_space<vmem>>, vector<64x64xbf16>
    %cst_157 = arith.constant dense<0.000000e+00> : vector<2x64xf32>
    %208 = tpu.matmul %206, %207, %cst_157 {dimension_numbers = #tpu.dot_dimension_numbers<[1], [0], [0], [1], [0, 0, 1, 1], [], []>} : vector<2x64xbf16>, vector<64x64xbf16>, vector<2x64xf32> -> vector<2x64xf32>
    %c0_158 = arith.constant 0 : index
    %c0_159 = arith.constant 0 : index
    %209 = vector.load %arg9[%c0_158, %c0_159] : memref<1x64xf32, #tpu.memory_space<vmem>>, vector<1x64xf32>
    %210 = vector.broadcast %209 : vector<1x64xf32> to vector<2x64xf32>
    %211 = arith.addf %208, %210 : vector<2x64xf32>
    %cst_160 = arith.constant 0.000000e+00 : f32
    %212 = vector.broadcast %cst_160 : f32 to vector<2x64xf32>
    %213 = arith.maximumf %211, %212 : vector<2x64xf32>
    %c0_161 = arith.constant 0 : index
    %c0_162 = arith.constant 0 : index
    %214 = vector.load %arg10[%c0_161, %c0_162] : memref<1x64xf32, #tpu.memory_space<vmem>>, vector<1x64xf32>
    %215 = vector.broadcast %214 : vector<1x64xf32> to vector<2x64xf32>
    %216 = arith.mulf %213, %215 : vector<2x64xf32>
    %cst_163 = arith.constant dense<0.000000e+00> : vector<2xf32>
    %217 = vector.multi_reduction <add>, %216, %cst_163 [1] : vector<2x64xf32> to vector<2xf32>
    %218 = vector.shape_cast %217 : vector<2xf32> to vector<1x2xf32>
    %c0_164 = arith.constant 0 : index
    %c0_165 = arith.constant 0 : index
    %219 = vector.load %arg11[%c0_164, %c0_165] : memref<1x1xf32, #tpu.memory_space<vmem>>, vector<1x1xf32>
    %220 = vector.broadcast %219 : vector<1x1xf32> to vector<1x2xf32>
    %221 = arith.addf %218, %220 : vector<1x2xf32>
    %c0_166 = arith.constant 0 : index
    %c0_167 = arith.constant 0 : index
    %222 = vector.load %arg12[%c0_166, %c0_167] : memref<1x2xf32, #tpu.memory_space<vmem>>, vector<1x2xf32>
    tpu.vector_store %arg12[%c0_166, %c0_167], %221 {strides = array<i32>} : memref<1x2xf32, #tpu.memory_space<vmem>>, vector<1x2xf32>,
    return
  }
  func.func @transform_0(%arg0: i32) -> (i32, i32) {
    %c0_i32 = arith.constant 0 : i32
    %c0_i32_0 = arith.constant 0 : i32
    return %arg0, %c0_i32 : i32, i32
  }
  func.func @transform_1(%arg0: i32) -> (i32, i32) {
    %c0_i32 = arith.constant 0 : i32
    %c0_i32_0 = arith.constant 0 : i32
    %c0_i32_1 = arith.constant 0 : i32
    return %c0_i32, %c0_i32_0 : i32, i32
  }
  func.func @transform_2(%arg0: i32) -> (i32, i32) {
    %c0_i32 = arith.constant 0 : i32
    %c0_i32_0 = arith.constant 0 : i32
    %c0_i32_1 = arith.constant 0 : i32
    return %c0_i32, %c0_i32_0 : i32, i32
  }
  func.func @transform_3(%arg0: i32) -> (i32, i32) {
    %c0_i32 = arith.constant 0 : i32
    %c0_i32_0 = arith.constant 0 : i32
    %c0_i32_1 = arith.constant 0 : i32
    return %c0_i32, %c0_i32_0 : i32, i32
  }
  func.func @transform_4(%arg0: i32) -> (i32, i32) {
    %c0_i32 = arith.constant 0 : i32
    %c0_i32_0 = arith.constant 0 : i32
    %c0_i32_1 = arith.constant 0 : i32
    return %c0_i32, %c0_i32_0 : i32, i32
  }
  func.func @transform_5(%arg0: i32) -> (i32, i32) {
    %c0_i32 = arith.constant 0 : i32
    %c0_i32_0 = arith.constant 0 : i32
    %c0_i32_1 = arith.constant 0 : i32
    return %c0_i32, %c0_i32_0 : i32, i32
  }
  func.func @transform_6(%arg0: i32) -> (i32, i32) {
    %c0_i32 = arith.constant 0 : i32
    %c0_i32_0 = arith.constant 0 : i32
    %c0_i32_1 = arith.constant 0 : i32
    return %c0_i32, %c0_i32_0 : i32, i32
  }
  func.func @transform_7(%arg0: i32) -> (i32, i32) {
    %c0_i32 = arith.constant 0 : i32
    %c0_i32_0 = arith.constant 0 : i32
    %c0_i32_1 = arith.constant 0 : i32
    return %c0_i32, %c0_i32_0 : i32, i32
  }
  func.func @transform_8(%arg0: i32) -> (i32, i32) {
    %c0_i32 = arith.constant 0 : i32
    %c0_i32_0 = arith.constant 0 : i32
    %c0_i32_1 = arith.constant 0 : i32
    return %c0_i32, %c0_i32_0 : i32, i32
  }
  func.func @transform_9(%arg0: i32) -> (i32, i32) {
    %c0_i32 = arith.constant 0 : i32
    %c0_i32_0 = arith.constant 0 : i32
    %c0_i32_1 = arith.constant 0 : i32
    return %c0_i32, %c0_i32_0 : i32, i32
  }
  func.func @transform_10(%arg0: i32) -> (i32, i32) {
    %c0_i32 = arith.constant 0 : i32
    %c0_i32_0 = arith.constant 0 : i32
    %c0_i32_1 = arith.constant 0 : i32
    return %c0_i32, %c0_i32_0 : i32, i32
  }
  func.func @transform_11(%arg0: i32) -> (i32, i32) {
    %c0_i32 = arith.constant 0 : i32
    %c0_i32_0 = arith.constant 0 : i32
    return %arg0, %c0_i32 : i32, i32
  }
}

</mosaic_0001>

<bundles_post_ra>
// kernel: value_network_forward.3
= control target key start
LH: loop header
LB: loop body
LE: loop exit
PB: predicated region body
PF: predicated region fallthrough
CT: control target
= control target key end

     0   :  { %v1332_v0 = vmov 0.0   ;;  %vm1333_vm0 = vmmov 0   ;;  %vm254_vm1 = vcmask 523264   ;;  %vm892_vm2 = vcmask 257024   ;;  %s1837_s1 = inlined_call_operand.vmem [shape: bf16[64,32], index: 1, kind: input, shape index: {}]   ;;  %s1838_s0 = inlined_call_operand.vmem [shape: bf16[450,64], index: 0, kind: input, shape index: {}]   ;;  %s1839_s2 = inlined_call_operand.vmem [shape: f32[1,32], index: 2, kind: input, shape index: {}]   ;;  %s1840_s3 = inlined_call_operand.vmem [shape: bf16[450,32], index: 3, kind: output, shape index: {}]  }
   0x1   :  { %1165 = vmatprep.subr.bf16.mxu0 %v1332_v0  ;;  %v1299_v1 = vld [vmem:[%s1837_s1] sm:$0xff]   ;;  %1289 = vmatprep.subr.bf16.mxu1 %v1332_v0  ;;  %v1300_v2 = vld [vmem:[%s1837_s1 + $0x8] sm:$0xff]   ;;  %v1301_v3 = vld [vmem:[%s1837_s1 + $0x10] sm:$0xff]   ;;  %vm949_vm3 = vcmask 253952  }
   0x2   :  { %1173 = vmatprep.mubr.msk.bf16.mxu0 %vm1333_vm0, %v1332_v0  ;;  %1233 = vmatprep.mubr.msk.bf16.mxu1 %vm1333_vm0, %v1332_v0  ;;  %v1302_v4 = vld [vmem:[%s1837_s1 + $0x18] sm:$0xff]   ;;  %v1303_v5 = vld [vmem:[%s1838_s0] sm:$0xff]   ;;  %v1305_v7 = vld [vmem:[%s1838_s0 + $0x8] sm:$0xff]  }
   0x3   :  { %1166 = vmatpush3.bf16.msra.mxu0 %v1299_v1  ;;  %1293 = vmatpush3.bf16.msra.mxu1 %v1299_v1  ;;  %v1304_v6 = vld [vmem:[%s1838_s0 + $0x78] sm:$0xff]   ;;  %v1306_v8 = vld [vmem:[%s1838_s0 + $0x80] sm:$0xff]   ;;  %v1307_v9 = vld [vmem:[%s1838_s0 + $0x10] sm:$0xff]  }
   0x4   :  { %1167 = vmatprep.subr.bf16.mxu0 %v1332_v0  ;;  %1290 = vmatprep.subr.bf16.mxu1 %v1332_v0  ;;  %v1308_v10 = vld [vmem:[%s1838_s0 + $0x88] sm:$0xff]   ;;  %v1309_v11 = vld [vmem:[%s1838_s0 + $0x18] sm:$0xff]   ;;  %v1310_v12 = vld [vmem:[%s1838_s0 + $0x90] sm:$0xff]  }
   0x5   :  { %v1311_v13 = vld [vmem:[%s1838_s0 + $0x20] sm:$0xff]   ;;  %v1312_v14 = vld [vmem:[%s1838_s0 + $0x98] sm:$0xff]   ;;  %v1313_v15 = vld [vmem:[%s1838_s0 + $0x28] sm:$0xff]  }
   0x6   :  { %v1314_v16 = vld [vmem:[%s1838_s0 + $0xa0] sm:$0xff]   ;;  %v1315_v17 = vld [vmem:[%s1838_s0 + $0x30] sm:$0xff]   ;;  %v1316_v18 = vld [vmem:[%s1838_s0 + $0xa8] sm:$0xff]  }
   0x7   :  { %1168 = vmatpush3.bf16.msra.mxu0 %v1300_v2  ;;  %1294 = vmatpush3.bf16.msra.mxu1 %v1300_v2  ;;  %v1317_v19 = vld [vmem:[%s1838_s0 + $0x38] sm:$0xff]   ;;  %v1318_v20 = vld [vmem:[%s1838_s0 + $0xb0] sm:$0xff]   ;;  %v1319_v21 = vld [vmem:[%s1838_s0 + $0x40] sm:$0xff]  }
   0x8   :  { %1169 = vmatprep.subr.bf16.mxu0 %v1332_v0  ;;  %1291 = vmatprep.subr.bf16.mxu1 %v1332_v0  ;;  %v1320_v22 = vld [vmem:[%s1838_s0 + $0xb8] sm:$0xff]   ;;  %v1321_v23 = vld [vmem:[%s1838_s0 + $0x48] sm:$0xff]   ;;  %v1322_v24 = vld [vmem:[%s1838_s0 + $0xc0] sm:$0xff]  }
   0x9   :  { %v1323_v25 = vld [vmem:[%s1838_s0 + $0x50] sm:$0xff]   ;;  %v1324_v26 = vld [vmem:[%s1838_s0 + $0xc8] sm:$0xff]   ;;  %v1325_v27 = vld [vmem:[%s1838_s0 + $0x58] sm:$0xff]  }
   0xa   :  { %v1326_v28 = vld [vmem:[%s1838_s0 + $0xd0] sm:$0xff]   ;;  %v1327_v29 = vld [vmem:[%s1838_s0 + $0x60] sm:$0xff]   ;;  %v1328_v30 = vld [vmem:[%s1838_s0 + $0xd8] sm:$0xff]  }
   0xb   :  { %1170 = vmatpush3.bf16.msra.mxu0 %v1301_v3  ;;  %1295 = vmatpush3.bf16.msra.mxu1 %v1301_v3  ;;  %v1329_v31 = vld [vmem:[%s1838_s0 + $0x68] sm:$0xff]   ;;  %v1330_v32 = vld [vmem:[%s1838_s0 + $0xe0] ss:$0 sps:$4 sm:$0x11]   ;;  %v1331_v33 = vld [vmem:[%s1838_s0 + $0x70] sm:$0xff]  }
   0xc   :  { %1171 = vmatprep.subr.bf16.mxu0 %v1332_v0  ;;  %1292 = vmatprep.subr.bf16.mxu1 %v1332_v0  ;;  %v1551_v34 = vld [vmem:[%s1839_s2] ss:$0 sm:$0xff] }
   0xf   :  { %1172 = vmatpush3.bf16.msra.mxu0 %v1302_v4  ;;  %1296 = vmatpush3.bf16.msra.mxu1 %v1302_v4 }
  0x12   :  { %1174 = vmatmul.mubr.msk.bf16.vlgmr.msra.gmra.mrb[0].mxu0 %vm254_vm1, %v1303_v5  ;;  %1234 = vmatmul.mubr.msk.bf16.vlgmr.msra.gmra.mrb[0].mxu1 %vm254_vm1, %v1304_v6 }
  0x13   :  { %1177 = vmatprep.mubr.msk.bf16.mxu0 %vm1333_vm0, %v1332_v0  ;;  %1237 = vmatprep.mubr.msk.bf16.mxu1 %vm1333_vm0, %v1332_v0 }
  0x1a   :  { %1178 = vmatmul.mubr.msk.bf16.gmra.mrb[4].mxu0 %vm254_vm1, %v1305_v7  ;;  %1238 = vmatmul.mubr.msk.bf16.gmra.mrb[4].mxu1 %vm254_vm1, %v1306_v8 }
  0x1b   :  { %1181 = vmatprep.mubr.msk.bf16.mxu0 %vm1333_vm0, %v1332_v0  ;;  %1241 = vmatprep.mubr.msk.bf16.mxu1 %vm1333_vm0, %v1332_v0 }
  0x22   :  { %1182 = vmatmul.mubr.msk.bf16.gmra.mrb[8].mxu0 %vm254_vm1, %v1307_v9  ;;  %1242 = vmatmul.mubr.msk.bf16.gmra.mrb[8].mxu1 %vm254_vm1, %v1308_v10 }
  0x23   :  { %1185 = vmatprep.mubr.msk.bf16.mxu0 %vm1333_vm0, %v1332_v0  ;;  %1245 = vmatprep.mubr.msk.bf16.mxu1 %vm1333_vm0, %v1332_v0 }
  0x2a   :  { %1186 = vmatmul.mubr.msk.bf16.gmra.mrb[12].mxu0 %vm254_vm1, %v1309_v11  ;;  %1246 = vmatmul.mubr.msk.bf16.gmra.mrb[12].mxu1 %vm254_vm1, %v1310_v12 }
  0x2b   :  { %1189 = vmatprep.mubr.msk.bf16.mxu0 %vm1333_vm0, %v1332_v0  ;;  %1249 = vmatprep.mubr.msk.bf16.mxu1 %vm1333_vm0, %v1332_v0 }
  0x32   :  { %1190 = vmatmul.mubr.msk.bf16.gmra.mrb[16].mxu0 %vm254_vm1, %v1311_v13  ;;  %1250 = vmatmul.mubr.msk.bf16.gmra.mrb[16].mxu1 %vm254_vm1, %v1312_v14 }
  0x33   :  { %1193 = vmatprep.mubr.msk.bf16.mxu0 %vm1333_vm0, %v1332_v0  ;;  %1253 = vmatprep.mubr.msk.bf16.mxu1 %vm1333_vm0, %v1332_v0 }
  0x3a   :  { %1194 = vmatmul.mubr.msk.bf16.gmra.mrb[20].mxu0 %vm254_vm1, %v1313_v15  ;;  %1254 = vmatmul.mubr.msk.bf16.gmra.mrb[20].mxu1 %vm254_vm1, %v1314_v16 }
  0x3b   :  { %1197 = vmatprep.mubr.msk.bf16.mxu0 %vm1333_vm0, %v1332_v0  ;;  %1257 = vmatprep.mubr.msk.bf16.mxu1 %vm1333_vm0, %v1332_v0 }
  0x42   :  { %1198 = vmatmul.mubr.msk.bf16.gmra.mrb[24].mxu0 %vm254_vm1, %v1315_v17  ;;  %1258 = vmatmul.mubr.msk.bf16.gmra.mrb[24].mxu1 %vm254_vm1, %v1316_v18 }
  0x43   :  { %1201 = vmatprep.mubr.msk.bf16.mxu0 %vm1333_vm0, %v1332_v0  ;;  %1261 = vmatprep.mubr.msk.bf16.mxu1 %vm1333_vm0, %v1332_v0 }
  0x4a   :  { %1202 = vmatmul.mubr.msk.bf16.gmra.mrb[28].mxu0 %vm254_vm1, %v1317_v19  ;;  %1262 = vmatmul.mubr.msk.bf16.gmra.mrb[28].mxu1 %vm254_vm1, %v1318_v20 }
  0x4b   :  { %1205 = vmatprep.mubr.msk.bf16.mxu0 %vm1333_vm0, %v1332_v0  ;;  %1265 = vmatprep.mubr.msk.bf16.mxu1 %vm1333_vm0, %v1332_v0 }
  0x52   :  { %1206 = vmatmul.mubr.msk.bf16.gmra.mrb[32].mxu0 %vm254_vm1, %v1319_v21  ;;  %1266 = vmatmul.mubr.msk.bf16.gmra.mrb[32].mxu1 %vm254_vm1, %v1320_v22 }
  0x53   :  { %1209 = vmatprep.mubr.msk.bf16.mxu0 %vm1333_vm0, %v1332_v0  ;;  %1269 = vmatprep.mubr.msk.bf16.mxu1 %vm1333_vm0, %v1332_v0 }
  0x5a   :  { %1210 = vmatmul.mubr.msk.bf16.gmra.mrb[36].mxu0 %vm254_vm1, %v1321_v23  ;;  %1270 = vmatmul.mubr.msk.bf16.gmra.mrb[36].mxu1 %vm254_vm1, %v1322_v24 }
  0x5b   :  { %1213 = vmatprep.mubr.msk.bf16.mxu0 %vm1333_vm0, %v1332_v0  ;;  %1273 = vmatprep.mubr.msk.bf16.mxu1 %vm1333_vm0, %v1332_v0 }
  0x62   :  { %1214 = vmatmul.mubr.msk.bf16.gmra.mrb[40].mxu0 %vm254_vm1, %v1323_v25  ;;  %1274 = vmatmul.mubr.msk.bf16.gmra.mrb[40].mxu1 %vm254_vm1, %v1324_v26 }
  0x63   :  { %1217 = vmatprep.mubr.msk.bf16.mxu0 %vm1333_vm0, %v1332_v0  ;;  %1277 = vmatprep.mubr.msk.bf16.mxu1 %vm1333_vm0, %v1332_v0 }
  0x6a   :  { %1218 = vmatmul.mubr.msk.bf16.gmra.mrb[44].mxu0 %vm254_vm1, %v1325_v27  ;;  %1278 = vmatmul.mubr.msk.bf16.gmra.mrb[44].mxu1 %vm254_vm1, %v1326_v28 }
  0x6b   :  { %1221 = vmatprep.mubr.msk.bf16.mxu0 %vm1333_vm0, %v1332_v0  ;;  %1281 = vmatprep.mubr.msk.bf16.mxu1 %vm1333_vm0, %v1332_v0 }
  0x72   :  { %1222 = vmatmul.mubr.msk.bf16.gmra.mrb[48].mxu0 %vm254_vm1, %v1327_v29  ;;  %1282 = vmatmul.mubr.msk.bf16.gmra.mrb[48].mxu1 %vm254_vm1, %v1328_v30 }
  0x73   :  { %1225 = vmatprep.mubr.msk.bf16.mxu0 %vm1333_vm0, %v1332_v0  ;;  %1285 = vmatprep.mubr.msk.bf16.mxu1 %vm1333_vm0, %v1332_v0 }
  0x7a   :  { %1226 = vmatmul.mubr.msk.bf16.gmra.mrb[52].mxu0 %vm254_vm1, %v1329_v31  ;;  %1286 = vmatmul.mubr.msk.bf16.gmra.mrb[52].mxu1 %vm254_vm1, %v1330_v32 }
  0x7b   :  { %1229 = vmatprep.mubr.msk.bf16.mxu0 %vm1333_vm0, %v1332_v0 }
  0x82   :  { %1230 = vmatmul.mubr.msk.bf16.gmra.mrb[56].mxu0 %vm254_vm1, %v1331_v33 }
  0xe5   :  { %v376_v35 = vpop.f32.mrb[0].mxu0  ;;  %v496_v36 = vpop.f32.mrb[0].mxu1 }
  0xe6   :  { %v377_v37 = vadd.f32 %v1551_v34, %v376_v35  ;;  %v1175_v38 = vpop.f32.mrb[1].mxu0  ;;  %v497_v39 = vadd.f32 %v1551_v34, %v496_v36  ;;  %v1235_v40 = vpop.f32.mrb[1].mxu1 }
  0xe7   :  { %v379_v41 = vpop.f32.mrb[2].mxu0  ;;  %v499_v42 = vpop.f32.mrb[2].mxu1 }
  0xe8   :  { %v606_v43 = vmax.f32 %v377_v37, 0.0  ;;  %v380_v44 = vadd.f32 %v1551_v34, %v379_v41  ;;  %v1176_v45 = vpop.f32.mrb[3].mxu0  ;;  %v636_v46 = vmax.f32 %v497_v39, 0.0  ;;  %v500_v47 = vadd.f32 %v1551_v34, %v499_v42  ;;  %v1236_v48 = vpop.f32.mrb[3].mxu1 }
  0xea   :  { %v1075_v49 = vpack.c.bf16 %v606_v43, %v606_v43  ;;  %v607_v50 = vmax.f32 %v380_v44, 0.0  ;;  %v1105_v51 = vpack.c.bf16 %v636_v46, %v636_v46  ;;  %v637_v52 = vmax.f32 %v500_v47, 0.0 }
  0xec   :  { %893 = vst.msk [vmem:[%s1840_s3] sm:$0xf] %vm892_vm2, %v1075_v49  ;;  %v1076_v53 = vpack.c.bf16 %v607_v50, %v607_v50  ;;  %923 = vst.msk [vmem:[%s1840_s3 + $0x78] sm:$0xf] %vm892_vm2, %v1105_v51  ;;  %v1106_v54 = vpack.c.bf16 %v637_v52, %v637_v52 }
  0xed   :  { %v384_v55 = vpop.f32.mrb[4].mxu0  ;;  %v504_v56 = vpop.f32.mrb[4].mxu1 }
  0xee   :  { %894 = vst.msk [vmem:[%s1840_s3 + $0x4] sm:$0xf] %vm892_vm2, %v1076_v53  ;;  %v385_v57 = vadd.f32 %v1551_v34, %v384_v55  ;;  %v1179_v58 = vpop.f32.mrb[5].mxu0  ;;  %924 = vst.msk [vmem:[%s1840_s3 + $0x7c] sm:$0xf] %vm892_vm2, %v1106_v54  ;;  %v505_v59 = vadd.f32 %v1551_v34, %v504_v56  ;;  %v1239_v60 = vpop.f32.mrb[5].mxu1 }
  0xef   :  { %v387_v61 = vpop.f32.mrb[6].mxu0  ;;  %v507_v62 = vpop.f32.mrb[6].mxu1 }
  0xf0   :  { %v608_v63 = vmax.f32 %v385_v57, 0.0  ;;  %v388_v0 = vadd.f32 %v1551_v34, %v387_v61  ;;  %v1180_v1 = vpop.f32.mrb[7].mxu0  ;;  %v638_v2 = vmax.f32 %v505_v59, 0.0  ;;  %v508_v3 = vadd.f32 %v1551_v34, %v507_v62  ;;  %v1240_v4 = vpop.f32.mrb[7].mxu1 }
  0xf2   :  { %v1077_v5 = vpack.c.bf16 %v608_v63, %v608_v63  ;;  %v609_v6 = vmax.f32 %v388_v0, 0.0  ;;  %v1107_v7 = vpack.c.bf16 %v638_v2, %v638_v2  ;;  %v639_v8 = vmax.f32 %v508_v3, 0.0 }
  0xf4   :  { %895 = vst.msk [vmem:[%s1840_s3 + $0x8] sm:$0xf] %vm892_vm2, %v1077_v5  ;;  %v1078_v9 = vpack.c.bf16 %v609_v6, %v609_v6  ;;  %925 = vst.msk [vmem:[%s1840_s3 + $0x80] sm:$0xf] %vm892_vm2, %v1107_v7  ;;  %v1108_v10 = vpack.c.bf16 %v639_v8, %v639_v8 }
  0xf5   :  { %v392_v11 = vpop.f32.mrb[8].mxu0  ;;  %v512_v12 = vpop.f32.mrb[8].mxu1 }
  0xf6   :  { %896 = vst.msk [vmem:[%s1840_s3 + $0xc] sm:$0xf] %vm892_vm2, %v1078_v9  ;;  %v393_v13 = vadd.f32 %v1551_v34, %v392_v11  ;;  %v1183_v14 = vpop.f32.mrb[9].mxu0  ;;  %926 = vst.msk [vmem:[%s1840_s3 + $0x84] sm:$0xf] %vm892_vm2, %v1108_v10  ;;  %v513_v15 = vadd.f32 %v1551_v34, %v512_v12  ;;  %v1243_v16 = vpop.f32.mrb[9].mxu1 }
  0xf7   :  { %v395_v17 = vpop.f32.mrb[10].mxu0  ;;  %v515_v18 = vpop.f32.mrb[10].mxu1 }
  0xf8   :  { %v610_v19 = vmax.f32 %v393_v13, 0.0  ;;  %v396_v20 = vadd.f32 %v1551_v34, %v395_v17  ;;  %v1184_v21 = vpop.f32.mrb[11].mxu0  ;;  %v640_v22 = vmax.f32 %v513_v15, 0.0  ;;  %v516_v23 = vadd.f32 %v1551_v34, %v515_v18  ;;  %v1244_v24 = vpop.f32.mrb[11].mxu1 }
  0xfa   :  { %v1079_v25 = vpack.c.bf16 %v610_v19, %v610_v19  ;;  %v611_v26 = vmax.f32 %v396_v20, 0.0  ;;  %v1109_v27 = vpack.c.bf16 %v640_v22, %v640_v22  ;;  %v641_v28 = vmax.f32 %v516_v23, 0.0 }
  0xfc   :  { %897 = vst.msk [vmem:[%s1840_s3 + $0x10] sm:$0xf] %vm892_vm2, %v1079_v25  ;;  %v1080_v29 = vpack.c.bf16 %v611_v26, %v611_v26  ;;  %927 = vst.msk [vmem:[%s1840_s3 + $0x88] sm:$0xf] %vm892_vm2, %v1109_v27  ;;  %v1110_v30 = vpack.c.bf16 %v641_v28, %v641_v28 }
  0xfd   :  { %v400_v31 = vpop.f32.mrb[12].mxu0  ;;  %v520_v32 = vpop.f32.mrb[12].mxu1 }
  0xfe   :  { %898 = vst.msk [vmem:[%s1840_s3 + $0x14] sm:$0xf] %vm892_vm2, %v1080_v29  ;;  %v401_v33 = vadd.f32 %v1551_v34, %v400_v31  ;;  %v1187_v35 = vpop.f32.mrb[13].mxu0  ;;  %928 = vst.msk [vmem:[%s1840_s3 + $0x8c] sm:$0xf] %vm892_vm2, %v1110_v30  ;;  %v521_v36 = vadd.f32 %v1551_v34, %v520_v32  ;;  %v1247_v37 = vpop.f32.mrb[13].mxu1 }
  0xff   :  { %v403_v38 = vpop.f32.mrb[14].mxu0  ;;  %v523_v39 = vpop.f32.mrb[14].mxu1 }
 0x100   :  { %v612_v40 = vmax.f32 %v401_v33, 0.0  ;;  %v404_v41 = vadd.f32 %v1551_v34, %v403_v38  ;;  %v1188_v42 = vpop.f32.mrb[15].mxu0  ;;  %v642_v43 = vmax.f32 %v521_v36, 0.0  ;;  %v524_v44 = vadd.f32 %v1551_v34, %v523_v39  ;;  %v1248_v45 = vpop.f32.mrb[15].mxu1 }
 0x102   :  { %v1081_v46 = vpack.c.bf16 %v612_v40, %v612_v40  ;;  %v613_v47 = vmax.f32 %v404_v41, 0.0  ;;  %v1111_v48 = vpack.c.bf16 %v642_v43, %v642_v43  ;;  %v643_v49 = vmax.f32 %v524_v44, 0.0 }
 0x104   :  { %899 = vst.msk [vmem:[%s1840_s3 + $0x18] sm:$0xf] %vm892_vm2, %v1081_v46  ;;  %v1082_v50 = vpack.c.bf16 %v613_v47, %v613_v47  ;;  %929 = vst.msk [vmem:[%s1840_s3 + $0x90] sm:$0xf] %vm892_vm2, %v1111_v48  ;;  %v1112_v51 = vpack.c.bf16 %v643_v49, %v643_v49 }
 0x105   :  { %v408_v52 = vpop.f32.mrb[16].mxu0  ;;  %v528_v53 = vpop.f32.mrb[16].mxu1 }
 0x106   :  { %900 = vst.msk [vmem:[%s1840_s3 + $0x1c] sm:$0xf] %vm892_vm2, %v1082_v50  ;;  %v409_v54 = vadd.f32 %v1551_v34, %v408_v52  ;;  %v1191_v55 = vpop.f32.mrb[17].mxu0  ;;  %930 = vst.msk [vmem:[%s1840_s3 + $0x94] sm:$0xf] %vm892_vm2, %v1112_v51  ;;  %v529_v56 = vadd.f32 %v1551_v34, %v528_v53  ;;  %v1251_v57 = vpop.f32.mrb[17].mxu1 }
 0x107   :  { %v411_v58 = vpop.f32.mrb[18].mxu0  ;;  %v531_v59 = vpop.f32.mrb[18].mxu1 }
 0x108   :  { %v614_v60 = vmax.f32 %v409_v54, 0.0  ;;  %v412_v61 = vadd.f32 %v1551_v34, %v411_v58  ;;  %v1192_v62 = vpop.f32.mrb[19].mxu0  ;;  %v644_v63 = vmax.f32 %v529_v56, 0.0  ;;  %v532_v0 = vadd.f32 %v1551_v34, %v531_v59  ;;  %v1252_v1 = vpop.f32.mrb[19].mxu1 }
 0x10a   :  { %v1083_v2 = vpack.c.bf16 %v614_v60, %v614_v60  ;;  %v615_v3 = vmax.f32 %v412_v61, 0.0  ;;  %v1113_v4 = vpack.c.bf16 %v644_v63, %v644_v63  ;;  %v645_v5 = vmax.f32 %v532_v0, 0.0 }
 0x10c   :  { %901 = vst.msk [vmem:[%s1840_s3 + $0x20] sm:$0xf] %vm892_vm2, %v1083_v2  ;;  %v1084_v6 = vpack.c.bf16 %v615_v3, %v615_v3  ;;  %931 = vst.msk [vmem:[%s1840_s3 + $0x98] sm:$0xf] %vm892_vm2, %v1113_v4  ;;  %v1114_v7 = vpack.c.bf16 %v645_v5, %v645_v5 }
 0x10d   :  { %v416_v8 = vpop.f32.mrb[20].mxu0  ;;  %v536_v9 = vpop.f32.mrb[20].mxu1 }
 0x10e   :  { %902 = vst.msk [vmem:[%s1840_s3 + $0x24] sm:$0xf] %vm892_vm2, %v1084_v6  ;;  %v417_v10 = vadd.f32 %v1551_v34, %v416_v8  ;;  %v1195_v11 = vpop.f32.mrb[21].mxu0  ;;  %932 = vst.msk [vmem:[%s1840_s3 + $0x9c] sm:$0xf] %vm892_vm2, %v1114_v7  ;;  %v537_v12 = vadd.f32 %v1551_v34, %v536_v9  ;;  %v1255_v13 = vpop.f32.mrb[21].mxu1 }
 0x10f   :  { %v419_v14 = vpop.f32.mrb[22].mxu0  ;;  %v539_v15 = vpop.f32.mrb[22].mxu1 }
 0x110   :  { %v616_v16 = vmax.f32 %v417_v10, 0.0  ;;  %v420_v17 = vadd.f32 %v1551_v34, %v419_v14  ;;  %v1196_v18 = vpop.f32.mrb[23].mxu0  ;;  %v646_v19 = vmax.f32 %v537_v12, 0.0  ;;  %v540_v20 = vadd.f32 %v1551_v34, %v539_v15  ;;  %v1256_v21 = vpop.f32.mrb[23].mxu1 }
 0x112   :  { %v1085_v22 = vpack.c.bf16 %v616_v16, %v616_v16  ;;  %v617_v23 = vmax.f32 %v420_v17, 0.0  ;;  %v1115_v24 = vpack.c.bf16 %v646_v19, %v646_v19  ;;  %v647_v25 = vmax.f32 %v540_v20, 0.0 }
 0x114   :  { %903 = vst.msk [vmem:[%s1840_s3 + $0x28] sm:$0xf] %vm892_vm2, %v1085_v22  ;;  %v1086_v26 = vpack.c.bf16 %v617_v23, %v617_v23  ;;  %933 = vst.msk [vmem:[%s1840_s3 + $0xa0] sm:$0xf] %vm892_vm2, %v1115_v24  ;;  %v1116_v27 = vpack.c.bf16 %v647_v25, %v647_v25 }
 0x115   :  { %v424_v28 = vpop.f32.mrb[24].mxu0  ;;  %v544_v29 = vpop.f32.mrb[24].mxu1 }
 0x116   :  { %904 = vst.msk [vmem:[%s1840_s3 + $0x2c] sm:$0xf] %vm892_vm2, %v1086_v26  ;;  %v425_v30 = vadd.f32 %v1551_v34, %v424_v28  ;;  %v1199_v31 = vpop.f32.mrb[25].mxu0  ;;  %934 = vst.msk [vmem:[%s1840_s3 + $0xa4] sm:$0xf] %vm892_vm2, %v1116_v27  ;;  %v545_v32 = vadd.f32 %v1551_v34, %v544_v29  ;;  %v1259_v33 = vpop.f32.mrb[25].mxu1 }
 0x117   :  { %v427_v35 = vpop.f32.mrb[26].mxu0  ;;  %v547_v36 = vpop.f32.mrb[26].mxu1 }
 0x118   :  { %v618_v37 = vmax.f32 %v425_v30, 0.0  ;;  %v428_v38 = vadd.f32 %v1551_v34, %v427_v35  ;;  %v1200_v39 = vpop.f32.mrb[27].mxu0  ;;  %v648_v40 = vmax.f32 %v545_v32, 0.0  ;;  %v548_v41 = vadd.f32 %v1551_v34, %v547_v36  ;;  %v1260_v42 = vpop.f32.mrb[27].mxu1 }
 0x11a   :  { %v1087_v43 = vpack.c.bf16 %v618_v37, %v618_v37  ;;  %v619_v44 = vmax.f32 %v428_v38, 0.0  ;;  %v1117_v45 = vpack.c.bf16 %v648_v40, %v648_v40  ;;  %v649_v46 = vmax.f32 %v548_v41, 0.0 }
 0x11c   :  { %905 = vst.msk [vmem:[%s1840_s3 + $0x30] sm:$0xf] %vm892_vm2, %v1087_v43  ;;  %v1088_v47 = vpack.c.bf16 %v619_v44, %v619_v44  ;;  %935 = vst.msk [vmem:[%s1840_s3 + $0xa8] sm:$0xf] %vm892_vm2, %v1117_v45  ;;  %v1118_v48 = vpack.c.bf16 %v649_v46, %v649_v46 }
 0x11d   :  { %v432_v49 = vpop.f32.mrb[28].mxu0  ;;  %v552_v50 = vpop.f32.mrb[28].mxu1 }
 0x11e   :  { %906 = vst.msk [vmem:[%s1840_s3 + $0x34] sm:$0xf] %vm892_vm2, %v1088_v47  ;;  %v433_v51 = vadd.f32 %v1551_v34, %v432_v49  ;;  %v1203_v52 = vpop.f32.mrb[29].mxu0  ;;  %936 = vst.msk [vmem:[%s1840_s3 + $0xac] sm:$0xf] %vm892_vm2, %v1118_v48  ;;  %v553_v53 = vadd.f32 %v1551_v34, %v552_v50  ;;  %v1263_v54 = vpop.f32.mrb[29].mxu1 }
 0x11f   :  { %v435_v55 = vpop.f32.mrb[30].mxu0  ;;  %v555_v56 = vpop.f32.mrb[30].mxu1 }
 0x120   :  { %v620_v57 = vmax.f32 %v433_v51, 0.0  ;;  %v436_v58 = vadd.f32 %v1551_v34, %v435_v55  ;;  %v1204_v59 = vpop.f32.mrb[31].mxu0  ;;  %v650_v60 = vmax.f32 %v553_v53, 0.0  ;;  %v556_v61 = vadd.f32 %v1551_v34, %v555_v56  ;;  %v1264_v62 = vpop.f32.mrb[31].mxu1 }
 0x122   :  { %v1089_v63 = vpack.c.bf16 %v620_v57, %v620_v57  ;;  %v621_v0 = vmax.f32 %v436_v58, 0.0  ;;  %v1119_v1 = vpack.c.bf16 %v650_v60, %v650_v60  ;;  %v651_v2 = vmax.f32 %v556_v61, 0.0 }
 0x124   :  { %907 = vst.msk [vmem:[%s1840_s3 + $0x38] sm:$0xf] %vm892_vm2, %v1089_v63  ;;  %v1090_v3 = vpack.c.bf16 %v621_v0, %v621_v0  ;;  %937 = vst.msk [vmem:[%s1840_s3 + $0xb0] sm:$0xf] %vm892_vm2, %v1119_v1  ;;  %v1120_v4 = vpack.c.bf16 %v651_v2, %v651_v2 }
 0x125   :  { %v440_v5 = vpop.f32.mrb[32].mxu0  ;;  %v560_v6 = vpop.f32.mrb[32].mxu1 }
 0x126   :  { %908 = vst.msk [vmem:[%s1840_s3 + $0x3c] sm:$0xf] %vm892_vm2, %v1090_v3  ;;  %v441_v7 = vadd.f32 %v1551_v34, %v440_v5  ;;  %v1207_v8 = vpop.f32.mrb[33].mxu0  ;;  %938 = vst.msk [vmem:[%s1840_s3 + $0xb4] sm:$0xf] %vm892_vm2, %v1120_v4  ;;  %v561_v9 = vadd.f32 %v1551_v34, %v560_v6  ;;  %v1267_v10 = vpop.f32.mrb[33].mxu1 }
 0x127   :  { %v443_v11 = vpop.f32.mrb[34].mxu0  ;;  %v563_v12 = vpop.f32.mrb[34].mxu1 }
 0x128   :  { %v622_v13 = vmax.f32 %v441_v7, 0.0  ;;  %v444_v14 = vadd.f32 %v1551_v34, %v443_v11  ;;  %v1208_v15 = vpop.f32.mrb[35].mxu0  ;;  %v652_v16 = vmax.f32 %v561_v9, 0.0  ;;  %v564_v17 = vadd.f32 %v1551_v34, %v563_v12  ;;  %v1268_v18 = vpop.f32.mrb[35].mxu1 }
 0x12a   :  { %v1091_v19 = vpack.c.bf16 %v622_v13, %v622_v13  ;;  %v623_v20 = vmax.f32 %v444_v14, 0.0  ;;  %v1121_v21 = vpack.c.bf16 %v652_v16, %v652_v16  ;;  %v653_v22 = vmax.f32 %v564_v17, 0.0 }
 0x12c   :  { %909 = vst.msk [vmem:[%s1840_s3 + $0x40] sm:$0xf] %vm892_vm2, %v1091_v19  ;;  %v1092_v23 = vpack.c.bf16 %v623_v20, %v623_v20  ;;  %939 = vst.msk [vmem:[%s1840_s3 + $0xb8] sm:$0xf] %vm892_vm2, %v1121_v21  ;;  %v1122_v24 = vpack.c.bf16 %v653_v22, %v653_v22 }
 0x12d   :  { %v448_v25 = vpop.f32.mrb[36].mxu0  ;;  %v568_v26 = vpop.f32.mrb[36].mxu1 }
 0x12e   :  { %910 = vst.msk [vmem:[%s1840_s3 + $0x44] sm:$0xf] %vm892_vm2, %v1092_v23  ;;  %v449_v27 = vadd.f32 %v1551_v34, %v448_v25  ;;  %v1211_v28 = vpop.f32.mrb[37].mxu0  ;;  %940 = vst.msk [vmem:[%s1840_s3 + $0xbc] sm:$0xf] %vm892_vm2, %v1122_v24  ;;  %v569_v29 = vadd.f32 %v1551_v34, %v568_v26  ;;  %v1271_v30 = vpop.f32.mrb[37].mxu1 }
 0x12f   :  { %v451_v31 = vpop.f32.mrb[38].mxu0  ;;  %v571_v32 = vpop.f32.mrb[38].mxu1 }
 0x130   :  { %v624_v33 = vmax.f32 %v449_v27, 0.0  ;;  %v452_v35 = vadd.f32 %v1551_v34, %v451_v31  ;;  %v1212_v36 = vpop.f32.mrb[39].mxu0  ;;  %v654_v37 = vmax.f32 %v569_v29, 0.0  ;;  %v572_v38 = vadd.f32 %v1551_v34, %v571_v32  ;;  %v1272_v39 = vpop.f32.mrb[39].mxu1 }
 0x132   :  { %v1093_v40 = vpack.c.bf16 %v624_v33, %v624_v33  ;;  %v625_v41 = vmax.f32 %v452_v35, 0.0  ;;  %v1123_v42 = vpack.c.bf16 %v654_v37, %v654_v37  ;;  %v655_v43 = vmax.f32 %v572_v38, 0.0 }
 0x134   :  { %911 = vst.msk [vmem:[%s1840_s3 + $0x48] sm:$0xf] %vm892_vm2, %v1093_v40  ;;  %v1094_v44 = vpack.c.bf16 %v625_v41, %v625_v41  ;;  %941 = vst.msk [vmem:[%s1840_s3 + $0xc0] sm:$0xf] %vm892_vm2, %v1123_v42  ;;  %v1124_v45 = vpack.c.bf16 %v655_v43, %v655_v43 }
 0x135   :  { %v456_v46 = vpop.f32.mrb[40].mxu0  ;;  %v576_v47 = vpop.f32.mrb[40].mxu1 }
 0x136   :  { %912 = vst.msk [vmem:[%s1840_s3 + $0x4c] sm:$0xf] %vm892_vm2, %v1094_v44  ;;  %v457_v48 = vadd.f32 %v1551_v34, %v456_v46  ;;  %v1215_v49 = vpop.f32.mrb[41].mxu0  ;;  %942 = vst.msk [vmem:[%s1840_s3 + $0xc4] sm:$0xf] %vm892_vm2, %v1124_v45  ;;  %v577_v50 = vadd.f32 %v1551_v34, %v576_v47  ;;  %v1275_v51 = vpop.f32.mrb[41].mxu1 }
 0x137   :  { %v459_v52 = vpop.f32.mrb[42].mxu0  ;;  %v579_v53 = vpop.f32.mrb[42].mxu1 }
 0x138   :  { %v626_v54 = vmax.f32 %v457_v48, 0.0  ;;  %v460_v55 = vadd.f32 %v1551_v34, %v459_v52  ;;  %v1216_v56 = vpop.f32.mrb[43].mxu0  ;;  %v656_v57 = vmax.f32 %v577_v50, 0.0  ;;  %v580_v58 = vadd.f32 %v1551_v34, %v579_v53  ;;  %v1276_v59 = vpop.f32.mrb[43].mxu1 }
 0x13a   :  { %v1095_v60 = vpack.c.bf16 %v626_v54, %v626_v54  ;;  %v627_v61 = vmax.f32 %v460_v55, 0.0  ;;  %v1125_v62 = vpack.c.bf16 %v656_v57, %v656_v57  ;;  %v657_v63 = vmax.f32 %v580_v58, 0.0 }
 0x13c   :  { %913 = vst.msk [vmem:[%s1840_s3 + $0x50] sm:$0xf] %vm892_vm2, %v1095_v60  ;;  %v1096_v0 = vpack.c.bf16 %v627_v61, %v627_v61  ;;  %943 = vst.msk [vmem:[%s1840_s3 + $0xc8] sm:$0xf] %vm892_vm2, %v1125_v62  ;;  %v1126_v1 = vpack.c.bf16 %v657_v63, %v657_v63 }
 0x13d   :  { %v464_v2 = vpop.f32.mrb[44].mxu0  ;;  %v584_v3 = vpop.f32.mrb[44].mxu1 }
 0x13e   :  { %914 = vst.msk [vmem:[%s1840_s3 + $0x54] sm:$0xf] %vm892_vm2, %v1096_v0  ;;  %v465_v4 = vadd.f32 %v1551_v34, %v464_v2  ;;  %v1219_v5 = vpop.f32.mrb[45].mxu0  ;;  %944 = vst.msk [vmem:[%s1840_s3 + $0xcc] sm:$0xf] %vm892_vm2, %v1126_v1  ;;  %v585_v6 = vadd.f32 %v1551_v34, %v584_v3  ;;  %v1279_v7 = vpop.f32.mrb[45].mxu1 }
 0x13f   :  { %v467_v8 = vpop.f32.mrb[46].mxu0  ;;  %v587_v9 = vpop.f32.mrb[46].mxu1 }
 0x140   :  { %v628_v10 = vmax.f32 %v465_v4, 0.0  ;;  %v468_v11 = vadd.f32 %v1551_v34, %v467_v8  ;;  %v1220_v12 = vpop.f32.mrb[47].mxu0  ;;  %v658_v13 = vmax.f32 %v585_v6, 0.0  ;;  %v588_v14 = vadd.f32 %v1551_v34, %v587_v9  ;;  %v1280_v15 = vpop.f32.mrb[47].mxu1 }
 0x142   :  { %v1097_v16 = vpack.c.bf16 %v628_v10, %v628_v10  ;;  %v629_v17 = vmax.f32 %v468_v11, 0.0  ;;  %v1127_v18 = vpack.c.bf16 %v658_v13, %v658_v13  ;;  %v659_v19 = vmax.f32 %v588_v14, 0.0 }
 0x144   :  { %915 = vst.msk [vmem:[%s1840_s3 + $0x58] sm:$0xf] %vm892_vm2, %v1097_v16  ;;  %v1098_v20 = vpack.c.bf16 %v629_v17, %v629_v17  ;;  %945 = vst.msk [vmem:[%s1840_s3 + $0xd0] sm:$0xf] %vm892_vm2, %v1127_v18  ;;  %v1128_v21 = vpack.c.bf16 %v659_v19, %v659_v19 }
 0x145   :  { %v472_v22 = vpop.f32.mrb[48].mxu0  ;;  %v592_v23 = vpop.f32.mrb[48].mxu1 }
 0x146   :  { %916 = vst.msk [vmem:[%s1840_s3 + $0x5c] sm:$0xf] %vm892_vm2, %v1098_v20  ;;  %v473_v24 = vadd.f32 %v1551_v34, %v472_v22  ;;  %v1223_v25 = vpop.f32.mrb[49].mxu0  ;;  %946 = vst.msk [vmem:[%s1840_s3 + $0xd4] sm:$0xf] %vm892_vm2, %v1128_v21  ;;  %v593_v26 = vadd.f32 %v1551_v34, %v592_v23  ;;  %v1283_v27 = vpop.f32.mrb[49].mxu1 }
 0x147   :  { %v475_v28 = vpop.f32.mrb[50].mxu0  ;;  %v595_v29 = vpop.f32.mrb[50].mxu1 }
 0x148   :  { %v630_v30 = vmax.f32 %v473_v24, 0.0  ;;  %v476_v31 = vadd.f32 %v1551_v34, %v475_v28  ;;  %v1224_v32 = vpop.f32.mrb[51].mxu0  ;;  %v660_v33 = vmax.f32 %v593_v26, 0.0  ;;  %v596_v35 = vadd.f32 %v1551_v34, %v595_v29  ;;  %v1284_v36 = vpop.f32.mrb[51].mxu1 }
 0x14a   :  { %v1099_v37 = vpack.c.bf16 %v630_v30, %v630_v30  ;;  %v631_v38 = vmax.f32 %v476_v31, 0.0  ;;  %v1129_v39 = vpack.c.bf16 %v660_v33, %v660_v33  ;;  %v661_v40 = vmax.f32 %v596_v35, 0.0 }
 0x14c   :  { %917 = vst.msk [vmem:[%s1840_s3 + $0x60] sm:$0xf] %vm892_vm2, %v1099_v37  ;;  %v1100_v41 = vpack.c.bf16 %v631_v38, %v631_v38  ;;  %947 = vst.msk [vmem:[%s1840_s3 + $0xd8] sm:$0xf] %vm892_vm2, %v1129_v39  ;;  %v1130_v42 = vpack.c.bf16 %v661_v40, %v661_v40 }
 0x14d   :  { %v480_v43 = vpop.f32.mrb[52].mxu0  ;;  %v600_v44 = vpop.f32.mrb[52].mxu1 }
 0x14e   :  { %918 = vst.msk [vmem:[%s1840_s3 + $0x64] sm:$0xf] %vm892_vm2, %v1100_v41  ;;  %v481_v45 = vadd.f32 %v1551_v34, %v480_v43  ;;  %v1227_v46 = vpop.f32.mrb[53].mxu0  ;;  %948 = vst.msk [vmem:[%s1840_s3 + $0xdc] sm:$0xf] %vm892_vm2, %v1130_v42  ;;  %v601_v47 = vadd.f32 %v1551_v34, %v600_v44  ;;  %v1287_v48 = vpop.f32.mrb[53].mxu1 }
 0x14f   :  { %v483_v49 = vpop.f32.mrb[54].mxu0  ;;  %v603_v50 = vpop.f32.mrb[54].mxu1 }
 0x150   :  { %v632_v51 = vmax.f32 %v481_v45, 0.0  ;;  %v484_v52 = vadd.f32 %v1551_v34, %v483_v49  ;;  %v1228_v53 = vpop.f32.mrb[55].mxu0  ;;  %v662_v54 = vmax.f32 %v601_v47, 0.0  ;;  %v1288_v55 = vpop.f32.mrb[55].mxu1 }
 0x152   :  { %v1101_v56 = vpack.c.bf16 %v632_v51, %v632_v51  ;;  %v633_v57 = vmax.f32 %v484_v52, 0.0  ;;  %v1131_v58 = vpack.c.bf16 %v662_v54, %v662_v54 }
 0x154   :  { %919 = vst.msk [vmem:[%s1840_s3 + $0x68] sm:$0xf] %vm892_vm2, %v1101_v56  ;;  %v1102_v59 = vpack.c.bf16 %v633_v57, %v633_v57 }
 0x155   :  { %950 = vst.msk [vmem:[%s1840_s3 + $0xe0] sm:$0x1] %vm949_vm3, %v1131_v58  ;;  %v488_v60 = vpop.f32.mrb[56].mxu0 }
 0x156   :  { %920 = vst.msk [vmem:[%s1840_s3 + $0x6c] sm:$0xf] %vm892_vm2, %v1102_v59  ;;  %v489_v61 = vadd.f32 %v1551_v34, %v488_v60  ;;  %v1231_v62 = vpop.f32.mrb[57].mxu0 }
 0x157   :  { %v491_v63 = vpop.f32.mrb[58].mxu0 }
 0x158   :  { %v634_v0 = vmax.f32 %v489_v61, 0.0  ;;  %v492_v1 = vadd.f32 %v1551_v34, %v491_v63  ;;  %v1232_v2 = vpop.f32.mrb[59].mxu0 }
 0x15a   :  { %v1103_v3 = vpack.c.bf16 %v634_v0, %v634_v0  ;;  %v635_v4 = vmax.f32 %v492_v1, 0.0 }
 0x15c   :  { %921 = vst.msk [vmem:[%s1840_s3 + $0x70] sm:$0xf] %vm892_vm2, %v1103_v3  ;;  %v1104_v5 = vpack.c.bf16 %v635_v4, %v635_v4 }
 0x15e   :  { %922 = vst.msk [vmem:[%s1840_s3 + $0x74] sm:$0xf] %vm892_vm2, %v1104_v5 }

// kernel: value_network_forward.4
= control target key start
LH: loop header
LB: loop body
LE: loop exit
PB: predicated region body
PF: predicated region fallthrough
CT: control target
= control target key end

     0   :  { %vm580_vm0 = vcmask 519168   ;;  %s1037_s1 = inlined_call_operand.vmem [shape: bf16[512,64], index: 1, kind: input, shape index: {}]   ;;  %s1038_s0 = inlined_call_operand.vmem [shape: bf16[72,512], index: 0, kind: input, shape index: {}]   ;;  %s1039_s2 = inlined_call_operand.vmem [shape: f32[1,64], index: 2, kind: input, shape index: {}]   ;;  %s1040_s3 = inlined_call_operand.vmem [shape: bf16[72,64], index: 3, kind: output, shape index: {}]  }
   0x1   :  { %v757_v0 = vld [vmem:[%s1037_s1 + $0x40] sm:$0xff]   ;;  %v761_v4 = vld [vmem:[%s1037_s1 + $0x48] sm:$0xff]   ;;  %v765_v8 = vld [vmem:[%s1037_s1 + $0x50] sm:$0xff]  }
   0x2   :  { %v758_v1 = vld [vmem:[%s1037_s1 + $0xc0] sm:$0xff]   ;;  %665 = vmatprep.subr.bf16.mxu0 %v757_v0  ;;  %v762_v5 = vld [vmem:[%s1037_s1 + $0xc8] sm:$0xff]   ;;  %v766_v9 = vld [vmem:[%s1037_s1 + $0xd0] sm:$0xff]  }
   0x3   :  { %v759_v2 = vld [vmem:[%s1037_s1] sm:$0xff]   ;;  %711 = vmatprep.subr.bf16.mxu1 %v758_v1  ;;  %v763_v6 = vld [vmem:[%s1037_s1 + $0x8] sm:$0xff]   ;;  %v767_v10 = vld [vmem:[%s1037_s1 + $0x10] sm:$0xff]  }
   0x4   :  { %v760_v3 = vld [vmem:[%s1037_s1 + $0x80] sm:$0xff]   ;;  %666 = vmatpush3.bf16.msra.mxu0 %v759_v2  ;;  %v764_v7 = vld [vmem:[%s1037_s1 + $0x88] sm:$0xff]   ;;  %v768_v11 = vld [vmem:[%s1037_s1 + $0x90] sm:$0xff]  }
   0x5   :  { %712 = vmatpush3.bf16.msra.mxu1 %v760_v3  ;;  %667 = vmatprep.subr.bf16.mxu0 %v761_v4  ;;  %v769_v12 = vld [vmem:[%s1037_s1 + $0x58] sm:$0xff]   ;;  %v773_v16 = vld [vmem:[%s1037_s1 + $0x60] sm:$0xff]   ;;  %v777_v20 = vld [vmem:[%s1037_s1 + $0x68] sm:$0xff]  }
   0x6   :  { %713 = vmatprep.subr.bf16.mxu1 %v762_v5  ;;  %v770_v13 = vld [vmem:[%s1037_s1 + $0xd8] sm:$0xff]   ;;  %v774_v17 = vld [vmem:[%s1037_s1 + $0xe0] sm:$0xff]   ;;  %v778_v21 = vld [vmem:[%s1037_s1 + $0xe8] sm:$0xff]  }
   0x7   :  { %v771_v14 = vld [vmem:[%s1037_s1 + $0x18] sm:$0xff]   ;;  %v775_v18 = vld [vmem:[%s1037_s1 + $0x20] sm:$0xff]   ;;  %v779_v22 = vld [vmem:[%s1037_s1 + $0x28] sm:$0xff]  }
   0x8   :  { %668 = vmatpush3.bf16.msra.mxu0 %v763_v6  ;;  %v772_v15 = vld [vmem:[%s1037_s1 + $0x98] sm:$0xff]   ;;  %v776_v19 = vld [vmem:[%s1037_s1 + $0xa0] sm:$0xff]   ;;  %v780_v23 = vld [vmem:[%s1037_s1 + $0xa8] sm:$0xff]  }
   0x9   :  { %714 = vmatpush3.bf16.msra.mxu1 %v764_v7  ;;  %669 = vmatprep.subr.bf16.mxu0 %v765_v8  ;;  %v781_v24 = vld [vmem:[%s1037_s1 + $0x70] sm:$0xff]   ;;  %v785_v28 = vld [vmem:[%s1037_s1 + $0x78] sm:$0xff]   ;;  %v31_v46 = vld [vmem:[%s1038_s0 + $0x80] sm:$0xff] }
   0xa   :  { %715 = vmatprep.subr.bf16.mxu1 %v766_v9  ;;  %v782_v25 = vld [vmem:[%s1037_s1 + $0xf0] sm:$0xff]   ;;  %v786_v29 = vld [vmem:[%s1037_s1 + $0xf8] sm:$0xff]   ;;  %v32_v47 = vld [vmem:[%s1038_s0 + $0x88] sm:$0xff]  ;;  %v612_v50 = vcombine.high %v31_v46, %v31_v46  ;;  %v611_v52 = vcombine.low %v31_v46, %v31_v46 }
   0xb   :  { %v783_v26 = vld [vmem:[%s1037_s1 + $0x30] sm:$0xff]   ;;  %v787_v30 = vld [vmem:[%s1037_s1 + $0x38] sm:$0xff]   ;;  %v614_v51 = vcombine.high %v32_v47, %v32_v47  ;;  %v613_v53 = vcombine.low %v32_v47, %v32_v47  ;;  %v990_v56 = vld [vmem:[%s1039_s2] ss:$0 sm:$0xff] }
   0xc   :  { %670 = vmatpush3.bf16.msra.mxu0 %v767_v10  ;;  %v784_v27 = vld [vmem:[%s1037_s1 + $0xb0] sm:$0xff]   ;;  %v788_v31 = vld [vmem:[%s1037_s1 + $0xb8] sm:$0xff]  }
   0xd   :  { %716 = vmatpush3.bf16.msra.mxu1 %v768_v11  ;;  %671 = vmatprep.subr.bf16.mxu0 %v769_v12  ;;  %v789_v32 = vld [vmem:[%s1038_s0] ss:$16 sps:$4 sm:$0xff]   ;;  %v791_v33 = vld [vmem:[%s1038_s0 + $0x4] ss:$16 sps:$4 sm:$0xff]   ;;  %v792_v34 = vld [vmem:[%s1038_s0 + $0x8] ss:$16 sps:$4 sm:$0xff]  }
   0xe   :  { %717 = vmatprep.subr.bf16.mxu1 %v770_v13  ;;  %v794_v35 = vld [vmem:[%s1038_s0 + $0xc] ss:$16 sps:$4 sm:$0xff]   ;;  %422 = vmatprep.mubr.bf16.mxu0 %v791_v33  ;;  %v795_v36 = vld [vmem:[%s1038_s0 + $0x24] ss:$16 sps:$4 sm:$0xff]   ;;  %v799_v38 = vld [vmem:[%s1038_s0 + $0x20] ss:$16 sps:$4 sm:$0xff]  }
   0xf   :  { %494 = vmatprep.mubr.bf16.mxu1 %v794_v35  ;;  %v797_v37 = vld [vmem:[%s1038_s0 + $0x2c] ss:$16 sps:$4 sm:$0xff]   ;;  %v800_v39 = vld [vmem:[%s1038_s0 + $0x28] ss:$16 sps:$4 sm:$0xff]   ;;  %v801_v40 = vld [vmem:[%s1038_s0 + $0x44] ss:$16 sps:$4 sm:$0xff]  }
  0x10   :  { %672 = vmatpush3.bf16.msra.mxu0 %v771_v14  ;;  %v803_v41 = vld [vmem:[%s1038_s0 + $0x4c] ss:$16 sps:$4 sm:$0xff]   ;;  %v805_v42 = vld [vmem:[%s1038_s0 + $0x40] ss:$16 sps:$4 sm:$0xff]   ;;  %v806_v43 = vld [vmem:[%s1038_s0 + $0x48] ss:$16 sps:$4 sm:$0xff]  }
  0x11   :  { %718 = vmatpush3.bf16.msra.mxu1 %v772_v15  ;;  %673 = vmatprep.subr.bf16.mxu0 %v773_v16  ;;  %v807_v44 = vld [vmem:[%s1038_s0 + $0x64] ss:$16 sps:$4 sm:$0xff]   ;;  %v809_v45 = vld [vmem:[%s1038_s0 + $0x6c] ss:$16 sps:$4 sm:$0xff]   ;;  %v811_v48 = vld [vmem:[%s1038_s0 + $0x60] ss:$16 sps:$4 sm:$0xff]  }
  0x12   :  { %719 = vmatprep.subr.bf16.mxu1 %v774_v17  ;;  %v812_v49 = vld [vmem:[%s1038_s0 + $0x68] ss:$16 sps:$4 sm:$0xff]  }
  0x14   :  { %674 = vmatpush3.bf16.msra.mxu0 %v775_v18 }
  0x15   :  { %720 = vmatpush3.bf16.msra.mxu1 %v776_v19  ;;  %675 = vmatprep.subr.bf16.mxu0 %v777_v20 }
  0x16   :  { %721 = vmatprep.subr.bf16.mxu1 %v778_v21 }
  0x18   :  { %676 = vmatpush3.bf16.msra.mxu0 %v779_v22 }
  0x19   :  { %722 = vmatpush3.bf16.msra.mxu1 %v780_v23  ;;  %677 = vmatprep.subr.bf16.mxu0 %v781_v24 }
  0x1a   :  { %723 = vmatprep.subr.bf16.mxu1 %v782_v25 }
  0x1c   :  { %678 = vmatpush3.bf16.msra.mxu0 %v783_v26 }
  0x1d   :  { %724 = vmatpush3.bf16.msra.mxu1 %v784_v27  ;;  %679 = vmatprep.subr.bf16.mxu0 %v785_v28 }
  0x1e   :  { %725 = vmatprep.subr.bf16.mxu1 %v786_v29 }
  0x20   :  { %680 = vmatpush3.bf16.msra.mxu0 %v787_v30 }
  0x21   :  { %726 = vmatpush3.bf16.msra.mxu1 %v788_v31 }
  0x23   :  { %423 = vmatmul.mubr.bf16.vlgmr.msra.gmra.mrb[0].mxu0 %v789_v32 }
  0x24   :  { %495 = vmatmul.mubr.bf16.vlgmr.msra.gmra.mrb[0].mxu1 %v792_v34  ;;  %430 = vmatprep.mubr.bf16.mxu0 %v795_v36 }
  0x25   :  { %502 = vmatprep.mubr.bf16.mxu1 %v797_v37 }
  0x2b   :  { %431 = vmatmul.mubr.bf16.gmra.mrb[4].mxu0 %v799_v38 }
  0x2c   :  { %503 = vmatmul.mubr.bf16.gmra.mrb[4].mxu1 %v800_v39  ;;  %438 = vmatprep.mubr.bf16.mxu0 %v801_v40 }
  0x2d   :  { %510 = vmatprep.mubr.bf16.mxu1 %v803_v41 }
  0x33   :  { %439 = vmatmul.mubr.bf16.gmra.mrb[8].mxu0 %v805_v42 }
  0x34   :  { %511 = vmatmul.mubr.bf16.gmra.mrb[8].mxu1 %v806_v43  ;;  %446 = vmatprep.mubr.bf16.mxu0 %v807_v44 }
  0x35   :  { %518 = vmatprep.mubr.bf16.mxu1 %v809_v45 }
  0x3b   :  { %447 = vmatmul.mubr.bf16.gmra.mrb[12].mxu0 %v811_v48 }
  0x3c   :  { %519 = vmatmul.mubr.bf16.gmra.mrb[12].mxu1 %v812_v49  ;;  %454 = vmatprep.mubr.bf16.mxu0 %v612_v50 }
  0x3d   :  { %526 = vmatprep.mubr.bf16.mxu1 %v614_v51 }
  0x43   :  { %455 = vmatmul.mubr.bf16.gmra.mrb[16].mxu0 %v611_v52 }
  0x44   :  { %527 = vmatmul.mubr.bf16.gmra.mrb[16].mxu1 %v613_v53 }
  0xf6   :  { %v681_v54 = vpop.f32.mrb[0].mxu0 }
  0xf7   :  { %v727_v55 = vpop.f32.mrb[0].mxu1  ;;  %v682_v57 = vpop.f32.mrb[1].mxu0 }
  0xf8   :  { %v683_v58 = vadd.f32 %v682_v57, %v681_v54  ;;  %v728_v59 = vpop.f32.mrb[1].mxu1  ;;  %v684_v60 = vpop.f32.mrb[2].mxu0 }
  0xf9   :  { %v729_v61 = vadd.f32 %v728_v59, %v727_v55  ;;  %v730_v62 = vpop.f32.mrb[2].mxu1  ;;  %v685_v63 = vpop.f32.mrb[3].mxu0 }
  0xfa   :  { %v425_v0 = vadd.f32 %v683_v58, %v990_v56  ;;  %v686_v1 = vadd.f32 %v685_v63, %v684_v60  ;;  %v731_v2 = vpop.f32.mrb[3].mxu1 }
  0xfb   :  { %v732_v3 = vadd.f32 %v731_v2, %v730_v62 }
  0xfc   :  { %v497_v4 = vadd.f32 %v729_v61, %v425_v0  ;;  %v428_v5 = vadd.f32 %v686_v1, %v990_v56 }
  0xfe   :  { %v534_v6 = vmax.f32 %v497_v4, 0.0  ;;  %v500_v7 = vadd.f32 %v732_v3, %v428_v5  ;;  %v687_v8 = vpop.f32.mrb[4].mxu0 }
  0xff   :  { %v733_v9 = vpop.f32.mrb[4].mxu1  ;;  %v688_v10 = vpop.f32.mrb[5].mxu0 }
 0x100   :  { %v656_v11 = vpack.c.bf16 %v534_v6, %v534_v6  ;;  %v535_v12 = vmax.f32 %v500_v7, 0.0  ;;  %v689_v13 = vadd.f32 %v688_v10, %v687_v8  ;;  %v734_v14 = vpop.f32.mrb[5].mxu1  ;;  %v690_v15 = vpop.f32.mrb[6].mxu0 }
 0x101   :  { %v735_v16 = vadd.f32 %v734_v14, %v733_v9  ;;  %v736_v17 = vpop.f32.mrb[6].mxu1  ;;  %v691_v18 = vpop.f32.mrb[7].mxu0 }
 0x102   :  { %581 = vst.msk [vmem:[%s1040_s3] sm:$0xf] %vm580_vm0, %v656_v11  ;;  %v657_v19 = vpack.c.bf16 %v535_v12, %v535_v12  ;;  %v433_v20 = vadd.f32 %v689_v13, %v990_v56  ;;  %v692_v21 = vadd.f32 %v691_v18, %v690_v15  ;;  %v737_v22 = vpop.f32.mrb[7].mxu1 }
 0x103   :  { %v738_v23 = vadd.f32 %v737_v22, %v736_v17 }
 0x104   :  { %582 = vst.msk [vmem:[%s1040_s3 + $0x4] sm:$0xf] %vm580_vm0, %v657_v19  ;;  %v505_v24 = vadd.f32 %v735_v16, %v433_v20  ;;  %v436_v25 = vadd.f32 %v692_v21, %v990_v56 }
 0x106   :  { %v536_v26 = vmax.f32 %v505_v24, 0.0  ;;  %v508_v27 = vadd.f32 %v738_v23, %v436_v25  ;;  %v693_v28 = vpop.f32.mrb[8].mxu0 }
 0x107   :  { %v739_v29 = vpop.f32.mrb[8].mxu1  ;;  %v694_v30 = vpop.f32.mrb[9].mxu0 }
 0x108   :  { %v658_v31 = vpack.c.bf16 %v536_v26, %v536_v26  ;;  %v537_v32 = vmax.f32 %v508_v27, 0.0  ;;  %v695_v33 = vadd.f32 %v694_v30, %v693_v28  ;;  %v740_v34 = vpop.f32.mrb[9].mxu1  ;;  %v696_v35 = vpop.f32.mrb[10].mxu0 }
 0x109   :  { %v741_v36 = vadd.f32 %v740_v34, %v739_v29  ;;  %v742_v37 = vpop.f32.mrb[10].mxu1  ;;  %v697_v38 = vpop.f32.mrb[11].mxu0 }
 0x10a   :  { %583 = vst.msk [vmem:[%s1040_s3 + $0x8] sm:$0xf] %vm580_vm0, %v658_v31  ;;  %v659_v39 = vpack.c.bf16 %v537_v32, %v537_v32  ;;  %v441_v40 = vadd.f32 %v695_v33, %v990_v56  ;;  %v698_v41 = vadd.f32 %v697_v38, %v696_v35  ;;  %v743_v42 = vpop.f32.mrb[11].mxu1 }
 0x10b   :  { %v744_v43 = vadd.f32 %v743_v42, %v742_v37 }
 0x10c   :  { %584 = vst.msk [vmem:[%s1040_s3 + $0xc] sm:$0xf] %vm580_vm0, %v659_v39  ;;  %v513_v44 = vadd.f32 %v741_v36, %v441_v40  ;;  %v444_v45 = vadd.f32 %v698_v41, %v990_v56 }
 0x10e   :  { %v538_v46 = vmax.f32 %v513_v44, 0.0  ;;  %v516_v47 = vadd.f32 %v744_v43, %v444_v45  ;;  %v699_v48 = vpop.f32.mrb[12].mxu0 }
 0x10f   :  { %v745_v49 = vpop.f32.mrb[12].mxu1  ;;  %v700_v50 = vpop.f32.mrb[13].mxu0 }
 0x110   :  { %v660_v51 = vpack.c.bf16 %v538_v46, %v538_v46  ;;  %v539_v52 = vmax.f32 %v516_v47, 0.0  ;;  %v701_v53 = vadd.f32 %v700_v50, %v699_v48  ;;  %v746_v54 = vpop.f32.mrb[13].mxu1  ;;  %v702_v55 = vpop.f32.mrb[14].mxu0 }
 0x111   :  { %v747_v57 = vadd.f32 %v746_v54, %v745_v49  ;;  %v748_v58 = vpop.f32.mrb[14].mxu1  ;;  %v703_v59 = vpop.f32.mrb[15].mxu0 }
 0x112   :  { %585 = vst.msk [vmem:[%s1040_s3 + $0x10] sm:$0xf] %vm580_vm0, %v660_v51  ;;  %v661_v60 = vpack.c.bf16 %v539_v52, %v539_v52  ;;  %v449_v61 = vadd.f32 %v701_v53, %v990_v56  ;;  %v704_v62 = vadd.f32 %v703_v59, %v702_v55  ;;  %v749_v63 = vpop.f32.mrb[15].mxu1 }
 0x113   :  { %v750_v0 = vadd.f32 %v749_v63, %v748_v58 }
 0x114   :  { %586 = vst.msk [vmem:[%s1040_s3 + $0x14] sm:$0xf] %vm580_vm0, %v661_v60  ;;  %v521_v1 = vadd.f32 %v747_v57, %v449_v61  ;;  %v452_v2 = vadd.f32 %v704_v62, %v990_v56 }
 0x116   :  { %v540_v3 = vmax.f32 %v521_v1, 0.0  ;;  %v524_v4 = vadd.f32 %v750_v0, %v452_v2  ;;  %v705_v5 = vpop.f32.mrb[16].mxu0 }
 0x117   :  { %v751_v6 = vpop.f32.mrb[16].mxu1  ;;  %v706_v7 = vpop.f32.mrb[17].mxu0 }
 0x118   :  { %v662_v8 = vpack.c.bf16 %v540_v3, %v540_v3  ;;  %v541_v9 = vmax.f32 %v524_v4, 0.0  ;;  %v707_v10 = vadd.f32 %v706_v7, %v705_v5  ;;  %v752_v11 = vpop.f32.mrb[17].mxu1  ;;  %v708_v12 = vpop.f32.mrb[18].mxu0 }
 0x119   :  { %v753_v13 = vadd.f32 %v752_v11, %v751_v6  ;;  %v754_v14 = vpop.f32.mrb[18].mxu1  ;;  %v709_v15 = vpop.f32.mrb[19].mxu0 }
 0x11a   :  { %587 = vst.msk [vmem:[%s1040_s3 + $0x18] sm:$0xf] %vm580_vm0, %v662_v8  ;;  %v663_v16 = vpack.c.bf16 %v541_v9, %v541_v9  ;;  %v457_v17 = vadd.f32 %v707_v10, %v990_v56  ;;  %v755_v18 = vpop.f32.mrb[19].mxu1 }
 0x11c   :  { %588 = vst.msk [vmem:[%s1040_s3 + $0x1c] sm:$0xf] %vm580_vm0, %v663_v16  ;;  %v529_v19 = vadd.f32 %v753_v13, %v457_v17 }
 0x11e   :  { %v542_v20 = vmax.f32 %v529_v19, 0.0 }
 0x120   :  { %v664_v21 = vpack.c.bf16 %v542_v20, %v542_v20 }
 0x122   :  { %589 = vst.msk [vmem:[%s1040_s3 + $0x20] sm:$0xf] %vm580_vm0, %v664_v21 }

// kernel: value_network_forward.5
= control target key start
LH: loop header
LB: loop body
LE: loop exit
PB: predicated region body
PF: predicated region fallthrough
CT: control target
= control target key end

     0   :  { %s12103_s0 = inlined_call_operand.vmem [shape: bf16[2,10240], index: 0, kind: input, shape index: {}]   ;;  %s12104_s1 = inlined_call_operand.vmem [shape: bf16[640,64], index: 1, kind: input, shape index: {}]   ;;  %s12105_s2 = inlined_call_operand.vmem [shape: f32[1,64], index: 2, kind: input, shape index: {}]   ;;  %s12106_s3 = inlined_call_operand.vmem [shape: bf16[1024,512], index: 3, kind: input, shape index: {}]   ;;  %s12107_s4 = inlined_call_operand.vmem [shape: f32[1,512], index: 4, kind: input, shape index: {}]   ;;  %s12108_s5 = inlined_call_operand.vmem [shape: bf16[512,64], index: 5, kind: input, shape index: {}]   ;;  %s12109_s6 = inlined_call_operand.vmem [shape: f32[1,64], index: 6, kind: input, shape index: {}]   ;;  %s12110_s7 = inlined_call_operand.vmem [shape: bf16[64,64], index: 7, kind: input, shape index: {}]   ;;  %s12111_s8 = inlined_call_operand.vmem [shape: f32[1,64], index: 8, kind: input, shape index: {}]   ;;  %s12112_s9 = inlined_call_operand.vmem [shape: f32[1,64], index: 9, kind: input, shape index: {}]   ;;  %s12113_s10 = inlined_call_operand.<no memory space> [shape: f32[1,1], index: 10, kind: input, shape index: {}]   ;;  %s12114_s11 = inlined_call_operand.hbm [shape: f32[1,2], index: 11, kind: output, shape index: {}]  }
   0x1   :  { %v16_v0 = vstv %s12113_s10 }
   0x2   :  { %17 = vst [vmem:[#allocation2] sm:$0x1] %v16_v0 }
   0x3   :  { %v8857_v1 = vld [vmem:[%s12104_s1 + $0x40] sm:$0xff]   ;;  %v8880_v5 = vld [vmem:[%s12104_s1 + $0x48] sm:$0xff]   ;;  %v8904_v9 = vld [vmem:[%s12104_s1 + $0x50] sm:$0xff]   ;;  %v12115_v30 = vlaneseq  ;;  %v8786_v33 = vmov 1966171168   ;;  %v12122_v37 = vmov 0.0  }
   0x4   :  { %v8862_v2 = vld [vmem:[%s12104_s1] sm:$0xff]   ;;  %6888 = vmatprep.subr.bf16.mxu0 %v8857_v1  ;;  %v8886_v6 = vld [vmem:[%s12104_s1 + $0x8] sm:$0xff]   ;;  %v8910_v10 = vld [vmem:[%s12104_s1 + $0x10] sm:$0xff]   ;;  %v133_v34 = vunpack.c.l.s4 %v8786_v33  ;;  %vm8788_vm0 = vmmov 0  }
   0x5   :  { %v8868_v3 = vld [vmem:[%s12104_s1 + $0xc0] sm:$0xff]   ;;  %6889 = vmatpush3.bf16.msra.mxu0 %v8862_v2  ;;  %v8892_v7 = vld [vmem:[%s12104_s1 + $0xc8] sm:$0xff]   ;;  %v8916_v11 = vld [vmem:[%s12104_s1 + $0xd0] sm:$0xff]   ;;  %v9041_v35 = vshrl.u32 %v12115_v30, 7 }
   0x6   :  { %v8874_v4 = vld [vmem:[%s12104_s1 + $0x80] sm:$0xff]   ;;  %6910 = vmatprep.subr.bf16.mxu1 %v8868_v3  ;;  %6890 = vmatprep.subr.bf16.mxu0 %v8880_v5  ;;  %v8898_v8 = vld [vmem:[%s12104_s1 + $0x88] sm:$0xff]   ;;  %v8922_v12 = vld [vmem:[%s12104_s1 + $0x90] sm:$0xff]   ;;  %v134_v38 = vunpack.c.0.s8 %v133_v34 }
   0x7   :  { %6911 = vmatpush3.bf16.msra.mxu1 %v8874_v4  ;;  %v8928_v13 = vld [vmem:[%s12104_s1 + $0x58] sm:$0xff]   ;;  %v8952_v17 = vld [vmem:[%s12104_s1 + $0x60] sm:$0xff]   ;;  %v8976_v21 = vld [vmem:[%s12104_s1 + $0x68] sm:$0xff]   ;;  %12139 = vst [vmem:[#allocation6_spill] sm:$0xff] %v9041_v35 }
   0x8   :  { %6912 = vmatprep.subr.bf16.mxu1 %v8892_v7  ;;  %v8934_v14 = vld [vmem:[%s12104_s1 + $0x18] sm:$0xff]   ;;  %v8958_v18 = vld [vmem:[%s12104_s1 + $0x20] sm:$0xff]   ;;  %v8982_v22 = vld [vmem:[%s12104_s1 + $0x28] sm:$0xff]   ;;  %v9055_v40 = vsub.s32 %v134_v38, %v9041_v35 }
   0x9   :  { %6891 = vmatpush3.bf16.msra.mxu0 %v8886_v6  ;;  %v8940_v15 = vld [vmem:[%s12104_s1 + $0xd8] sm:$0xff]   ;;  %v8964_v19 = vld [vmem:[%s12104_s1 + $0xe0] sm:$0xff]   ;;  %v8988_v23 = vld [vmem:[%s12104_s1 + $0xe8] sm:$0xff]  }
   0xa   :  { %6892 = vmatprep.subr.bf16.mxu0 %v8904_v9  ;;  %v8946_v16 = vld [vmem:[%s12104_s1 + $0x98] sm:$0xff]   ;;  %v8970_v20 = vld [vmem:[%s12104_s1 + $0xa0] sm:$0xff]   ;;  %v8994_v24 = vld [vmem:[%s12104_s1 + $0xa8] sm:$0xff]  }
   0xb   :  { %6913 = vmatpush3.bf16.msra.mxu1 %v8898_v8  ;;  %v9000_v25 = vld [vmem:[%s12104_s1 + $0x70] sm:$0xff]   ;;  %v9024_v29 = vld [vmem:[%s12104_s1 + $0x78] sm:$0xff]   ;;  %v42_v39 = vld [vmem:[%s12103_s0] sm:$0x1f] }
   0xc   :  { %6914 = vmatprep.subr.bf16.mxu1 %v8916_v11  ;;  %v9006_v26 = vld [vmem:[%s12104_s1 + $0x30] sm:$0xff]   ;;  %v9030_v31 = vld [vmem:[%s12104_s1 + $0x38] sm:$0xff]   ;;  %v138_v41 = vrot.slane %v42_v39, %v9055_v40  ;;  %v9062_v44 = vld [vmem:[%s12104_s1 + $0x100] sm:$0xff]   ;;  %v131_v58 = vcombine.high %v42_v39, %v42_v39 }
   0xd   :  { %6893 = vmatpush3.bf16.msra.mxu0 %v8910_v10  ;;  %v9012_v27 = vld [vmem:[%s12104_s1 + $0xf0] sm:$0xff]   ;;  %v9036_v32 = vld [vmem:[%s12104_s1 + $0xf8] sm:$0xff]   ;;  %v9067_v45 = vld [vmem:[%s12103_s0 + $0x5] sm:$0x1f] }
   0xe   :  { %6894 = vmatprep.subr.bf16.mxu0 %v8928_v13  ;;  %v9018_v28 = vld [vmem:[%s12104_s1 + $0xb0] sm:$0xff]   ;;  %v9046_v36 = vld [vmem:[%s12104_s1 + $0xb8] sm:$0xff]   ;;  %v146_v42 = vcombine.high %v138_v41, %v138_v41  ;;  %v153_v43 = vrot.slane %v138_v41, %v9055_v40  ;;  %v562_v46 = vrot.slane %v9067_v45, %v9055_v40  ;;  %v8157_v51 = vld [vmem:[%s12104_s1 + $0x108] sm:$0xff]   ;;  %v145_v60 = vrot.slane %v131_v58, %v9055_v40 }
   0xf   :  { %6915 = vmatpush3.bf16.msra.mxu1 %v8922_v12  ;;  %v8158_v53 = vld [vmem:[%s12104_s1 + $0x110] sm:$0xff]   ;;  %v8159_v54 = vld [vmem:[%s12104_s1 + $0x118] sm:$0xff]   ;;  %v8160_v55 = vld [vmem:[%s12104_s1 + $0x120] sm:$0xff]   ;;  %v555_v0 = vcombine.high %v9067_v45, %v9067_v45 }
  0x10   :  { %6916 = vmatprep.subr.bf16.mxu1 %v8940_v15  ;;  %v167_v47 = vrot.slane %v146_v42, %v9055_v40  ;;  %v168_v48 = vcombine.high %v153_v43, %v153_v43  ;;  %v570_v49 = vcombine.high %v562_v46, %v562_v46  ;;  %v9102_v56 = vld [vmem:[%s12104_s1 + $0x128] sm:$0xff]   ;;  %v9110_v57 = vld [vmem:[%s12104_s1 + $0x130] sm:$0xff]   ;;  %v9119_v59 = vld [vmem:[%s12104_s1 + $0x138] sm:$0xff]   ;;  %v160_v61 = vrot.slane %v145_v60, %v9055_v40 }
  0x11   :  { %6895 = vmatpush3.bf16.msra.mxu0 %v8934_v14  ;;  %v577_v63 = vrot.slane %v562_v46, %v9055_v40 }
  0x12   :  { %6896 = vmatprep.subr.bf16.mxu0 %v8952_v17  ;;  %447 = vmatprep.mubr.bf16.mxu0 %v167_v47  ;;  %v169_v50 = vcombine.high %v167_v47, %v167_v47  ;;  %v591_v52 = vrot.slane %v570_v49, %v9055_v40 }
  0x13   :  { %6917 = vmatpush3.bf16.msra.mxu1 %v8946_v16 }
  0x14   :  { %6918 = vmatprep.subr.bf16.mxu1 %v8964_v19  ;;  %487 = vmatprep.mubr.bf16.mxu1 %v169_v50  ;;  %v593_v62 = vcombine.high %v591_v52, %v591_v52 }
  0x15   :  { %6897 = vmatpush3.bf16.msra.mxu0 %v8958_v18 }
  0x16   :  { %6898 = vmatprep.subr.bf16.mxu0 %v8976_v21 }
  0x17   :  { %6919 = vmatpush3.bf16.msra.mxu1 %v8970_v20 }
  0x18   :  { %6920 = vmatprep.subr.bf16.mxu1 %v8988_v23 }
  0x19   :  { %6899 = vmatpush3.bf16.msra.mxu0 %v8982_v22 }
  0x1a   :  { %6900 = vmatprep.subr.bf16.mxu0 %v9000_v25 }
  0x1b   :  { %6921 = vmatpush3.bf16.msra.mxu1 %v8994_v24 }
  0x1c   :  { %6922 = vmatprep.subr.bf16.mxu1 %v9012_v27 }
  0x1d   :  { %6901 = vmatpush3.bf16.msra.mxu0 %v9006_v26 }
  0x1e   :  { %6902 = vmatprep.subr.bf16.mxu0 %v9024_v29 }
  0x1f   :  { %6923 = vmatpush3.bf16.msra.mxu1 %v9018_v28 }
  0x20   :  { %6924 = vmatprep.subr.bf16.mxu1 %v9036_v32 }
  0x21   :  { %6903 = vmatpush3.bf16.msra.mxu0 %v9030_v31 }
  0x22   :  { %7785 = vmatprep.subr.bf16.mxu0 %v12122_v37 }
  0x23   :  { %6925 = vmatpush3.bf16.msra.mxu1 %v9046_v36 }
  0x24   :  { %6941 = vmatprep.subr.bf16.mxu1 %v8857_v1  ;;  %448 = vmatmul.mubr.bf16.vlgmr.msra.gmra.mrb[0].mxu0 %v153_v43  ;;  %v569_v1 = vrot.slane %v555_v0, %v9055_v40 }
  0x25   :  { %7786 = vmatpush3.bf16.msra.mxu0 %v9062_v44  ;;  %7801 = vmatprep.mubr.msk.bf16.mxu0 %vm8788_vm0, %v12122_v37 }
  0x26   :  { %488 = vmatmul.mubr.bf16.vlgmr.msra.gmra.mrb[0].mxu1 %v168_v48  ;;  %7787 = vmatprep.subr.bf16.mxu0 %v12122_v37 }
  0x27   :  { %6942 = vmatpush3.bf16.msra.mxu1 %v8862_v2  ;;  %631 = vmatprep.mubr.bf16.mxu1 %v591_v52  ;;  %v592_v2 = vcombine.high %v577_v63, %v577_v63 }
  0x28   :  { %6943 = vmatprep.subr.bf16.mxu1 %v8880_v5 }
  0x29   :  { %7788 = vmatpush3.bf16.msra.mxu0 %v8157_v51 }
  0x2a   :  { %7789 = vmatprep.subr.bf16.mxu0 %v12122_v37 }
  0x2b   :  { %6944 = vmatpush3.bf16.msra.mxu1 %v8886_v6 }
  0x2c   :  { %6945 = vmatprep.subr.bf16.mxu1 %v8904_v9 }
  0x2d   :  { %7790 = vmatpush3.bf16.msra.mxu0 %v8158_v53 }
  0x2e   :  { %7791 = vmatprep.subr.bf16.mxu0 %v12122_v37 }
  0x2f   :  { %6946 = vmatpush3.bf16.msra.mxu1 %v8910_v10 }
  0x30   :  { %6947 = vmatprep.subr.bf16.mxu1 %v8928_v13 }
  0x31   :  { %7792 = vmatpush3.bf16.msra.mxu0 %v8159_v54 }
  0x32   :  { %7793 = vmatprep.subr.bf16.mxu0 %v12122_v37 }
  0x33   :  { %6948 = vmatpush3.bf16.msra.mxu1 %v8934_v14 }
  0x34   :  { %6949 = vmatprep.subr.bf16.mxu1 %v8952_v17 }
  0x35   :  { %7794 = vmatpush3.bf16.msra.mxu0 %v8160_v55 }
  0x36   :  { %7795 = vmatprep.subr.bf16.mxu0 %v12122_v37 }
  0x37   :  { %6950 = vmatpush3.bf16.msra.mxu1 %v8958_v18 }
  0x38   :  { %6951 = vmatprep.subr.bf16.mxu1 %v8976_v21 }
  0x39   :  { %7796 = vmatpush3.bf16.msra.mxu0 %v9102_v56 }
  0x3a   :  { %7797 = vmatprep.subr.bf16.mxu0 %v12122_v37 }
  0x3b   :  { %6952 = vmatpush3.bf16.msra.mxu1 %v8982_v22 }
  0x3c   :  { %6953 = vmatprep.subr.bf16.mxu1 %v9000_v25 }
  0x3d   :  { %7798 = vmatpush3.bf16.msra.mxu0 %v9110_v57 }
  0x3e   :  { %7799 = vmatprep.subr.bf16.mxu0 %v12122_v37 }
  0x3f   :  { %6954 = vmatpush3.bf16.msra.mxu1 %v9006_v26 }
  0x40   :  { %6955 = vmatprep.subr.bf16.mxu1 %v9024_v29 }
  0x41   :  { %7800 = vmatpush3.bf16.msra.mxu0 %v9119_v59 }
  0x42   :  { %6963 = vmatprep.subr.bf16.mxu0 %v8868_v3  ;;  %v584_v3 = vrot.slane %v569_v1, %v9055_v40 }
  0x43   :  { %6956 = vmatpush3.bf16.msra.mxu1 %v9030_v31 }
  0x44   :  { %7802 = vmatmul.mubr.bf16.vlgmr.msra.gmra.mrb[4].mxu0 %v160_v61  ;;  %7805 = vmatprep.subr.bf16.mxu1 %v12122_v37 }
  0x45   :  { %6964 = vmatpush3.bf16.msra.mxu0 %v8874_v4  ;;  %671 = vmatprep.mubr.bf16.mxu0 %v593_v62 }
  0x46   :  { %632 = vmatmul.mubr.bf16.vlgmr.msra.gmra.mrb[4].mxu1 %v577_v63  ;;  %6965 = vmatprep.subr.bf16.mxu0 %v8892_v7 }
  0x47   :  { %7806 = vmatpush3.bf16.msra.mxu1 %v9062_v44  ;;  %7821 = vmatprep.mubr.msk.bf16.mxu1 %vm8788_vm0, %v12122_v37 }
  0x48   :  { %7807 = vmatprep.subr.bf16.mxu1 %v12122_v37 }
  0x49   :  { %6966 = vmatpush3.bf16.msra.mxu0 %v8898_v8 }
  0x4a   :  { %6967 = vmatprep.subr.bf16.mxu0 %v8916_v11 }
  0x4b   :  { %7808 = vmatpush3.bf16.msra.mxu1 %v8157_v51 }
  0x4c   :  { %7809 = vmatprep.subr.bf16.mxu1 %v12122_v37 }
  0x4d   :  { %6968 = vmatpush3.bf16.msra.mxu0 %v8922_v12 }
  0x4e   :  { %6969 = vmatprep.subr.bf16.mxu0 %v8940_v15 }
  0x4f   :  { %7810 = vmatpush3.bf16.msra.mxu1 %v8158_v53 }
  0x50   :  { %7811 = vmatprep.subr.bf16.mxu1 %v12122_v37 }
  0x51   :  { %6970 = vmatpush3.bf16.msra.mxu0 %v8946_v16 }
  0x52   :  { %6971 = vmatprep.subr.bf16.mxu0 %v8964_v19 }
  0x53   :  { %7812 = vmatpush3.bf16.msra.mxu1 %v8159_v54 }
  0x54   :  { %7813 = vmatprep.subr.bf16.mxu1 %v12122_v37 }
  0x55   :  { %6972 = vmatpush3.bf16.msra.mxu0 %v8970_v20 }
  0x56   :  { %6973 = vmatprep.subr.bf16.mxu0 %v8988_v23 }
  0x57   :  { %7814 = vmatpush3.bf16.msra.mxu1 %v8160_v55 }
  0x58   :  { %7815 = vmatprep.subr.bf16.mxu1 %v12122_v37 }
  0x59   :  { %6974 = vmatpush3.bf16.msra.mxu0 %v8994_v24 }
  0x5a   :  { %6975 = vmatprep.subr.bf16.mxu0 %v9012_v27 }
  0x5b   :  { %7816 = vmatpush3.bf16.msra.mxu1 %v9102_v56 }
  0x5c   :  { %7817 = vmatprep.subr.bf16.mxu1 %v12122_v37 }
  0x5d   :  { %6976 = vmatpush3.bf16.msra.mxu0 %v9018_v28 }
  0x5e   :  { %6977 = vmatprep.subr.bf16.mxu0 %v9036_v32 }
  0x5f   :  { %7818 = vmatpush3.bf16.msra.mxu1 %v9110_v57 }
  0x60   :  { %7819 = vmatprep.subr.bf16.mxu1 %v12122_v37 }
  0x61   :  { %6978 = vmatpush3.bf16.msra.mxu0 %v9046_v36 }
  0x63   :  { %7820 = vmatpush3.bf16.msra.mxu1 %v9119_v59 }
  0x64   :  { %672 = vmatmul.mubr.bf16.vlgmr.msra.gmra.mrb[8].mxu0 %v592_v2 }
  0x66   :  { %7822 = vmatmul.mubr.bf16.vlgmr.msra.gmra.mrb[8].mxu1 %v584_v3 }
  0x67   :  { %18 = vsyncpa [#allocation4], 0  ;;  %v8165_v4 = vld [vmem:[%s12106_s3 + $0x80] ss:$16 sps:$4 sm:$0xff]   ;;  %v8167_v5 = vld [vmem:[%s12106_s3 + $0x84] ss:$16 sps:$4 sm:$0xff]  }
  0x68   :  { %v8168_v6 = vld [vmem:[%s12106_s3 + $0x88] ss:$16 sps:$4 sm:$0xff]   ;;  %v8170_v7 = vld [vmem:[%s12106_s3 + $0x8c] ss:$16 sps:$4 sm:$0xff]   ;;  %v8173_v8 = vld [vmem:[%s12106_s3 + $0xa4] ss:$16 sps:$4 sm:$0xff]   ;;  %821 = vmatprep.subr.bf16.mxu0 %v8167_v5 }
  0x69   :  { %v8176_v9 = vld [vmem:[%s12106_s3 + $0xac] ss:$16 sps:$4 sm:$0xff]   ;;  %862 = vmatprep.subr.bf16.mxu1 %v8170_v7  ;;  %822 = vmatpush1.bf16.msra.mxu0 %v8165_v4  ;;  %v8171_v10 = vld [vmem:[%s12106_s3 + $0xa0] ss:$16 sps:$4 sm:$0xff]   ;;  %v8174_v11 = vld [vmem:[%s12106_s3 + $0xa8] ss:$16 sps:$4 sm:$0xff]  }
  0x6a   :  { %863 = vmatpush1.bf16.msra.mxu1 %v8168_v6  ;;  %823 = vmatprep.subr.bf16.mxu0 %v8173_v8  ;;  %v8179_v12 = vld [vmem:[%s12106_s3 + $0xc4] ss:$16 sps:$4 sm:$0xff]   ;;  %v8182_v13 = vld [vmem:[%s12106_s3 + $0xcc] ss:$16 sps:$4 sm:$0xff]   ;;  %v8177_v14 = vld [vmem:[%s12106_s3 + $0xc0] ss:$16 sps:$4 sm:$0xff]  }
  0x6b   :  { %864 = vmatprep.subr.bf16.mxu1 %v8176_v9  ;;  %v8180_v15 = vld [vmem:[%s12106_s3 + $0xc8] ss:$16 sps:$4 sm:$0xff]   ;;  %v8185_v16 = vld [vmem:[%s12106_s3 + $0xe4] ss:$16 sps:$4 sm:$0xff]   ;;  %v8188_v17 = vld [vmem:[%s12106_s3 + $0xec] ss:$16 sps:$4 sm:$0xff]  }
  0x6c   :  { %v8183_v18 = vld [vmem:[%s12106_s3 + $0xe0] ss:$16 sps:$4 sm:$0xff]   ;;  %v8186_v19 = vld [vmem:[%s12106_s3 + $0xe8] ss:$16 sps:$4 sm:$0xff]   ;;  %v8191_v20 = vld [vmem:[%s12106_s3 + $0x4] ss:$16 sps:$4 sm:$0xff]  }
  0x6d   :  { %824 = vmatpush1.bf16.msra.mxu0 %v8171_v10  ;;  %v8194_v21 = vld [vmem:[%s12106_s3 + $0xc] ss:$16 sps:$4 sm:$0xff]   ;;  %v12116_v22 = vmov 0   ;;  %v9225_v24 = vld [vmem:[%s12105_s2] ss:$0 sm:$0xff]  ;;  %vm817_vm1 = vcmask 523264  }
  0x6e   :  { %865 = vmatpush1.bf16.msra.mxu1 %v8174_v11  ;;  %825 = vmatprep.subr.bf16.mxu0 %v8179_v12  ;;  %v8189_v2 = vld [vmem:[%s12106_s3] ss:$16 sps:$4 sm:$0xff]   ;;  %v8192_v3 = vld [vmem:[%s12106_s3 + $0x8] ss:$16 sps:$4 sm:$0xff]   ;;  %v8197_v5 = vld [vmem:[%s12106_s3 + $0x24] ss:$16 sps:$4 sm:$0xff]  }
  0x6f   :  { %866 = vmatprep.subr.bf16.mxu1 %v8182_v13  ;;  %853 = vmatprep.mubr.bf16.mxu0 %v12116_v22  ;;  %v8200_v6 = vld [vmem:[%s12106_s3 + $0x2c] ss:$16 sps:$4 sm:$0xff]   ;;  %v8195_v8 = vld [vmem:[%s12106_s3 + $0x20] ss:$16 sps:$4 sm:$0xff]   ;;  %v8198_v9 = vld [vmem:[%s12106_s3 + $0x28] ss:$16 sps:$4 sm:$0xff]  }
  0x70   :  { %894 = vmatprep.mubr.bf16.mxu1 %v12116_v22  ;;  %8122 = vset.pattern.permute.xlu0 %v12116_v22  ;;  %v9246_v7 = vld [vmem:[%s12103_s0 + $0xa] sm:$0x1f]  ;;  %v8203_v10 = vld [vmem:[%s12106_s3 + $0x44] ss:$16 sps:$4 sm:$0xff]   ;;  %v8201_v13 = vld [vmem:[%s12106_s3 + $0x40] ss:$16 sps:$4 sm:$0xff]  }
  0x71   :  { %826 = vmatpush1.bf16.msra.mxu0 %v8177_v14  ;;  %v8206_v11 = vld [vmem:[%s12106_s3 + $0x4c] ss:$16 sps:$4 sm:$0xff]   ;;  %v9264_v12 = vrot.slane %v9246_v7, %v9055_v40  ;;  %v8204_v14 = vld [vmem:[%s12106_s3 + $0x48] ss:$16 sps:$4 sm:$0xff]   ;;  %vm6480_vm2 = vcmask 517120   ;;  %vm6503_vm3 = vcmask 8192  }
  0x72   :  { %867 = vmatpush1.bf16.msra.mxu1 %v8180_v15  ;;  %827 = vmatprep.subr.bf16.mxu0 %v8185_v16  ;;  %v8209_v15 = vld [vmem:[%s12106_s3 + $0x64] ss:$16 sps:$4 sm:$0xff]   ;;  %v8212_v16 = vld [vmem:[%s12106_s3 + $0x6c] ss:$16 sps:$4 sm:$0xff]  }
  0x73   :  { %868 = vmatprep.subr.bf16.mxu1 %v8188_v17  ;;  %v1085_v17 = vcombine.high %v9264_v12, %v9264_v12 }
  0x75   :  { %828 = vmatpush1.bf16.msra.mxu0 %v8183_v18  ;;  %v8207_v18 = vld [vmem:[%s12106_s3 + $0x60] ss:$16 sps:$4 sm:$0xff]  }
  0x76   :  { %869 = vmatpush1.bf16.msra.mxu1 %v8186_v19  ;;  %986 = vmatprep.subr.bf16.mxu0 %v8191_v20  ;;  %v8210_v19 = vld [vmem:[%s12106_s3 + $0x68] ss:$16 sps:$4 sm:$0xff]  }
  0x77   :  { %1027 = vmatprep.subr.bf16.mxu1 %v8194_v21  ;;  %v1106_v21 = vrot.slane %v1085_v17, %v9055_v40  ;;  %v1421_v17 = vld [vmem:[%s12103_s0 + $0xf] sm:$0x1f] }
  0xf7   :  { %v6904_v23 = vpop.f32.mrb[0].mxu0 }
  0xf8   :  { %v6905_v25 = vpop.f32.mrb[1].mxu0 }
  0xf9   :  { %v6906_v26 = vadd.f32 %v6905_v25, %v6904_v23  ;;  %v6907_v27 = vpop.f32.mrb[2].mxu0  ;;  %v6926_v28 = vpop.f32.mrb[0].mxu1  ;;  %v9290_v25 = vld [vmem:[%s12104_s1 + $0x40] sm:$0xff]  }
  0xfa   :  { %v6908_v29 = vpop.f32.mrb[3].mxu0  ;;  %v6927_v31 = vpop.f32.mrb[1].mxu1  ;;  %v1108_v27 = vcombine.high %v1106_v21, %v1106_v21 }
  0xfb   :  { %v450_v32 = vadd.f32 %v6906_v26, %v9225_v24  ;;  %v6928_v33 = vadd.f32 %v6927_v31, %v6926_v28  ;;  %v6929_v34 = vpop.f32.mrb[2].mxu1  ;;  %v9296_v26 = vld [vmem:[%s12104_s1 + $0xc0] sm:$0xff]   ;;  %v9316_v31 = vld [vmem:[%s12104_s1 + $0x48] sm:$0xff]  }
  0xfc   :  { %v6930_v36 = vpop.f32.mrb[3].mxu1  ;;  %v9304_v28 = vld [vmem:[%s12104_s1] sm:$0xff]   ;;  %v9334_v34 = vld [vmem:[%s12104_s1 + $0x88] sm:$0xff]  }
  0xfd   :  { %v490_v38 = vadd.f32 %v6928_v33, %v450_v32  ;;  %v9310_v29 = vld [vmem:[%s12104_s1 + $0x80] sm:$0xff]   ;;  %v9322_v32 = vld [vmem:[%s12104_s1 + $0xc8] sm:$0xff]   ;;  %v9340_v36 = vld [vmem:[%s12104_s1 + $0x50] sm:$0xff]  }
  0xfe   :  { %v9328_v33 = vld [vmem:[%s12104_s1 + $0x8] sm:$0xff]  }
 0x117   :  { %v529_v39 = vpop.f32.mrb[4].mxu0 }
 0x118   :  { %v530_v41 = vadd.f32 %v529_v39, %v490_v38  ;;  %v7803_v42 = vpop.f32.mrb[5].mxu0  ;;  %v9346_v38 = vld [vmem:[%s12104_s1 + $0xd0] sm:$0xff]  }
 0x119   :  { %v532_v43 = vpop.f32.mrb[6].mxu0  ;;  %v6957_v44 = vpop.f32.mrb[4].mxu1  ;;  %v9352_v39 = vld [vmem:[%s12104_s1 + $0x10] sm:$0xff]   ;;  %v9364_v42 = vld [vmem:[%s12104_s1 + $0x58] sm:$0xff]  }
 0x11a   :  { %v7804_v45 = vpop.f32.mrb[7].mxu0  ;;  %v6958_v46 = vpop.f32.mrb[5].mxu1  ;;  %v535_v20 = vmax.f32 %v530_v41, 0.0  ;;  %v9358_v41 = vld [vmem:[%s12104_s1 + $0x90] sm:$0xff]   ;;  %v9370_v43 = vld [vmem:[%s12104_s1 + $0xd8] sm:$0xff]  }
 0x11b   :  { %v6959_v47 = vadd.f32 %v6958_v46, %v6957_v44  ;;  %v6960_v48 = vpop.f32.mrb[6].mxu1  ;;  %v9376_v44 = vld [vmem:[%s12104_s1 + $0x18] sm:$0xff]   ;;  %v9388_v46 = vld [vmem:[%s12104_s1 + $0x60] sm:$0xff]  }
 0x11c   :  { %v6961_v49 = vpop.f32.mrb[7].mxu1  ;;  %v536_v23 = vpack.c.bf16 %v535_v20, %v535_v20  ;;  %v9382_v45 = vld [vmem:[%s12104_s1 + $0x98] sm:$0xff]   ;;  %v9400_v48 = vld [vmem:[%s12104_s1 + $0x20] sm:$0xff]  }
 0x11d   :  { %v634_v52 = vadd.f32 %v6959_v47, %v9225_v24  ;;  %v9394_v47 = vld [vmem:[%s12104_s1 + $0xe0] sm:$0xff]  }
 0x11e   :  { %v9406_v49 = vld [vmem:[%s12104_s1 + $0xa0] sm:$0xff]  }
 0x137   :  { %v6979_v50 = vpop.f32.mrb[8].mxu0 }
 0x138   :  { %v6980_v51 = vpop.f32.mrb[9].mxu0 }
 0x139   :  { %v6981_v53 = vadd.f32 %v6980_v51, %v6979_v50  ;;  %v6982_v54 = vpop.f32.mrb[10].mxu0  ;;  %v713_v55 = vpop.f32.mrb[8].mxu1  ;;  %v9412_v50 = vld [vmem:[%s12104_s1 + $0x68] sm:$0xff]  }
 0x13a   :  { %v6983_v58 = vpop.f32.mrb[11].mxu0  ;;  %v7823_v60 = vpop.f32.mrb[9].mxu1  ;;  %v9418_v51 = vld [vmem:[%s12104_s1 + $0xe8] sm:$0xff]   ;;  %v9436_v54 = vld [vmem:[%s12104_s1 + $0x70] sm:$0xff]  }
 0x13b   :  { %v674_v61 = vadd.f32 %v6981_v53, %v634_v52  ;;  %v716_v62 = vpop.f32.mrb[10].mxu1  ;;  %v9424_v52 = vld [vmem:[%s12104_s1 + $0x28] sm:$0xff]   ;;  %v1092_v58 = vrot.slane %v9264_v12, %v9055_v40  ;;  %v9450_v60 = vld [vmem:[%s12104_s1 + $0x30] sm:$0xff]  }
 0x13c   :  { %v7824_v63 = vpop.f32.mrb[11].mxu1  ;;  %v9430_v53 = vld [vmem:[%s12104_s1 + $0xa8] sm:$0xff]   ;;  %12140 = vst [vmem:[#allocation7_spill] sm:$0xff] %v9450_v60  ;;  %v9462_v62 = vld [vmem:[%s12104_s1 + $0x78] sm:$0xff]   ;;  %v8222_v12 = vld [vmem:[%s12106_s3 + $0x144] ss:$16 sps:$4 sm:$0xff]  }
 0x13d   :  { %v714_v0 = vadd.f32 %v713_v55, %v674_v61  ;;  %v9442_v55 = vld [vmem:[%s12104_s1 + $0xf0] sm:$0xff]   ;;  %12141 = vst [vmem:[#allocation8_spill] sm:$0xff] %v9462_v62  ;;  %v9468_v63 = vld [vmem:[%s12104_s1 + $0xf8] sm:$0xff]  }
 0x13e   :  { %v9456_v61 = vld [vmem:[%s12104_s1 + $0xb0] sm:$0xff]  }
 0x13f   :  { %v719_v1 = vmax.f32 %v714_v0, 0.0  ;;  %v1107_v0 = vcombine.high %v1092_v58, %v1092_v58 }
 0x141   :  { %v720_v4 = vpack.c.bf16 %v719_v1, %v719_v1  ;;  %v9474_v1 = vld [vmem:[%s12104_s1 + $0x38] sm:$0xff]  }
 0x142   :  { %12142 = vst [vmem:[#allocation9_spill] sm:$0xff] %v9474_v1 }
 0x143   :  { %6576 = vmatmul.mubr.msk.bf16.vlgmr.msra.gmra.mrb[12].mxu0 %vm817_vm1, %v720_v4  ;;  %6577 = vmatmul.mubr.msk.bf16.vlgmr.msra.gmra.mrb[12].mxu1 %vm817_vm1, %v720_v4  ;;  %v9497_v4 = vld [vmem:[%s12104_s1 + $0x108] sm:$0xff]  }
 0x144   :  { %987 = vmatpush1.bf16.msra.mxu0 %v8189_v2  ;;  %1028 = vmatpush1.bf16.msra.mxu1 %v8192_v3  ;;  %v9480_v2 = vld [vmem:[%s12104_s1 + $0xb8] sm:$0xff]   ;;  %v9487_v3 = vld [vmem:[%s12104_s1 + $0x100] sm:$0xff]  }
 0x145   :  { %988 = vmatprep.subr.bf16.mxu0 %v8197_v5  ;;  %1029 = vmatprep.subr.bf16.mxu1 %v8200_v6  ;;  %v9504_v5 = vld [vmem:[%s12104_s1 + $0x110] sm:$0xff]   ;;  %v9511_v6 = vld [vmem:[%s12104_s1 + $0x118] sm:$0xff]  }
 0x146   :  { %1018 = vmatprep.mubr.bf16.mxu0 %v12116_v22  ;;  %1059 = vmatprep.mubr.bf16.mxu1 %v12116_v22 }
 0x148   :  { %989 = vmatpush1.bf16.msra.mxu0 %v8195_v8  ;;  %1030 = vmatpush1.bf16.msra.mxu1 %v8198_v9  ;;  %v9518_v8 = vld [vmem:[%s12104_s1 + $0x120] sm:$0xff]   ;;  %v1070_v9 = vcombine.high %v9246_v7, %v9246_v7 }
 0x149   :  { %990 = vmatprep.subr.bf16.mxu0 %v8203_v10  ;;  %1031 = vmatprep.subr.bf16.mxu1 %v8206_v11  ;;  %v8217_v7 = vld [vmem:[%s12106_s3 + $0x120] ss:$16 sps:$4 sm:$0xff]  }
 0x14a   :  { %v1084_v10 = vrot.slane %v1070_v9, %v9055_v40 }
 0x14c   :  { %991 = vmatpush1.bf16.msra.mxu0 %v8201_v13  ;;  %1032 = vmatpush1.bf16.msra.mxu1 %v8204_v14  ;;  %v1099_v11 = vrot.slane %v1084_v10, %v9055_v40  ;;  %v8220_v13 = vld [vmem:[%s12106_s3 + $0x140] ss:$16 sps:$4 sm:$0xff]   ;;  %v8225_v14 = vld [vmem:[%s12106_s3 + $0x164] ss:$16 sps:$4 sm:$0xff]   ;;  %v1423_v10 = vcombine.high %v1421_v17, %v1421_v17 }
 0x14d   :  { %992 = vmatprep.subr.bf16.mxu0 %v8209_v15  ;;  %1033 = vmatprep.subr.bf16.mxu1 %v8212_v16  ;;  %v8223_v15 = vld [vmem:[%s12106_s3 + $0x160] ss:$16 sps:$4 sm:$0xff]   ;;  %v8228_v16 = vld [vmem:[%s12106_s3 + $0x10c] ss:$16 sps:$4 sm:$0xff]  }
 0x150   :  { %993 = vmatpush1.bf16.msra.mxu0 %v8207_v18  ;;  %1034 = vmatpush1.bf16.msra.mxu1 %v8210_v19  ;;  %v1430_v18 = vrot.slane %v1421_v17, %v9055_v40 }
 0x151   :  { %6994 = vmatprep.subr.bf16.mxu0 %v9290_v25  ;;  %7016 = vmatprep.subr.bf16.mxu1 %v9296_v26 }
 0x152   :  { %v1438_v19 = vcombine.high %v1430_v18, %v1430_v18 }
 0x153   :  { %6594 = vmatmul.mubr.msk.bf16.vlgmr.msra.gmra.mrb[16].mxu0 %vm817_vm1, %v536_v23  ;;  %6595 = vmatmul.mubr.msk.bf16.vlgmr.msra.gmra.mrb[16].mxu1 %vm817_vm1, %v536_v23  ;;  %v9602_v23 = vld [vmem:[%s12104_s1 + $0x128] sm:$0xff]  }
 0x154   :  { %6995 = vmatpush3.bf16.msra.mxu0 %v9304_v28  ;;  %7017 = vmatpush3.bf16.msra.mxu1 %v9310_v29  ;;  %v9580_v20 = vrot.slane %v1438_v19, %v9055_v40 }
 0x155   :  { %6996 = vmatprep.subr.bf16.mxu0 %v9316_v31  ;;  %7018 = vmatprep.subr.bf16.mxu1 %v9322_v32 }
 0x156   :  { %1146 = vmatprep.mubr.bf16.mxu0 %v1106_v21  ;;  %1186 = vmatprep.mubr.bf16.mxu1 %v1108_v27  ;;  %v9583_v21 = vrot.slane %v1430_v18, %v9055_v40 }
 0x158   :  { %6997 = vmatpush3.bf16.msra.mxu0 %v9328_v33  ;;  %7019 = vmatpush3.bf16.msra.mxu1 %v9334_v34 }
 0x159   :  { %6998 = vmatprep.subr.bf16.mxu0 %v9340_v36  ;;  %7020 = vmatprep.subr.bf16.mxu1 %v9346_v38 }
 0x15c   :  { %6999 = vmatpush3.bf16.msra.mxu0 %v9352_v39  ;;  %7021 = vmatpush3.bf16.msra.mxu1 %v9358_v41 }
 0x15d   :  { %7000 = vmatprep.subr.bf16.mxu0 %v9364_v42  ;;  %7022 = vmatprep.subr.bf16.mxu1 %v9370_v43 }
 0x160   :  { %7001 = vmatpush3.bf16.msra.mxu0 %v9376_v44  ;;  %7023 = vmatpush3.bf16.msra.mxu1 %v9382_v45 }
 0x161   :  { %7002 = vmatprep.subr.bf16.mxu0 %v9388_v46  ;;  %7024 = vmatprep.subr.bf16.mxu1 %v9394_v47 }
 0x164   :  { %7003 = vmatpush3.bf16.msra.mxu0 %v9400_v48  ;;  %7025 = vmatpush3.bf16.msra.mxu1 %v9406_v49 }
 0x165   :  { %7004 = vmatprep.subr.bf16.mxu0 %v9412_v50  ;;  %7026 = vmatprep.subr.bf16.mxu1 %v9418_v51 }
 0x168   :  { %7005 = vmatpush3.bf16.msra.mxu0 %v9424_v52  ;;  %7027 = vmatpush3.bf16.msra.mxu1 %v9430_v53 }
 0x169   :  { %7006 = vmatprep.subr.bf16.mxu0 %v9436_v54  ;;  %7028 = vmatprep.subr.bf16.mxu1 %v9442_v55 }
 0x16c   :  { %7007 = vmatpush3.bf16.msra.mxu0 %v9450_v60  ;;  %7029 = vmatpush3.bf16.msra.mxu1 %v9456_v61 }
 0x16d   :  { %7008 = vmatprep.subr.bf16.mxu0 %v9462_v62  ;;  %7030 = vmatprep.subr.bf16.mxu1 %v9468_v63 }
 0x170   :  { %7009 = vmatpush3.bf16.msra.mxu0 %v9474_v1  ;;  %7031 = vmatpush3.bf16.msra.mxu1 %v9480_v2 }
 0x171   :  { %7825 = vmatprep.subr.bf16.mxu0 %v12122_v37 }
 0x173   :  { %1147 = vmatmul.mubr.bf16.vlgmr.msra.gmra.mrb[20].mxu0 %v1092_v58  ;;  %1187 = vmatmul.mubr.bf16.vlgmr.msra.gmra.mrb[20].mxu1 %v1107_v0 }
 0x174   :  { %7826 = vmatpush3.bf16.msra.mxu0 %v9487_v3  ;;  %7841 = vmatprep.mubr.msk.bf16.mxu0 %vm8788_vm0, %v12122_v37 }
 0x175   :  { %7827 = vmatprep.subr.bf16.mxu0 %v12122_v37  ;;  %1367 = vmatprep.mubr.bf16.mxu1 %v12116_v22 }
 0x178   :  { %7828 = vmatpush3.bf16.msra.mxu0 %v9497_v4 }
 0x179   :  { %7829 = vmatprep.subr.bf16.mxu0 %v12122_v37 }
 0x17c   :  { %7830 = vmatpush3.bf16.msra.mxu0 %v9504_v5 }
 0x17d   :  { %7831 = vmatprep.subr.bf16.mxu0 %v12122_v37 }
 0x180   :  { %7832 = vmatpush3.bf16.msra.mxu0 %v9511_v6 }
 0x181   :  { %7833 = vmatprep.subr.bf16.mxu0 %v12122_v37 }
 0x184   :  { %7834 = vmatpush3.bf16.msra.mxu0 %v9518_v8 }
 0x185   :  { %7835 = vmatprep.subr.bf16.mxu0 %v12122_v37 }
 0x188   :  { %7836 = vmatpush3.bf16.msra.mxu0 %v9102_v56  ;;  %v8214_v56 = vld [vmem:[%s12106_s3 + $0x100] ss:$16 sps:$4 sm:$0xff]  }
 0x189   :  { %7837 = vmatprep.subr.bf16.mxu0 %v12122_v37 }
 0x18c   :  { %7838 = vmatpush3.bf16.msra.mxu0 %v9110_v57  ;;  %v8216_v57 = vld [vmem:[%s12106_s3 + $0x104] ss:$16 sps:$4 sm:$0xff]  }
 0x18d   :  { %7839 = vmatprep.subr.bf16.mxu0 %v12122_v37  ;;  %1335 = vmatprep.subr.bf16.mxu1 %v8216_v57 }
 0x18e   :  { %1336 = vmatpush1.bf16.msra.mxu1 %v8214_v56 }
 0x190   :  { %7840 = vmatpush3.bf16.msra.mxu0 %v9119_v59  ;;  %v8219_v59 = vld [vmem:[%s12106_s3 + $0x124] ss:$16 sps:$4 sm:$0xff]  }
 0x191   :  { %7047 = vmatprep.subr.bf16.mxu0 %v9290_v25  ;;  %1337 = vmatprep.subr.bf16.mxu1 %v8219_v59 }
 0x192   :  { %1338 = vmatpush1.bf16.msra.mxu1 %v8217_v7  ;;  %v9609_v7 = vld [vmem:[%s12104_s1 + $0x130] sm:$0xff]  }
 0x193   :  { %7842 = vmatmul.mubr.bf16.vlgmr.msra.gmra.mrb[24].mxu0 %v1099_v11  ;;  %1339 = vmatprep.subr.bf16.mxu1 %v8222_v12  ;;  %v1437_v12 = vrot.slane %v1423_v10, %v9055_v40 }
 0x194   :  { %7048 = vmatpush3.bf16.msra.mxu0 %v9304_v28  ;;  %1499 = vmatprep.mubr.bf16.mxu0 %v9580_v20 }
 0x195   :  { %7049 = vmatprep.subr.bf16.mxu0 %v9316_v31 }
 0x196   :  { %1340 = vmatpush1.bf16.msra.mxu1 %v8220_v13  ;;  %v9617_v13 = vld [vmem:[%s12104_s1 + $0x138] sm:$0xff]  }
 0x197   :  { %1341 = vmatprep.subr.bf16.mxu1 %v8225_v14  ;;  %v1452_v14 = vrot.slane %v1437_v12, %v9055_v40 }
 0x198   :  { %7050 = vmatpush3.bf16.msra.mxu0 %v9328_v33 }
 0x199   :  { %7051 = vmatprep.subr.bf16.mxu0 %v9340_v36 }
 0x19a   :  { %1342 = vmatpush1.bf16.msra.mxu1 %v8223_v15 }
 0x19b   :  { %1376 = vmatprep.subr.bf16.mxu1 %v8228_v16 }
 0x19c   :  { %7052 = vmatpush3.bf16.msra.mxu0 %v9352_v39 }
 0x19d   :  { %7053 = vmatprep.subr.bf16.mxu0 %v9364_v42 }
 0x1a0   :  { %7054 = vmatpush3.bf16.msra.mxu0 %v9376_v44 }
 0x1a1   :  { %7055 = vmatprep.subr.bf16.mxu0 %v9388_v46 }
 0x1a4   :  { %7056 = vmatpush3.bf16.msra.mxu0 %v9400_v48 }
 0x1a5   :  { %7057 = vmatprep.subr.bf16.mxu0 %v9412_v50 }
 0x1a8   :  { %7058 = vmatpush3.bf16.msra.mxu0 %v9424_v52 }
 0x1a9   :  { %7059 = vmatprep.subr.bf16.mxu0 %v9436_v54 }
 0x1ac   :  { %7060 = vmatpush3.bf16.msra.mxu0 %v9450_v60 }
 0x1ad   :  { %7061 = vmatprep.subr.bf16.mxu0 %v9462_v62 }
 0x1b0   :  { %7062 = vmatpush3.bf16.msra.mxu0 %v9474_v1 }
 0x1b1   :  { %7845 = vmatprep.subr.bf16.mxu0 %v12122_v37 }
 0x1b3   :  { %1500 = vmatmul.mubr.bf16.vlgmr.msra.gmra.mrb[28].mxu0 %v9583_v21 }
 0x1b4   :  { %7846 = vmatpush3.bf16.msra.mxu0 %v9487_v3  ;;  %7861 = vmatprep.mubr.msk.bf16.mxu0 %vm8788_vm0, %v12122_v37 }
 0x1b5   :  { %7847 = vmatprep.subr.bf16.mxu0 %v12122_v37 }
 0x1b8   :  { %7848 = vmatpush3.bf16.msra.mxu0 %v9497_v4 }
 0x1b9   :  { %7849 = vmatprep.subr.bf16.mxu0 %v12122_v37 }
 0x1bc   :  { %7850 = vmatpush3.bf16.msra.mxu0 %v9504_v5 }
 0x1bd   :  { %7851 = vmatprep.subr.bf16.mxu0 %v12122_v37 }
 0x1c0   :  { %7852 = vmatpush3.bf16.msra.mxu0 %v9511_v6 }
 0x1c1   :  { %7853 = vmatprep.subr.bf16.mxu0 %v12122_v37 }
 0x1c4   :  { %7854 = vmatpush3.bf16.msra.mxu0 %v9518_v8 }
 0x1c5   :  { %7855 = vmatprep.subr.bf16.mxu0 %v12122_v37 }
 0x1c8   :  { %7856 = vmatpush3.bf16.msra.mxu0 %v9602_v23 }
 0x1c9   :  { %7857 = vmatprep.subr.bf16.mxu0 %v12122_v37 }
 0x1cc   :  { %7858 = vmatpush3.bf16.msra.mxu0 %v9609_v7 }
 0x1cd   :  { %7859 = vmatprep.subr.bf16.mxu0 %v12122_v37 }
 0x1d0   :  { %7860 = vmatpush3.bf16.msra.mxu0 %v9617_v13 }
 0x1d1   :  { %7100 = vmatprep.subr.bf16.mxu0 %v9290_v25 }
 0x1d3   :  { %7862 = vmatmul.mubr.bf16.vlgmr.msra.gmra.mrb[32].mxu0 %v1452_v14 }
 0x1d4   :  { %7101 = vmatpush3.bf16.msra.mxu0 %v9304_v28 }
 0x1d5   :  { %7102 = vmatprep.subr.bf16.mxu0 %v9316_v31 }
 0x1d8   :  { %7103 = vmatpush3.bf16.msra.mxu0 %v9328_v33 }
 0x1d9   :  { %7104 = vmatprep.subr.bf16.mxu0 %v9340_v36 }
 0x1dc   :  { %7105 = vmatpush3.bf16.msra.mxu0 %v9352_v39 }
 0x1dd   :  { %7106 = vmatprep.subr.bf16.mxu0 %v9364_v42 }
 0x1e0   :  { %7107 = vmatpush3.bf16.msra.mxu0 %v9376_v44 }
 0x1e1   :  { %7108 = vmatprep.subr.bf16.mxu0 %v9388_v46 }
 0x1e4   :  { %7109 = vmatpush3.bf16.msra.mxu0 %v9400_v48 }
 0x1e5   :  { %7110 = vmatprep.subr.bf16.mxu0 %v9412_v50 }
 0x1e8   :  { %7111 = vmatpush3.bf16.msra.mxu0 %v9424_v52 }
 0x1e9   :  { %7112 = vmatprep.subr.bf16.mxu0 %v9436_v54 }
 0x1ec   :  { %7113 = vmatpush3.bf16.msra.mxu0 %v9450_v60 }
 0x1ed   :  { %7114 = vmatprep.subr.bf16.mxu0 %v9462_v62 }
 0x1f0   :  { %7115 = vmatpush3.bf16.msra.mxu0 %v9474_v1 }
 0x1f1   :  { %7865 = vmatprep.subr.bf16.mxu0 %v12122_v37  ;;  %v8226_v37 = vld [vmem:[%s12106_s3 + $0x108] ss:$16 sps:$4 sm:$0xff]  }
 0x216   :  { %v855_v27 = vpop.f32.mrb[12].mxu0  ;;  %v896_v58 = vpop.f32.mrb[12].mxu1 }
 0x217   :  { %v857_v0 = vpop.f32.mrb[13].mxu0  ;;  %v898_v9 = vpop.f32.mrb[13].mxu1 }
 0x218   :  { %v859_v11 = vpop.f32.mrb[14].mxu0  ;;  %v900_v56 = vpop.f32.mrb[14].mxu1 }
 0x219   :  { %v860_v57 = vpop.f32.mrb[15].mxu0  ;;  %v901_v59 = vpop.f32.mrb[15].mxu1 }
 0x226   :  { %v1020_v15 = vpop.f32.mrb[16].mxu0  ;;  %v1061_v16 = vpop.f32.mrb[16].mxu1 }
 0x227   :  { %v9626_v17 = vadd.f32 %v1020_v15, %v855_v27  ;;  %v9628_v18 = vadd.f32 %v1061_v16, %v896_v58  ;;  %v1022_v19 = vpop.f32.mrb[17].mxu0  ;;  %v1063_v10 = vpop.f32.mrb[17].mxu1 }
 0x228   :  { %v9630_v11 = vadd.f32 %v1022_v19, %v857_v0  ;;  %v9632_v56 = vadd.f32 %v1063_v10, %v898_v9  ;;  %v1024_v57 = vpop.f32.mrb[18].mxu0  ;;  %v1065_v59 = vpop.f32.mrb[18].mxu1 }
 0x229   :  { %12143 = vst [vmem:[#allocation10_spill] sm:$0xff] %v9628_v18  ;;  %v1025_v12 = vpop.f32.mrb[19].mxu0  ;;  %v1066_v14 = vpop.f32.mrb[19].mxu1 }
 0x22a   :  { %12144 = vst [vmem:[#allocation11_spill] sm:$0xff] %v9632_v56 }
 0x246   :  { %v7010_v27 = vpop.f32.mrb[20].mxu0  ;;  %v7032_v58 = vpop.f32.mrb[20].mxu1 }
 0x247   :  { %v7011_v0 = vpop.f32.mrb[21].mxu0  ;;  %v7033_v9 = vpop.f32.mrb[21].mxu1 }
 0x248   :  { %v7012_v15 = vadd.f32 %v7011_v0, %v7010_v27  ;;  %v7013_v16 = vpop.f32.mrb[22].mxu0  ;;  %v7034_v19 = vadd.f32 %v7033_v9, %v7032_v58  ;;  %v7035_v10 = vpop.f32.mrb[22].mxu1  ;;  %v8231_v27 = vld [vmem:[%s12106_s3 + $0x12c] ss:$16 sps:$4 sm:$0xff]   ;;  %v8239_v58 = vld [vmem:[%s12106_s3 + $0x180] ss:$16 sps:$4 sm:$0xff]  }
 0x249   :  { %v7014_v57 = vpop.f32.mrb[23].mxu0  ;;  %v7036_v59 = vpop.f32.mrb[23].mxu1  ;;  %v8241_v0 = vld [vmem:[%s12106_s3 + $0x184] ss:$16 sps:$4 sm:$0xff]   ;;  %v8242_v10 = vld [vmem:[%s12106_s3 + $0x1a0] ss:$16 sps:$4 sm:$0xff]  }
 0x24a   :  { %v1149_v12 = vadd.f32 %v7012_v15, %v9225_v24  ;;  %v8244_v15 = vld [vmem:[%s12106_s3 + $0x1a4] ss:$16 sps:$4 sm:$0xff]   ;;  %v8245_v59 = vld [vmem:[%s12106_s3 + $0x1c0] ss:$16 sps:$4 sm:$0xff]  }
 0x24b   :  { %v8247_v57 = vld [vmem:[%s12106_s3 + $0x1c4] ss:$16 sps:$4 sm:$0xff]  }
 0x24c   :  { %v1189_v14 = vadd.f32 %v7034_v19, %v1149_v12 }
 0x266   :  { %v1228_v30 = vpop.f32.mrb[24].mxu0 }
 0x267   :  { %v1229_v22 = vadd.f32 %v1228_v30, %v1189_v14  ;;  %v7843_v35 = vpop.f32.mrb[25].mxu0  ;;  %v8229_v30 = vld [vmem:[%s12106_s3 + $0x128] ss:$16 sps:$4 sm:$0xff]  }
 0x268   :  { %v1231_v56 = vpop.f32.mrb[26].mxu0  ;;  %v12145_v35 = vmov 0  }
 0x269   :  { %v1234_v18 = vmax.f32 %v1229_v22, 0.0  ;;  %v7844_v1 = vpop.f32.mrb[27].mxu0  ;;  %v8234_v22 = vld [vmem:[%s12106_s3 + $0x14c] ss:$16 sps:$4 sm:$0xff]   ;;  %v1461_v56 = vcombine.high %v9580_v20, %v9580_v20 }
 0x26a   :  { %v8232_v1 = vld [vmem:[%s12106_s3 + $0x148] ss:$16 sps:$4 sm:$0xff]  }
 0x26b   :  { %v1235_v62 = vpack.c.bf16 %v1234_v18, %v1234_v18  ;;  %v8235_v18 = vld [vmem:[%s12106_s3 + $0x168] ss:$16 sps:$4 sm:$0xff]  }
 0x26d   :  { %6612 = vmatmul.mubr.msk.bf16.vlgmr.msra.gmra.mrb[24].mxu1 %vm817_vm1, %v1235_v62 }
 0x26e   :  { %1377 = vmatpush1.bf16.msra.mxu1 %v8226_v37  ;;  %1408 = vmatprep.mubr.bf16.mxu1 %v12145_v35  ;;  %v8237_v37 = vld [vmem:[%s12106_s3 + $0x16c] ss:$16 sps:$4 sm:$0xff]  }
 0x26f   :  { %1378 = vmatprep.subr.bf16.mxu1 %v8231_v27 }
 0x272   :  { %1379 = vmatpush1.bf16.msra.mxu1 %v8229_v30  ;;  %v8250_v30 = vld [vmem:[%s12106_s3 + $0x1e4] ss:$16 sps:$4 sm:$0xff]  }
 0x273   :  { %1380 = vmatprep.subr.bf16.mxu1 %v8234_v22 }
 0x276   :  { %1381 = vmatpush1.bf16.msra.mxu1 %v8232_v1  ;;  %v8248_v1 = vld [vmem:[%s12106_s3 + $0x1e0] ss:$16 sps:$4 sm:$0xff]  }
 0x277   :  { %1382 = vmatprep.subr.bf16.mxu1 %v8237_v37  ;;  %v8253_v37 = vld [vmem:[%s12106_s3 + $0x18c] ss:$16 sps:$4 sm:$0xff]  }
 0x27a   :  { %1383 = vmatpush1.bf16.msra.mxu1 %v8235_v18  ;;  %v1774_v18 = vld [vmem:[%s12103_s0 + $0x14] sm:$0x1f] }
 0x27b   :  { %7069 = vmatprep.subr.bf16.mxu1 %v9296_v26 }
 0x27d   :  { %6613 = vmatmul.mubr.msk.bf16.vlgmr.msra.gmra.mrb[28].mxu1 %vm817_vm1, %v1235_v62  ;;  %v1460_v62 = vcombine.high %v9583_v21, %v9583_v21 }
 0x27e   :  { %7070 = vmatpush3.bf16.msra.mxu1 %v9310_v29  ;;  %1539 = vmatprep.mubr.bf16.mxu1 %v1461_v56  ;;  %v1783_v56 = vrot.slane %v1774_v18, %v9055_v40 }
 0x27f   :  { %7071 = vmatprep.subr.bf16.mxu1 %v9322_v32 }
 0x282   :  { %7072 = vmatpush3.bf16.msra.mxu1 %v9334_v34 }
 0x283   :  { %7073 = vmatprep.subr.bf16.mxu1 %v9346_v38 }
 0x286   :  { %7074 = vmatpush3.bf16.msra.mxu1 %v9358_v41  ;;  %v7063_v20 = vpop.f32.mrb[28].mxu0 }
 0x287   :  { %7075 = vmatprep.subr.bf16.mxu1 %v9370_v43  ;;  %v7064_v9 = vpop.f32.mrb[29].mxu0 }
 0x288   :  { %v9701_v21 = vadd.f32 %v7064_v9, %v7063_v20  ;;  %v7066_v16 = vpop.f32.mrb[30].mxu0  ;;  %v1776_v9 = vcombine.high %v1774_v18, %v1774_v18  ;;  %v12150_v18 = vld [vmem:[#allocation11_spill] sm:$0xff] }
 0x289   :  { %v7067_v19 = vpop.f32.mrb[31].mxu0 }
 0x28a   :  { %7076 = vmatpush3.bf16.msra.mxu1 %v9382_v45 }
 0x28b   :  { %7077 = vmatprep.subr.bf16.mxu1 %v9394_v47 }
 0x28e   :  { %7078 = vmatpush3.bf16.msra.mxu1 %v9406_v49 }
 0x28f   :  { %7079 = vmatprep.subr.bf16.mxu1 %v9418_v51 }
 0x292   :  { %7080 = vmatpush3.bf16.msra.mxu1 %v9430_v53 }
 0x293   :  { %7081 = vmatprep.subr.bf16.mxu1 %v9442_v55 }
 0x296   :  { %7082 = vmatpush3.bf16.msra.mxu1 %v9456_v61 }
 0x297   :  { %7083 = vmatprep.subr.bf16.mxu1 %v9468_v63 }
 0x29a   :  { %7084 = vmatpush3.bf16.msra.mxu1 %v9480_v2 }
 0x29b   :  { %1688 = vmatprep.subr.bf16.mxu1 %v8241_v0  ;;  %v12146_v0 = vmov 0.0  }
 0x29d   :  { %1540 = vmatmul.mubr.bf16.vlgmr.msra.gmra.mrb[32].mxu1 %v1460_v62  ;;  %v1791_v62 = vcombine.high %v1783_v56, %v1783_v56 }
 0x29e   :  { %1720 = vmatprep.mubr.bf16.mxu1 %v12145_v35  ;;  %1689 = vmatpush1.bf16.msra.mxu1 %v8239_v58  ;;  %v9731_v58 = vrot.slane %v1783_v56, %v9055_v40 }
 0x29f   :  { %1690 = vmatprep.subr.bf16.mxu1 %v8244_v15  ;;  %v9728_v20 = vrot.slane %v1791_v62, %v9055_v40  ;;  %v1790_v15 = vrot.slane %v1776_v9, %v9055_v40 }
 0x2a1   :  { %1852 = vmatprep.mubr.bf16.mxu0 %v9728_v20  ;;  %v1805_v16 = vrot.slane %v1790_v15, %v9055_v40 }
 0x2a2   :  { %1691 = vmatpush1.bf16.msra.mxu1 %v8242_v10  ;;  %1853 = vmatmul.mubr.bf16.vlgmr.msra.gmra.mrb[36].mxu0 %v9731_v58 }
 0x2a3   :  { %1692 = vmatprep.subr.bf16.mxu1 %v8247_v57  ;;  %7866 = vmatpush3.bf16.msra.mxu0 %v9487_v3 }
 0x2a4   :  { %7881 = vmatprep.mubr.msk.bf16.mxu0 %vm8788_vm0, %v12146_v0  ;;  %7867 = vmatprep.subr.bf16.mxu0 %v12146_v0 }
 0x2a6   :  { %v9712_v12 = vpop.f32.mrb[32].mxu0  ;;  %1693 = vmatpush1.bf16.msra.mxu1 %v8245_v59 }
 0x2a7   :  { %v7863_v14 = vpop.f32.mrb[33].mxu0  ;;  %1694 = vmatprep.subr.bf16.mxu1 %v8250_v30  ;;  %7868 = vmatpush3.bf16.msra.mxu0 %v9497_v4  ;;  %v12147_v30 = vld [vmem:[#allocation8_spill] sm:$0xff] }
 0x2a8   :  { %v1584_v27 = vpop.f32.mrb[34].mxu0  ;;  %7869 = vmatprep.subr.bf16.mxu0 %v12146_v0 }
 0x2a9   :  { %v7864_v22 = vpop.f32.mrb[35].mxu0 }
 0x2aa   :  { %1695 = vmatpush1.bf16.msra.mxu1 %v8248_v1  ;;  %v12148_v22 = vld [vmem:[#allocation9_spill] sm:$0xff]  ;;  %v12149_v1 = vld [vmem:[#allocation10_spill] sm:$0xff] }
 0x2ab   :  { %1729 = vmatprep.subr.bf16.mxu1 %v8253_v37  ;;  %7870 = vmatpush3.bf16.msra.mxu0 %v9504_v5 }
 0x2ac   :  { %7871 = vmatprep.subr.bf16.mxu0 %v12146_v0 }
 0x2af   :  { %7872 = vmatpush3.bf16.msra.mxu0 %v9511_v6 }
 0x2b0   :  { %7873 = vmatprep.subr.bf16.mxu0 %v12146_v0 }
 0x2b3   :  { %7874 = vmatpush3.bf16.msra.mxu0 %v9518_v8 }
 0x2b4   :  { %7875 = vmatprep.subr.bf16.mxu0 %v12146_v0 }
 0x2b7   :  { %7876 = vmatpush3.bf16.msra.mxu0 %v9602_v23 }
 0x2b8   :  { %7877 = vmatprep.subr.bf16.mxu0 %v12146_v0 }
 0x2bb   :  { %7878 = vmatpush3.bf16.msra.mxu0 %v9609_v7 }
 0x2bc   :  { %7879 = vmatprep.subr.bf16.mxu0 %v12146_v0 }
 0x2bf   :  { %7880 = vmatpush3.bf16.msra.mxu0 %v9617_v13 }
 0x2c0   :  { %7153 = vmatprep.subr.bf16.mxu0 %v9290_v25 }
 0x2c2   :  { %7882 = vmatmul.mubr.bf16.vlgmr.msra.gmra.mrb[40].mxu0 %v1805_v16 }
 0x2c3   :  { %7154 = vmatpush3.bf16.msra.mxu0 %v9304_v28 }
 0x2c4   :  { %7155 = vmatprep.subr.bf16.mxu0 %v9316_v31 }
 0x2c7   :  { %7156 = vmatpush3.bf16.msra.mxu0 %v9328_v33 }
 0x2c8   :  { %7157 = vmatprep.subr.bf16.mxu0 %v9340_v36 }
 0x2cb   :  { %7158 = vmatpush3.bf16.msra.mxu0 %v9352_v39 }
 0x2cc   :  { %7159 = vmatprep.subr.bf16.mxu0 %v9364_v42 }
 0x2cf   :  { %7160 = vmatpush3.bf16.msra.mxu0 %v9376_v44 }
 0x2d0   :  { %7161 = vmatprep.subr.bf16.mxu0 %v9388_v46 }
 0x2d3   :  { %7162 = vmatpush3.bf16.msra.mxu0 %v9400_v48 }
 0x2d4   :  { %7163 = vmatprep.subr.bf16.mxu0 %v9412_v50 }
 0x2d7   :  { %7164 = vmatpush3.bf16.msra.mxu0 %v9424_v52 }
 0x2d8   :  { %7165 = vmatprep.subr.bf16.mxu0 %v9436_v54 }
 0x2db   :  { %7166 = vmatpush3.bf16.msra.mxu0 %v9450_v60 }
 0x2dc   :  { %7167 = vmatprep.subr.bf16.mxu0 %v12147_v30 }
 0x2df   :  { %7168 = vmatpush3.bf16.msra.mxu0 %v12148_v22 }
 0x2e0   :  { %7885 = vmatprep.subr.bf16.mxu0 %v12146_v0 }
 0x340   :  { %v1369_v19 = vpop.f32.mrb[24].mxu1 }
 0x341   :  { %v9765_v10 = vadd.f32 %v1369_v19, %v9626_v17  ;;  %v1371_v57 = vpop.f32.mrb[25].mxu1  ;;  %v1502_v19 = vadd.f32 %v9701_v21, %v9225_v24  ;;  %v8254_v21 = vld [vmem:[%s12106_s3 + $0x1a8] ss:$16 sps:$4 sm:$0xff]  }
 0x342   :  { %v9769_v59 = vadd.f32 %v1371_v57, %v9630_v11  ;;  %v1373_v14 = vpop.f32.mrb[26].mxu1 }
 0x343   :  { %v1374_v27 = vpop.f32.mrb[27].mxu1 }
 0x350   :  { %v1410_v17 = vpop.f32.mrb[28].mxu1 }
 0x351   :  { %v9778_v37 = vadd.f32 %v1410_v17, %v12149_v1  ;;  %v1412_v11 = vpop.f32.mrb[29].mxu1  ;;  %v8251_v17 = vld [vmem:[%s12106_s3 + $0x188] ss:$16 sps:$4 sm:$0xff]  }
 0x352   :  { %v9781_v56 = vadd.f32 %v1412_v11, %v12150_v18  ;;  %v1414_v62 = vpop.f32.mrb[30].mxu1  ;;  %v8256_v11 = vld [vmem:[%s12106_s3 + $0x1ac] ss:$16 sps:$4 sm:$0xff]   ;;  %v1814_v18 = vcombine.high %v9728_v20, %v9728_v20  ;;  %v1813_v20 = vcombine.high %v9731_v58, %v9731_v58 }
 0x353   :  { %v1415_v9 = vpop.f32.mrb[31].mxu1 }
 0x354   :  { %v8264_v9 = vld [vmem:[%s12106_s3 + $0x200] ss:$16 sps:$4 sm:$0xff]  }
 0x370   :  { %v7085_v15 = vpop.f32.mrb[32].mxu1 }
 0x371   :  { %v7086_v16 = vpop.f32.mrb[33].mxu1 }
 0x372   :  { %v7087_v57 = vadd.f32 %v7086_v16, %v7085_v15  ;;  %v7088_v14 = vpop.f32.mrb[34].mxu1  ;;  %v8266_v15 = vld [vmem:[%s12106_s3 + $0x204] ss:$16 sps:$4 sm:$0xff]  }
 0x373   :  { %v7089_v27 = vpop.f32.mrb[35].mxu1 }
 0x374   :  { %v1542_v22 = vadd.f32 %v7087_v57, %v1502_v19  ;;  %v8269_v19 = vld [vmem:[%s12106_s3 + $0x224] ss:$16 sps:$4 sm:$0xff]   ;;  %v8267_v27 = vld [vmem:[%s12106_s3 + $0x220] ss:$16 sps:$4 sm:$0xff]  }
 0x375   :  { %v7116_v62 = vpop.f32.mrb[36].mxu0 }
 0x376   :  { %v1582_v30 = vadd.f32 %v9712_v12, %v1542_v22  ;;  %v8259_v12 = vld [vmem:[%s12106_s3 + $0x1cc] ss:$16 sps:$4 sm:$0xff]   ;;  %v8260_v22 = vld [vmem:[%s12106_s3 + $0x1e8] ss:$16 sps:$4 sm:$0xff]   ;;  %v7117_v16 = vpop.f32.mrb[37].mxu0 }
 0x377   :  { %v9840_v58 = vadd.f32 %v7117_v16, %v7116_v62  ;;  %v7119_v57 = vpop.f32.mrb[38].mxu0 }
 0x378   :  { %v1587_v60 = vmax.f32 %v1582_v30, 0.0  ;;  %v8262_v30 = vld [vmem:[%s12106_s3 + $0x1ec] ss:$16 sps:$4 sm:$0xff]   ;;  %v7120_v14 = vpop.f32.mrb[39].mxu0 }
 0x37a   :  { %v1588_v1 = vpack.c.bf16 %v1587_v60, %v1587_v60  ;;  %v8257_v60 = vld [vmem:[%s12106_s3 + $0x1c8] ss:$16 sps:$4 sm:$0xff]  }
 0x37c   :  { %6630 = vmatmul.mubr.msk.bf16.vlgmr.msra.gmra.mrb[36].mxu1 %vm817_vm1, %v1588_v1 }
 0x37d   :  { %1730 = vmatpush1.bf16.msra.mxu1 %v8251_v17  ;;  %1761 = vmatprep.mubr.bf16.mxu1 %v12145_v35  ;;  %v8272_v17 = vld [vmem:[%s12106_s3 + $0x244] ss:$16 sps:$4 sm:$0xff]  }
 0x37e   :  { %1731 = vmatprep.subr.bf16.mxu1 %v8256_v11 }
 0x381   :  { %1732 = vmatpush1.bf16.msra.mxu1 %v8254_v21 }
 0x382   :  { %1733 = vmatprep.subr.bf16.mxu1 %v8259_v12 }
 0x385   :  { %1734 = vmatpush1.bf16.msra.mxu1 %v8257_v60  ;;  %v8275_v60 = vld [vmem:[%s12106_s3 + $0x264] ss:$16 sps:$4 sm:$0xff]  }
 0x386   :  { %1735 = vmatprep.subr.bf16.mxu1 %v8262_v30 }
 0x389   :  { %1736 = vmatpush1.bf16.msra.mxu1 %v8260_v22  ;;  %v8273_v22 = vld [vmem:[%s12106_s3 + $0x260] ss:$16 sps:$4 sm:$0xff]  }
 0x38a   :  { %7122 = vmatprep.subr.bf16.mxu1 %v9296_v26 }
 0x38c   :  { %6631 = vmatmul.mubr.msk.bf16.vlgmr.msra.gmra.mrb[40].mxu1 %vm817_vm1, %v1588_v1  ;;  %v8270_v1 = vld [vmem:[%s12106_s3 + $0x240] ss:$16 sps:$4 sm:$0xff]  }
 0x38d   :  { %7123 = vmatpush3.bf16.msra.mxu1 %v9310_v29  ;;  %1892 = vmatprep.mubr.bf16.mxu1 %v1814_v18  ;;  %v8278_v18 = vld [vmem:[%s12106_s3 + $0x20c] ss:$16 sps:$4 sm:$0xff]  }
 0x38e   :  { %7124 = vmatprep.subr.bf16.mxu1 %v9322_v32 }
 0x391   :  { %7125 = vmatpush3.bf16.msra.mxu1 %v9334_v34 }
 0x392   :  { %7126 = vmatprep.subr.bf16.mxu1 %v9346_v38 }
 0x395   :  { %7127 = vmatpush3.bf16.msra.mxu1 %v9358_v41  ;;  %v9851_v11 = vpop.f32.mrb[40].mxu0 }
 0x396   :  { %7128 = vmatprep.subr.bf16.mxu1 %v9370_v43  ;;  %v7883_v21 = vpop.f32.mrb[41].mxu0 }
 0x397   :  { %v1937_v12 = vpop.f32.mrb[42].mxu0 }
 0x398   :  { %v7884_v30 = vpop.f32.mrb[43].mxu0 }
 0x399   :  { %7129 = vmatpush3.bf16.msra.mxu1 %v9382_v45 }
 0x39a   :  { %7130 = vmatprep.subr.bf16.mxu1 %v9394_v47 }
 0x39d   :  { %7131 = vmatpush3.bf16.msra.mxu1 %v9406_v49 }
 0x39e   :  { %7132 = vmatprep.subr.bf16.mxu1 %v9418_v51 }
 0x3a1   :  { %7133 = vmatpush3.bf16.msra.mxu1 %v9430_v53 }
 0x3a2   :  { %7134 = vmatprep.subr.bf16.mxu1 %v9442_v55 }
 0x3a5   :  { %7135 = vmatpush3.bf16.msra.mxu1 %v9456_v61 }
 0x3a6   :  { %7136 = vmatprep.subr.bf16.mxu1 %v9468_v63 }
 0x3a9   :  { %7137 = vmatpush3.bf16.msra.mxu1 %v9480_v2 }
 0x3aa   :  { %2041 = vmatprep.subr.bf16.mxu1 %v8266_v15 }
 0x3ac   :  { %1893 = vmatmul.mubr.bf16.vlgmr.msra.gmra.mrb[44].mxu1 %v1813_v20  ;;  %v2127_v20 = vld [vmem:[%s12103_s0 + $0x19] sm:$0x1f] }
 0x3ad   :  { %2073 = vmatprep.mubr.bf16.mxu1 %v12145_v35  ;;  %2042 = vmatpush1.bf16.msra.mxu1 %v8264_v9  ;;  %v2136_v62 = vrot.slane %v2127_v20, %v9055_v40 }
 0x3ae   :  { %2043 = vmatprep.subr.bf16.mxu1 %v8269_v19  ;;  %v2129_v19 = vcombine.high %v2127_v20, %v2127_v20  ;;  %v8281_v20 = vld [vmem:[%s12106_s3 + $0x22c] ss:$16 sps:$4 sm:$0xff]  }
 0x3af   :  { %v2144_v9 = vcombine.high %v2136_v62, %v2136_v62  ;;  %v9870_v16 = vrot.slane %v2136_v62, %v9055_v40  ;;  %v8287_v62 = vld [vmem:[%s12106_s3 + $0x26c] ss:$16 sps:$4 sm:$0xff]  }
 0x3b0   :  { %v2143_v57 = vrot.slane %v2129_v19, %v9055_v40 }
 0x3b1   :  { %2044 = vmatpush1.bf16.msra.mxu1 %v8267_v27  ;;  %v9867_v15 = vrot.slane %v2144_v9, %v9055_v40  ;;  %v8285_v9 = vld [vmem:[%s12106_s3 + $0x268] ss:$16 sps:$4 sm:$0xff]  }
 0x3b2   :  { %2045 = vmatprep.subr.bf16.mxu1 %v8272_v17  ;;  %v2158_v14 = vrot.slane %v2143_v57, %v9055_v40  ;;  %v8303_v57 = vld [vmem:[%s12106_s3 + $0x28c] ss:$16 sps:$4 sm:$0xff]  }
 0x3b3   :  { %2205 = vmatprep.mubr.bf16.mxu0 %v9867_v15  ;;  %v2167_v19 = vcombine.high %v9867_v15, %v9867_v15 }
 0x3b4   :  { %2206 = vmatmul.mubr.bf16.vlgmr.msra.gmra.mrb[44].mxu0 %v9870_v16 }
 0x3b5   :  { %2046 = vmatpush1.bf16.msra.mxu1 %v8270_v1  ;;  %7886 = vmatpush3.bf16.msra.mxu0 %v9487_v3  ;;  %v1855_v1 = vadd.f32 %v9840_v58, %v9225_v24  ;;  %v8279_v24 = vld [vmem:[%s12106_s3 + $0x228] ss:$16 sps:$4 sm:$0xff]   ;;  %v8284_v58 = vld [vmem:[%s12106_s3 + $0x24c] ss:$16 sps:$4 sm:$0xff]  }
 0x3b6   :  { %2047 = vmatprep.subr.bf16.mxu1 %v8275_v60  ;;  %7901 = vmatprep.mubr.msk.bf16.mxu0 %vm8788_vm0, %v12146_v0 }
 0x3b7   :  { %7887 = vmatprep.subr.bf16.mxu0 %v12146_v0 }
 0x3b9   :  { %2048 = vmatpush1.bf16.msra.mxu1 %v8273_v22  ;;  %7888 = vmatpush3.bf16.msra.mxu0 %v9497_v4 }
 0x3ba   :  { %2082 = vmatprep.subr.bf16.mxu1 %v8278_v18  ;;  %7889 = vmatprep.subr.bf16.mxu0 %v12146_v0 }
 0x3bd   :  { %7890 = vmatpush3.bf16.msra.mxu0 %v9504_v5 }
 0x3be   :  { %7891 = vmatprep.subr.bf16.mxu0 %v12146_v0 }
 0x3c1   :  { %7892 = vmatpush3.bf16.msra.mxu0 %v9511_v6 }
 0x3c2   :  { %7893 = vmatprep.subr.bf16.mxu0 %v12146_v0 }
 0x3c5   :  { %7894 = vmatpush3.bf16.msra.mxu0 %v9518_v8 }
 0x3c6   :  { %7895 = vmatprep.subr.bf16.mxu0 %v12146_v0 }
 0x3c9   :  { %7896 = vmatpush3.bf16.msra.mxu0 %v9602_v23 }
 0x3ca   :  { %7897 = vmatprep.subr.bf16.mxu0 %v12146_v0 }
 0x3cd   :  { %7898 = vmatpush3.bf16.msra.mxu0 %v9609_v7 }
 0x3ce   :  { %7899 = vmatprep.subr.bf16.mxu0 %v12146_v0 }
 0x3d1   :  { %7900 = vmatpush3.bf16.msra.mxu0 %v9617_v13 }
 0x3d2   :  { %7206 = vmatprep.subr.bf16.mxu0 %v9290_v25 }
 0x3d4   :  { %7902 = vmatmul.mubr.bf16.vlgmr.msra.gmra.mrb[48].mxu0 %v2158_v14  ;;  %v2480_v14 = vld [vmem:[%s12103_s0 + $0x1e] sm:$0x1f] }
 0x3d5   :  { %7207 = vmatpush3.bf16.msra.mxu0 %v9304_v28 }
 0x3d6   :  { %7208 = vmatprep.subr.bf16.mxu0 %v9316_v31 }
 0x3d9   :  { %7209 = vmatpush3.bf16.msra.mxu0 %v9328_v33 }
 0x3da   :  { %7210 = vmatprep.subr.bf16.mxu0 %v9340_v36 }
 0x3dd   :  { %7211 = vmatpush3.bf16.msra.mxu0 %v9352_v39  ;;  %v12151_v39 = vld [vmem:[#allocation7_spill] sm:$0xff] }
 0x3de   :  { %7212 = vmatprep.subr.bf16.mxu0 %v9364_v42  ;;  %v12152_v42 = vld [vmem:[#allocation8_spill] sm:$0xff] }
 0x3e1   :  { %7213 = vmatpush3.bf16.msra.mxu0 %v9376_v44  ;;  %v12153_v44 = vld [vmem:[#allocation9_spill] sm:$0xff] }
 0x3e2   :  { %7214 = vmatprep.subr.bf16.mxu0 %v9388_v46 }
 0x3e5   :  { %7215 = vmatpush3.bf16.msra.mxu0 %v9400_v48 }
 0x3e6   :  { %7216 = vmatprep.subr.bf16.mxu0 %v9412_v50 }
 0x3e9   :  { %7217 = vmatpush3.bf16.msra.mxu0 %v9424_v52 }
 0x3ea   :  { %7218 = vmatprep.subr.bf16.mxu0 %v9436_v54 }
 0x3ed   :  { %7219 = vmatpush3.bf16.msra.mxu0 %v12151_v39  ;;  %v10065_v39 = vld [vmem:[%s12104_s1 + $0x10] sm:$0xff]  }
 0x3ee   :  { %7220 = vmatprep.subr.bf16.mxu0 %v12152_v42  ;;  %v10071_v42 = vld [vmem:[%s12104_s1 + $0x58] sm:$0xff]  }
 0x3f1   :  { %7221 = vmatpush3.bf16.msra.mxu0 %v12153_v44  ;;  %v10077_v44 = vld [vmem:[%s12104_s1 + $0x18] sm:$0xff]  }
 0x3f2   :  { %7905 = vmatprep.subr.bf16.mxu0 %v12146_v0 }
 0x44f   :  { %v1722_v27 = vpop.f32.mrb[36].mxu1 }
 0x450   :  { %v9904_v25 = vadd.f32 %v1722_v27, %v9765_v10  ;;  %v1724_v28 = vpop.f32.mrb[37].mxu1  ;;  %v2489_v27 = vrot.slane %v2480_v14, %v9055_v40 }
 0x451   :  { %v9908_v31 = vadd.f32 %v1724_v28, %v9769_v59  ;;  %v1726_v33 = vpop.f32.mrb[38].mxu1 }
 0x452   :  { %v1727_v36 = vpop.f32.mrb[39].mxu1  ;;  %v2497_v28 = vcombine.high %v2489_v27, %v2489_v27 }
 0x453   :  { %v10009_v36 = vrot.slane %v2489_v27, %v9055_v40  ;;  %v10220_v27 = vld [vmem:[%s12104_s1 + $0x98] sm:$0xff]  }
 0x454   :  { %v10006_v33 = vrot.slane %v2497_v28, %v9055_v40  ;;  %v10226_v28 = vld [vmem:[%s12104_s1 + $0xe0] sm:$0xff]  }
 0x456   :  { %2558 = vmatprep.mubr.bf16.mxu0 %v10006_v33 }
 0x457   :  { %2559 = vmatmul.mubr.bf16.vlgmr.msra.gmra.mrb[52].mxu0 %v10009_v36 }
 0x458   :  { %7906 = vmatpush3.bf16.msra.mxu0 %v9487_v3  ;;  %7921 = vmatprep.mubr.msk.bf16.mxu0 %vm8788_vm0, %v12146_v0  ;;  %v2482_v3 = vcombine.high %v2480_v14, %v2480_v14  ;;  %v10214_v14 = vld [vmem:[%s12104_s1 + $0xd8] sm:$0xff]  }
 0x459   :  { %7907 = vmatprep.subr.bf16.mxu0 %v12146_v0 }
 0x45c   :  { %7908 = vmatpush3.bf16.msra.mxu0 %v9497_v4  ;;  %v2496_v4 = vrot.slane %v2482_v3, %v9055_v40  ;;  %v10238_v3 = vld [vmem:[%s12104_s1 + $0xe8] sm:$0xff]  }
 0x45d   :  { %7909 = vmatprep.subr.bf16.mxu0 %v12146_v0 }
 0x45f   :  { %v1763_v46 = vpop.f32.mrb[40].mxu1 }
 0x460   :  { %v9917_v48 = vadd.f32 %v1763_v46, %v9778_v37  ;;  %v1765_v50 = vpop.f32.mrb[41].mxu1  ;;  %v8276_v37 = vld [vmem:[%s12106_s3 + $0x208] ss:$16 sps:$4 sm:$0xff]   ;;  %7910 = vmatpush3.bf16.msra.mxu0 %v9504_v5  ;;  %v2511_v5 = vrot.slane %v2496_v4, %v9055_v40  ;;  %v10083_v46 = vld [vmem:[%s12104_s1 + $0x60] sm:$0xff]  }
 0x461   :  { %v9920_v10 = vadd.f32 %v1765_v50, %v9781_v56  ;;  %v1767_v59 = vpop.f32.mrb[42].mxu1  ;;  %7911 = vmatprep.subr.bf16.mxu0 %v12146_v0  ;;  %v10244_v4 = vld [vmem:[%s12104_s1 + $0xa8] sm:$0xff]  }
 0x462   :  { %v1768_v52 = vpop.f32.mrb[43].mxu1  ;;  %v10089_v59 = vld [vmem:[%s12104_s1 + $0x20] sm:$0xff]  }
 0x464   :  { %7912 = vmatpush3.bf16.msra.mxu0 %v9511_v6  ;;  %v10035_v6 = vld [vmem:[%s12104_s1 + $0x40] sm:$0xff]  }
 0x465   :  { %7913 = vmatprep.subr.bf16.mxu0 %v12146_v0 }
 0x468   :  { %7914 = vmatpush3.bf16.msra.mxu0 %v9518_v8  ;;  %v10041_v8 = vld [vmem:[%s12104_s1] sm:$0xff]  }
 0x469   :  { %7915 = vmatprep.subr.bf16.mxu0 %v12146_v0 }
 0x46c   :  { %7916 = vmatpush3.bf16.msra.mxu0 %v9602_v23  ;;  %v10047_v23 = vld [vmem:[%s12104_s1 + $0x48] sm:$0xff]  }
 0x46d   :  { %7917 = vmatprep.subr.bf16.mxu0 %v12146_v0 }
 0x470   :  { %7918 = vmatpush3.bf16.msra.mxu0 %v9609_v7  ;;  %v10053_v7 = vld [vmem:[%s12104_s1 + $0x8] sm:$0xff]  }
 0x471   :  { %7919 = vmatprep.subr.bf16.mxu0 %v12146_v0 }
 0x474   :  { %7920 = vmatpush3.bf16.msra.mxu0 %v9617_v13  ;;  %v10059_v13 = vld [vmem:[%s12104_s1 + $0x50] sm:$0xff]  }
 0x475   :  { %7259 = vmatprep.subr.bf16.mxu0 %v10035_v6 }
 0x477   :  { %7922 = vmatmul.mubr.bf16.vlgmr.msra.gmra.mrb[56].mxu0 %v2511_v5  ;;  %v10250_v5 = vld [vmem:[%s12104_s1 + $0xf0] sm:$0xff]  }
 0x478   :  { %7260 = vmatpush3.bf16.msra.mxu0 %v10041_v8 }
 0x479   :  { %7261 = vmatprep.subr.bf16.mxu0 %v10047_v23 }
 0x47c   :  { %7262 = vmatpush3.bf16.msra.mxu0 %v10053_v7 }
 0x47d   :  { %7263 = vmatprep.subr.bf16.mxu0 %v10059_v13 }
 0x47f   :  { %v7138_v17 = vpop.f32.mrb[44].mxu1 }
 0x480   :  { %v7139_v54 = vpop.f32.mrb[45].mxu1  ;;  %7264 = vmatpush3.bf16.msra.mxu0 %v10065_v39 }
 0x481   :  { %v7140_v21 = vadd.f32 %v7139_v54, %v7138_v17  ;;  %v7141_v12 = vpop.f32.mrb[46].mxu1  ;;  %7265 = vmatprep.subr.bf16.mxu0 %v10071_v42  ;;  %v10098_v54 = vld [vmem:[%s12104_s1 + $0x68] sm:$0xff]  }
 0x482   :  { %v7142_v60 = vpop.f32.mrb[47].mxu1 }
 0x483   :  { %v1895_v30 = vadd.f32 %v7140_v21, %v1855_v1  ;;  %v10107_v60 = vld [vmem:[%s12104_s1 + $0x28] sm:$0xff]  }
 0x484   :  { %7266 = vmatpush3.bf16.msra.mxu0 %v10077_v44 }
 0x485   :  { %v1935_v22 = vadd.f32 %v9851_v11, %v1895_v30  ;;  %v8282_v11 = vld [vmem:[%s12106_s3 + $0x248] ss:$16 sps:$4 sm:$0xff]   ;;  %7267 = vmatprep.subr.bf16.mxu0 %v10083_v46 }
 0x486   :  { %v10125_v30 = vld [vmem:[%s12104_s1 + $0x78] sm:$0xff]  }
 0x487   :  { %v1940_v18 = vmax.f32 %v1935_v22, 0.0  ;;  %12155 = vst [vmem:[#allocation11_spill] sm:$0xff] %v10125_v30  ;;  %v10131_v22 = vld [vmem:[%s12104_s1 + $0x38] sm:$0xff]  }
 0x488   :  { %7268 = vmatpush3.bf16.msra.mxu0 %v10089_v59  ;;  %12156 = vst [vmem:[#allocation7_spill] sm:$0xff] %v10131_v22 }
 0x489   :  { %v1941_v56 = vpack.c.bf16 %v1940_v18, %v1940_v18  ;;  %7269 = vmatprep.subr.bf16.mxu0 %v10098_v54 }
 0x48b   :  { %6648 = vmatmul.mubr.msk.bf16.vlgmr.msra.gmra.mrb[48].mxu1 %vm817_vm1, %v1941_v56 }
 0x48c   :  { %2083 = vmatpush1.bf16.msra.mxu1 %v8276_v37  ;;  %2114 = vmatprep.mubr.bf16.mxu1 %v12145_v35 }
 0x48d   :  { %2084 = vmatprep.subr.bf16.mxu1 %v8281_v20  ;;  %7270 = vmatpush3.bf16.msra.mxu0 %v10107_v60 }
 0x490   :  { %2085 = vmatpush1.bf16.msra.mxu1 %v8279_v24 }
 0x491   :  { %2086 = vmatprep.subr.bf16.mxu1 %v8284_v58 }
 0x494   :  { %2087 = vmatpush1.bf16.msra.mxu1 %v8282_v11 }
 0x495   :  { %2088 = vmatprep.subr.bf16.mxu1 %v8287_v62 }
 0x498   :  { %2089 = vmatpush1.bf16.msra.mxu1 %v8285_v9  ;;  %v10144_v9 = vld [vmem:[%s12105_s2] ss:$0 sm:$0xff] }
 0x499   :  { %7175 = vmatprep.subr.bf16.mxu1 %v9296_v26  ;;  %v2166_v26 = vcombine.high %v9870_v16, %v9870_v16  ;;  %v8298_v16 = vld [vmem:[%s12106_s3 + $0x2e0] ss:$16 sps:$4 sm:$0xff]  }
 0x49b   :  { %6649 = vmatmul.mubr.msk.bf16.vlgmr.msra.gmra.mrb[52].mxu1 %vm817_vm1, %v1941_v56 }
 0x49c   :  { %7176 = vmatpush3.bf16.msra.mxu1 %v9310_v29  ;;  %2245 = vmatprep.mubr.bf16.mxu1 %v2167_v19  ;;  %v7169_v29 = vpop.f32.mrb[44].mxu0 }
 0x49d   :  { %7177 = vmatprep.subr.bf16.mxu1 %v9322_v32  ;;  %v8289_v32 = vld [vmem:[%s12106_s3 + $0x280] ss:$16 sps:$4 sm:$0xff]  }
 0x4a0   :  { %7178 = vmatpush3.bf16.msra.mxu1 %v9334_v34  ;;  %v8291_v34 = vld [vmem:[%s12106_s3 + $0x284] ss:$16 sps:$4 sm:$0xff]  }
 0x4a1   :  { %7179 = vmatprep.subr.bf16.mxu1 %v9346_v38  ;;  %v7170_v38 = vpop.f32.mrb[45].mxu0 }
 0x4a4   :  { %7180 = vmatpush3.bf16.msra.mxu1 %v9358_v41  ;;  %v8294_v41 = vld [vmem:[%s12106_s3 + $0x2a4] ss:$16 sps:$4 sm:$0xff]  }
 0x4a5   :  { %7181 = vmatprep.subr.bf16.mxu1 %v9370_v43  ;;  %v9979_v43 = vadd.f32 %v7170_v38, %v7169_v29  ;;  %v8301_v38 = vld [vmem:[%s12106_s3 + $0x288] ss:$16 sps:$4 sm:$0xff]  }
 0x4a7   :  { %v2208_v19 = vadd.f32 %v10144_v9, %v9979_v43  ;;  %v8304_v43 = vld [vmem:[%s12106_s3 + $0x2a8] ss:$16 sps:$4 sm:$0xff]  }
 0x4a8   :  { %7182 = vmatpush3.bf16.msra.mxu1 %v9382_v45  ;;  %v7172_v45 = vpop.f32.mrb[46].mxu0 }
 0x4a9   :  { %7183 = vmatprep.subr.bf16.mxu1 %v9394_v47  ;;  %v7173_v47 = vpop.f32.mrb[47].mxu0  ;;  %v8306_v45 = vld [vmem:[%s12106_s3 + $0x2ac] ss:$16 sps:$4 sm:$0xff]  }
 0x4aa   :  { %v8309_v47 = vld [vmem:[%s12106_s3 + $0x2cc] ss:$16 sps:$4 sm:$0xff]  }
 0x4ac   :  { %7184 = vmatpush3.bf16.msra.mxu1 %v9406_v49  ;;  %v8292_v49 = vld [vmem:[%s12106_s3 + $0x2a0] ss:$16 sps:$4 sm:$0xff]  }
 0x4ad   :  { %7185 = vmatprep.subr.bf16.mxu1 %v9418_v51  ;;  %v8297_v51 = vld [vmem:[%s12106_s3 + $0x2c4] ss:$16 sps:$4 sm:$0xff]  }
 0x4b0   :  { %7186 = vmatpush3.bf16.msra.mxu1 %v9430_v53  ;;  %v8295_v53 = vld [vmem:[%s12106_s3 + $0x2c0] ss:$16 sps:$4 sm:$0xff]  }
 0x4b1   :  { %7187 = vmatprep.subr.bf16.mxu1 %v9442_v55  ;;  %v9990_v55 = vpop.f32.mrb[48].mxu0 }
 0x4b4   :  { %7188 = vmatpush3.bf16.msra.mxu1 %v9456_v61  ;;  %v7903_v61 = vpop.f32.mrb[49].mxu0 }
 0x4b5   :  { %7189 = vmatprep.subr.bf16.mxu1 %v9468_v63  ;;  %v2290_v63 = vpop.f32.mrb[50].mxu0  ;;  %v10177_v61 = vld [vmem:[%s12104_s1 + $0xc0] sm:$0xff]  }
 0x4b6   :  { %v7904_v15 = vpop.f32.mrb[51].mxu0  ;;  %v10184_v63 = vld [vmem:[%s12104_s1 + $0x80] sm:$0xff]  }
 0x4b7   :  { %v10196_v15 = vld [vmem:[%s12104_s1 + $0x88] sm:$0xff]  }
 0x4b8   :  { %7190 = vmatpush3.bf16.msra.mxu1 %v9480_v2  ;;  %v8300_v2 = vld [vmem:[%s12106_s3 + $0x2e4] ss:$16 sps:$4 sm:$0xff]  }
 0x4b9   :  { %2394 = vmatprep.subr.bf16.mxu1 %v8291_v34 }
 0x4bb   :  { %2246 = vmatmul.mubr.bf16.vlgmr.msra.gmra.mrb[56].mxu1 %v2166_v26 }
 0x4bc   :  { %2426 = vmatprep.mubr.bf16.mxu1 %v12145_v35  ;;  %2395 = vmatpush1.bf16.msra.mxu1 %v8289_v32 }
 0x4bd   :  { %2396 = vmatprep.subr.bf16.mxu1 %v8294_v41 }
 0x4c0   :  { %2397 = vmatpush1.bf16.msra.mxu1 %v8292_v49  ;;  %v8307_v49 = vld [vmem:[%s12106_s3 + $0x2c8] ss:$16 sps:$4 sm:$0xff]  }
 0x4c1   :  { %2398 = vmatprep.subr.bf16.mxu1 %v8297_v51  ;;  %v8312_v51 = vld [vmem:[%s12106_s3 + $0x2ec] ss:$16 sps:$4 sm:$0xff]  }
 0x4c4   :  { %2399 = vmatpush1.bf16.msra.mxu1 %v8295_v53  ;;  %v8310_v53 = vld [vmem:[%s12106_s3 + $0x2e8] ss:$16 sps:$4 sm:$0xff]  }
 0x4c5   :  { %2400 = vmatprep.subr.bf16.mxu1 %v8300_v2  ;;  %v10190_v2 = vld [vmem:[%s12104_s1 + $0xc8] sm:$0xff]  }
 0x4c8   :  { %2401 = vmatpush1.bf16.msra.mxu1 %v8298_v16  ;;  %v10202_v16 = vld [vmem:[%s12104_s1 + $0xd0] sm:$0xff]  }
 0x4c9   :  { %2435 = vmatprep.subr.bf16.mxu1 %v8303_v57  ;;  %v10208_v57 = vld [vmem:[%s12104_s1 + $0x90] sm:$0xff]  }
 0x55e   :  { %v2075_v50 = vpop.f32.mrb[48].mxu1 }
 0x55f   :  { %v10093_v52 = vadd.f32 %v2075_v50, %v9904_v25  ;;  %v2077_v17 = vpop.f32.mrb[49].mxu1  ;;  %v10113_v25 = vld [vmem:[%s12104_s1 + $0x70] sm:$0xff]  }
 0x560   :  { %v10102_v1 = vadd.f32 %v2077_v17, %v9908_v31  ;;  %v2079_v21 = vpop.f32.mrb[50].mxu1  ;;  %7271 = vmatprep.subr.bf16.mxu0 %v10113_v25  ;;  %v10119_v31 = vld [vmem:[%s12104_s1 + $0x30] sm:$0xff]   ;;  %v10262_v17 = vld [vmem:[%s12104_s1 + $0xf8] sm:$0xff]  }
 0x561   :  { %v2080_v12 = vpop.f32.mrb[51].mxu1  ;;  %12154 = vst [vmem:[#allocation10_spill] sm:$0xff] %v10119_v31  ;;  %7272 = vmatpush3.bf16.msra.mxu0 %v10119_v31  ;;  %v10256_v50 = vld [vmem:[%s12104_s1 + $0xb0] sm:$0xff]   ;;  %v2519_v21 = vcombine.high %v10009_v36, %v10009_v36 }
 0x562   :  { %7273 = vmatprep.subr.bf16.mxu0 %v10125_v30  ;;  %v10270_v12 = vld [vmem:[%s12104_s1 + $0xb8] sm:$0xff]  }
 0x565   :  { %7274 = vmatpush3.bf16.msra.mxu0 %v10131_v22 }
 0x566   :  { %7925 = vmatprep.subr.bf16.mxu0 %v12146_v0 }
 0x56e   :  { %v2116_v18 = vpop.f32.mrb[52].mxu1 }
 0x56f   :  { %v10136_v37 = vadd.f32 %v2116_v18, %v9917_v48  ;;  %v2118_v56 = vpop.f32.mrb[53].mxu1  ;;  %v7222_v18 = vpop.f32.mrb[52].mxu0 }
 0x570   :  { %v10139_v20 = vadd.f32 %v2118_v56, %v9920_v10  ;;  %v2120_v24 = vpop.f32.mrb[54].mxu1  ;;  %v8314_v56 = vld [vmem:[%s12106_s3 + $0x300] ss:$16 sps:$4 sm:$0xff]   ;;  %v7223_v36 = vpop.f32.mrb[53].mxu0 }
 0x571   :  { %v2121_v58 = vpop.f32.mrb[55].mxu1  ;;  %v8316_v24 = vld [vmem:[%s12106_s3 + $0x304] ss:$16 sps:$4 sm:$0xff]  }
 0x572   :  { %v8319_v58 = vld [vmem:[%s12106_s3 + $0x324] ss:$16 sps:$4 sm:$0xff]  }
 0x58e   :  { %v7191_v11 = vpop.f32.mrb[56].mxu1 }
 0x58f   :  { %v7192_v62 = vpop.f32.mrb[57].mxu1 }
 0x590   :  { %v7193_v26 = vadd.f32 %v7192_v62, %v7191_v11  ;;  %v7194_v29 = vpop.f32.mrb[58].mxu1  ;;  %v10283_v11 = vadd.f32 %v7223_v36, %v7222_v18  ;;  %v7225_v62 = vpop.f32.mrb[54].mxu0  ;;  %v10329_v18 = vld [vmem:[%s12104_s1 + $0x108] sm:$0xff]   ;;  %v10350_v36 = vld [vmem:[%s12104_s1 + $0x120] sm:$0xff]  }
 0x591   :  { %v7195_v48 = vpop.f32.mrb[59].mxu1  ;;  %v8322_v29 = vld [vmem:[%s12106_s3 + $0x344] ss:$16 sps:$4 sm:$0xff]  }
 0x592   :  { %v2248_v32 = vadd.f32 %v7193_v26, %v2208_v19  ;;  %v7226_v19 = vpop.f32.mrb[55].mxu0  ;;  %v8317_v26 = vld [vmem:[%s12106_s3 + $0x320] ss:$16 sps:$4 sm:$0xff]  }
 0x593   :  { %v8320_v48 = vld [vmem:[%s12106_s3 + $0x340] ss:$16 sps:$4 sm:$0xff]  }
 0x594   :  { %v2288_v34 = vadd.f32 %v9990_v55, %v2248_v32  ;;  %v2520_v55 = vcombine.high %v10006_v33, %v10006_v33  ;;  %v10232_v33 = vld [vmem:[%s12104_s1 + $0xa0] sm:$0xff]   ;;  %v10294_v32 = vpop.f32.mrb[56].mxu0  ;;  %v10364_v19 = vld [vmem:[%s12104_s1 + $0x130] sm:$0xff]  }
 0x596   :  { %v2293_v10 = vmax.f32 %v2288_v34, 0.0  ;;  %v7923_v34 = vpop.f32.mrb[57].mxu0 }
 0x598   :  { %v2294_v41 = vpack.c.bf16 %v2293_v10, %v2293_v10  ;;  %v2643_v10 = vpop.f32.mrb[58].mxu0 }
 0x59a   :  { %6666 = vmatmul.mubr.msk.bf16.vlgmr.msra.gmra.mrb[60].mxu1 %vm817_vm1, %v2294_v41 }
 0x59b   :  { %2436 = vmatpush1.bf16.msra.mxu1 %v8301_v38  ;;  %2467 = vmatprep.mubr.bf16.mxu1 %v12145_v35  ;;  %v8325_v38 = vld [vmem:[%s12106_s3 + $0x364] ss:$16 sps:$4 sm:$0xff]  }
 0x59c   :  { %2437 = vmatprep.subr.bf16.mxu1 %v8306_v45  ;;  %v8323_v45 = vld [vmem:[%s12106_s3 + $0x360] ss:$16 sps:$4 sm:$0xff]  }
 0x59f   :  { %2438 = vmatpush1.bf16.msra.mxu1 %v8304_v43  ;;  %v8328_v43 = vld [vmem:[%s12106_s3 + $0x30c] ss:$16 sps:$4 sm:$0xff]  }
 0x5a0   :  { %2439 = vmatprep.subr.bf16.mxu1 %v8309_v47  ;;  %v2833_v47 = vld [vmem:[%s12103_s0 + $0x23] sm:$0x1f] }
 0x5a1   :  { %v2835_v62 = vcombine.high %v2833_v47, %v2833_v47 }
 0x5a3   :  { %2440 = vmatpush1.bf16.msra.mxu1 %v8307_v49  ;;  %v2842_v49 = vrot.slane %v2833_v47, %v9055_v40 }
 0x5a4   :  { %2441 = vmatprep.subr.bf16.mxu1 %v8312_v51 }
 0x5a5   :  { %v2850_v51 = vcombine.high %v2842_v49, %v2842_v49 }
 0x5a7   :  { %2442 = vmatpush1.bf16.msra.mxu1 %v8310_v53  ;;  %v10310_v53 = vrot.slane %v2850_v51, %v9055_v40 }
 0x5a8   :  { %7228 = vmatprep.subr.bf16.mxu1 %v10177_v61 }
 0x5a9   :  { %2911 = vmatprep.mubr.bf16.mxu0 %v10310_v53 }
 0x5aa   :  { %6667 = vmatmul.mubr.msk.bf16.vlgmr.msra.gmra.mrb[64].mxu1 %vm817_vm1, %v2294_v41  ;;  %v7924_v41 = vpop.f32.mrb[59].mxu0 }
 0x5ab   :  { %7229 = vmatpush3.bf16.msra.mxu1 %v10184_v63  ;;  %2598 = vmatprep.mubr.bf16.mxu1 %v2520_v55  ;;  %v10313_v55 = vrot.slane %v2842_v49, %v9055_v40 }
 0x5ac   :  { %7230 = vmatprep.subr.bf16.mxu1 %v10190_v2 }
 0x5ad   :  { %2912 = vmatmul.mubr.bf16.vlgmr.msra.gmra.mrb[60].mxu0 %v10313_v55 }
 0x5ae   :  { %7941 = vmatprep.mubr.msk.bf16.mxu0 %vm8788_vm0, %v12146_v0 }
 0x5af   :  { %7231 = vmatpush3.bf16.msra.mxu1 %v10196_v15 }
 0x5b0   :  { %7232 = vmatprep.subr.bf16.mxu1 %v10202_v16 }
 0x5b3   :  { %7233 = vmatpush3.bf16.msra.mxu1 %v10208_v57 }
 0x5b4   :  { %7234 = vmatprep.subr.bf16.mxu1 %v10214_v14 }
 0x5b7   :  { %7235 = vmatpush3.bf16.msra.mxu1 %v10220_v27 }
 0x5b8   :  { %7236 = vmatprep.subr.bf16.mxu1 %v10226_v28 }
 0x5bb   :  { %7237 = vmatpush3.bf16.msra.mxu1 %v10232_v33 }
 0x5bc   :  { %7238 = vmatprep.subr.bf16.mxu1 %v10238_v3 }
 0x5bf   :  { %7239 = vmatpush3.bf16.msra.mxu1 %v10244_v4 }
 0x5c0   :  { %7240 = vmatprep.subr.bf16.mxu1 %v10250_v5 }
 0x5c3   :  { %7241 = vmatpush3.bf16.msra.mxu1 %v10256_v50 }
 0x5c4   :  { %7242 = vmatprep.subr.bf16.mxu1 %v10262_v17 }
 0x5c7   :  { %7243 = vmatpush3.bf16.msra.mxu1 %v10270_v12 }
 0x5c8   :  { %2747 = vmatprep.subr.bf16.mxu1 %v8316_v24  ;;  %v10343_v24 = vld [vmem:[%s12104_s1 + $0x118] sm:$0xff]  }
 0x5ca   :  { %2599 = vmatmul.mubr.bf16.vlgmr.msra.gmra.mrb[68].mxu1 %v2519_v21  ;;  %v10320_v21 = vld [vmem:[%s12104_s1 + $0x100] sm:$0xff]  }
 0x5cb   :  { %2779 = vmatprep.mubr.bf16.mxu1 %v12145_v35  ;;  %2748 = vmatpush1.bf16.msra.mxu1 %v8314_v56  ;;  %v10336_v56 = vld [vmem:[%s12104_s1 + $0x110] sm:$0xff]  }
 0x5cc   :  { %2749 = vmatprep.subr.bf16.mxu1 %v8319_v58  ;;  %7926 = vmatpush3.bf16.msra.mxu0 %v10320_v21  ;;  %v10357_v58 = vld [vmem:[%s12104_s1 + $0x128] sm:$0xff]  }
 0x5cd   :  { %7927 = vmatprep.subr.bf16.mxu0 %v12146_v0 }
 0x5cf   :  { %2750 = vmatpush1.bf16.msra.mxu1 %v8317_v26  ;;  %v2849_v26 = vrot.slane %v2835_v62, %v9055_v40 }
 0x5d0   :  { %2751 = vmatprep.subr.bf16.mxu1 %v8322_v29  ;;  %7928 = vmatpush3.bf16.msra.mxu0 %v10329_v18  ;;  %v10372_v29 = vld [vmem:[%s12104_s1 + $0x138] sm:$0xff]  }
 0x5d1   :  { %7929 = vmatprep.subr.bf16.mxu0 %v12146_v0 }
 0x5d3   :  { %2752 = vmatpush1.bf16.msra.mxu1 %v8320_v48  ;;  %v2864_v48 = vrot.slane %v2849_v26, %v9055_v40 }
 0x5d4   :  { %2753 = vmatprep.subr.bf16.mxu1 %v8325_v38  ;;  %7930 = vmatpush3.bf16.msra.mxu0 %v10336_v56 }
 0x5d5   :  { %7931 = vmatprep.subr.bf16.mxu0 %v12146_v0 }
 0x5d7   :  { %2754 = vmatpush1.bf16.msra.mxu1 %v8323_v45 }
 0x5d8   :  { %2788 = vmatprep.subr.bf16.mxu1 %v8328_v43  ;;  %7932 = vmatpush3.bf16.msra.mxu0 %v10343_v24 }
 0x5d9   :  { %7933 = vmatprep.subr.bf16.mxu0 %v12146_v0 }
 0x5dc   :  { %7934 = vmatpush3.bf16.msra.mxu0 %v10350_v36 }
 0x5dd   :  { %7935 = vmatprep.subr.bf16.mxu0 %v12146_v0 }
 0x5e0   :  { %7936 = vmatpush3.bf16.msra.mxu0 %v10357_v58 }
 0x5e1   :  { %7937 = vmatprep.subr.bf16.mxu0 %v12146_v0 }
 0x5e4   :  { %7938 = vmatpush3.bf16.msra.mxu0 %v10364_v19 }
 0x5e5   :  { %7939 = vmatprep.subr.bf16.mxu0 %v12146_v0 }
 0x5e8   :  { %7940 = vmatpush3.bf16.msra.mxu0 %v10372_v29 }
 0x5e9   :  { %7312 = vmatprep.subr.bf16.mxu0 %v10035_v6 }
 0x5eb   :  { %7942 = vmatmul.mubr.bf16.vlgmr.msra.gmra.mrb[64].mxu0 %v2864_v48 }
 0x5ec   :  { %7313 = vmatpush3.bf16.msra.mxu0 %v10041_v8 }
 0x5ed   :  { %7314 = vmatprep.subr.bf16.mxu0 %v10047_v23 }
 0x5f0   :  { %7315 = vmatpush3.bf16.msra.mxu0 %v10053_v7 }
 0x5f1   :  { %7316 = vmatprep.subr.bf16.mxu0 %v10059_v13 }
 0x5f4   :  { %7317 = vmatpush3.bf16.msra.mxu0 %v10065_v39 }
 0x5f5   :  { %7318 = vmatprep.subr.bf16.mxu0 %v10071_v42 }
 0x5f8   :  { %7319 = vmatpush3.bf16.msra.mxu0 %v10077_v44 }
 0x5f9   :  { %7320 = vmatprep.subr.bf16.mxu0 %v10083_v46 }
 0x5fc   :  { %7321 = vmatpush3.bf16.msra.mxu0 %v10089_v59 }
 0x5fd   :  { %7322 = vmatprep.subr.bf16.mxu0 %v10098_v54 }
 0x600   :  { %7323 = vmatpush3.bf16.msra.mxu0 %v10107_v60 }
 0x601   :  { %7324 = vmatprep.subr.bf16.mxu0 %v10113_v25 }
 0x604   :  { %7325 = vmatpush3.bf16.msra.mxu0 %v10119_v31 }
 0x605   :  { %7326 = vmatprep.subr.bf16.mxu0 %v10125_v30 }
 0x608   :  { %7327 = vmatpush3.bf16.msra.mxu0 %v10131_v22 }
 0x609   :  { %7945 = vmatprep.subr.bf16.mxu0 %v12146_v0 }
 0x66d   :  { %v2428_v34 = vpop.f32.mrb[60].mxu1 }
 0x66e   :  { %v10387_v10 = vadd.f32 %v2428_v34, %v10093_v52  ;;  %v2430_v38 = vpop.f32.mrb[61].mxu1  ;;  %v2561_v34 = vadd.f32 %v10144_v9, %v10283_v11  ;;  %v8329_v11 = vld [vmem:[%s12106_s3 + $0x328] ss:$16 sps:$4 sm:$0xff]  }
 0x66f   :  { %v10391_v41 = vadd.f32 %v2430_v38, %v10102_v1  ;;  %v2432_v45 = vpop.f32.mrb[62].mxu1 }
 0x670   :  { %v2433_v43 = vpop.f32.mrb[63].mxu1 }
 0x67d   :  { %v2469_v52 = vpop.f32.mrb[64].mxu1 }
 0x67e   :  { %v10400_v47 = vadd.f32 %v2469_v52, %v10136_v37  ;;  %v2471_v1 = vpop.f32.mrb[65].mxu1  ;;  %v8326_v37 = vld [vmem:[%s12106_s3 + $0x308] ss:$16 sps:$4 sm:$0xff]   ;;  %v8331_v52 = vld [vmem:[%s12106_s3 + $0x32c] ss:$16 sps:$4 sm:$0xff]  }
 0x67f   :  { %v10403_v49 = vadd.f32 %v2471_v1, %v10139_v20  ;;  %v2473_v51 = vpop.f32.mrb[66].mxu1  ;;  %v2873_v1 = vcombine.high %v10310_v53, %v10310_v53  ;;  %v2872_v53 = vcombine.high %v10313_v55, %v10313_v55 }
 0x680   :  { %v2474_v62 = vpop.f32.mrb[67].mxu1  ;;  %v7275_v51 = vpop.f32.mrb[60].mxu0 }
 0x681   :  { %v8339_v62 = vld [vmem:[%s12106_s3 + $0x380] ss:$16 sps:$4 sm:$0xff]  }
 0x69d   :  { %v7244_v26 = vpop.f32.mrb[68].mxu1 }
 0x69e   :  { %v7245_v48 = vpop.f32.mrb[69].mxu1 }
 0x69f   :  { %v7246_v38 = vadd.f32 %v7245_v48, %v7244_v26  ;;  %v7247_v45 = vpop.f32.mrb[70].mxu1  ;;  %v8341_v26 = vld [vmem:[%s12106_s3 + $0x384] ss:$16 sps:$4 sm:$0xff]   ;;  %v7276_v48 = vpop.f32.mrb[61].mxu0 }
 0x6a0   :  { %v7248_v43 = vpop.f32.mrb[71].mxu1  ;;  %v10462_v55 = vadd.f32 %v7276_v48, %v7275_v51 }
 0x6a1   :  { %v2601_v22 = vadd.f32 %v7246_v38, %v2561_v34  ;;  %v8344_v34 = vld [vmem:[%s12106_s3 + $0x3a4] ss:$16 sps:$4 sm:$0xff]   ;;  %v7278_v38 = vpop.f32.mrb[62].mxu0  ;;  %v8342_v43 = vld [vmem:[%s12106_s3 + $0x3a0] ss:$16 sps:$4 sm:$0xff]  }
 0x6a2   :  { %v7279_v45 = vpop.f32.mrb[63].mxu0 }
 0x6a3   :  { %v2641_v30 = vadd.f32 %v10294_v32, %v2601_v22  ;;  %v8337_v22 = vld [vmem:[%s12106_s3 + $0x36c] ss:$16 sps:$4 sm:$0xff]   ;;  %v8335_v32 = vld [vmem:[%s12106_s3 + $0x368] ss:$16 sps:$4 sm:$0xff]  }
 0x6a5   :  { %v2646_v31 = vmax.f32 %v2641_v30, 0.0  ;;  %v8334_v30 = vld [vmem:[%s12106_s3 + $0x34c] ss:$16 sps:$4 sm:$0xff]  }
 0x6a7   :  { %v2647_v20 = vpack.c.bf16 %v2646_v31, %v2646_v31  ;;  %v8332_v31 = vld [vmem:[%s12106_s3 + $0x348] ss:$16 sps:$4 sm:$0xff]  }
 0x6a9   :  { %6684 = vmatmul.mubr.msk.bf16.vlgmr.msra.gmra.mrb[72].mxu1 %vm817_vm1, %v2647_v20 }
 0x6aa   :  { %2789 = vmatpush1.bf16.msra.mxu1 %v8326_v37  ;;  %2820 = vmatprep.mubr.bf16.mxu1 %v12145_v35  ;;  %v8347_v37 = vld [vmem:[%s12106_s3 + $0x3c4] ss:$16 sps:$4 sm:$0xff]  }
 0x6ab   :  { %2790 = vmatprep.subr.bf16.mxu1 %v8331_v52 }
 0x6ae   :  { %2791 = vmatpush1.bf16.msra.mxu1 %v8329_v11 }
 0x6af   :  { %2792 = vmatprep.subr.bf16.mxu1 %v8334_v30 }
 0x6b2   :  { %2793 = vmatpush1.bf16.msra.mxu1 %v8332_v31  ;;  %v8350_v31 = vld [vmem:[%s12106_s3 + $0x3e4] ss:$16 sps:$4 sm:$0xff]  }
 0x6b3   :  { %2794 = vmatprep.subr.bf16.mxu1 %v8337_v22 }
 0x6b6   :  { %2795 = vmatpush1.bf16.msra.mxu1 %v8335_v32  ;;  %v8348_v32 = vld [vmem:[%s12106_s3 + $0x3e0] ss:$16 sps:$4 sm:$0xff]  }
 0x6b7   :  { %7281 = vmatprep.subr.bf16.mxu1 %v10177_v61 }
 0x6b9   :  { %6685 = vmatmul.mubr.msk.bf16.vlgmr.msra.gmra.mrb[76].mxu1 %vm817_vm1, %v2647_v20  ;;  %v8345_v20 = vld [vmem:[%s12106_s3 + $0x3c0] ss:$16 sps:$4 sm:$0xff]  }
 0x6ba   :  { %7282 = vmatpush3.bf16.msra.mxu1 %v10184_v63  ;;  %2951 = vmatprep.mubr.bf16.mxu1 %v2873_v1  ;;  %v8353_v1 = vld [vmem:[%s12106_s3 + $0x38c] ss:$16 sps:$4 sm:$0xff]  }
 0x6bb   :  { %7283 = vmatprep.subr.bf16.mxu1 %v10190_v2 }
 0x6be   :  { %7284 = vmatpush3.bf16.msra.mxu1 %v10196_v15  ;;  %v10473_v52 = vpop.f32.mrb[64].mxu0 }
 0x6bf   :  { %7285 = vmatprep.subr.bf16.mxu1 %v10202_v16  ;;  %v7943_v11 = vpop.f32.mrb[65].mxu0 }
 0x6c0   :  { %v2996_v30 = vpop.f32.mrb[66].mxu0 }
 0x6c1   :  { %v7944_v22 = vpop.f32.mrb[67].mxu0 }
 0x6c2   :  { %7286 = vmatpush3.bf16.msra.mxu1 %v10208_v57  ;;  %v12157_v22 = vld [vmem:[#allocation10_spill] sm:$0xff] }
 0x6c3   :  { %7287 = vmatprep.subr.bf16.mxu1 %v10214_v14 }
 0x6c6   :  { %7288 = vmatpush3.bf16.msra.mxu1 %v10220_v27 }
 0x6c7   :  { %7289 = vmatprep.subr.bf16.mxu1 %v10226_v28 }
 0x6ca   :  { %7290 = vmatpush3.bf16.msra.mxu1 %v10232_v33 }
 0x6cb   :  { %7291 = vmatprep.subr.bf16.mxu1 %v10238_v3 }
 0x6ce   :  { %7292 = vmatpush3.bf16.msra.mxu1 %v10244_v4 }
 0x6cf   :  { %7293 = vmatprep.subr.bf16.mxu1 %v10250_v5 }
 0x6d2   :  { %7294 = vmatpush3.bf16.msra.mxu1 %v10256_v50 }
 0x6d3   :  { %7295 = vmatprep.subr.bf16.mxu1 %v10262_v17 }
 0x6d6   :  { %7296 = vmatpush3.bf16.msra.mxu1 %v10270_v12 }
 0x6d7   :  { %3100 = vmatprep.subr.bf16.mxu1 %v8341_v26 }
 0x6d9   :  { %2952 = vmatmul.mubr.bf16.vlgmr.msra.gmra.mrb[80].mxu1 %v2872_v53  ;;  %v3186_v53 = vld [vmem:[%s12103_s0 + $0x28] sm:$0x1f] }
 0x6da   :  { %3132 = vmatprep.mubr.bf16.mxu1 %v12145_v35  ;;  %3101 = vmatpush1.bf16.msra.mxu1 %v8339_v62  ;;  %v3195_v51 = vrot.slane %v3186_v53, %v9055_v40 }
 0x6db   :  { %3102 = vmatprep.subr.bf16.mxu1 %v8344_v34  ;;  %v3188_v34 = vcombine.high %v3186_v53, %v3186_v53 }
 0x6dc   :  { %v3203_v62 = vcombine.high %v3195_v51, %v3195_v51  ;;  %v10492_v48 = vrot.slane %v3195_v51, %v9055_v40 }
 0x6dd   :  { %v3202_v38 = vrot.slane %v3188_v34, %v9055_v40 }
 0x6de   :  { %3103 = vmatpush1.bf16.msra.mxu1 %v8342_v43  ;;  %v10489_v26 = vrot.slane %v3203_v62, %v9055_v40 }
 0x6df   :  { %3104 = vmatprep.subr.bf16.mxu1 %v8347_v37  ;;  %v3217_v45 = vrot.slane %v3202_v38, %v9055_v40 }
 0x6e0   :  { %3264 = vmatprep.mubr.bf16.mxu0 %v10489_v26 }
 0x6e1   :  { %3265 = vmatmul.mubr.bf16.vlgmr.msra.gmra.mrb[68].mxu0 %v10492_v48 }
 0x6e2   :  { %3105 = vmatpush1.bf16.msra.mxu1 %v8345_v20  ;;  %7946 = vmatpush3.bf16.msra.mxu0 %v10320_v21 }
 0x6e3   :  { %3106 = vmatprep.subr.bf16.mxu1 %v8350_v31  ;;  %7961 = vmatprep.mubr.msk.bf16.mxu0 %vm8788_vm0, %v12146_v0 }
 0x6e4   :  { %7947 = vmatprep.subr.bf16.mxu0 %v12146_v0 }
 0x6e6   :  { %3107 = vmatpush1.bf16.msra.mxu1 %v8348_v32  ;;  %7948 = vmatpush3.bf16.msra.mxu0 %v10329_v18  ;;  %v12158_v32 = vld [vmem:[#allocation11_spill] sm:$0xff] }
 0x6e7   :  { %3141 = vmatprep.subr.bf16.mxu1 %v8353_v1  ;;  %7949 = vmatprep.subr.bf16.mxu0 %v12146_v0  ;;  %v12159_v1 = vld [vmem:[#allocation7_spill] sm:$0xff] }
 0x6ea   :  { %7950 = vmatpush3.bf16.msra.mxu0 %v10336_v56 }
 0x6eb   :  { %7951 = vmatprep.subr.bf16.mxu0 %v12146_v0 }
 0x6ee   :  { %7952 = vmatpush3.bf16.msra.mxu0 %v10343_v24 }
 0x6ef   :  { %7953 = vmatprep.subr.bf16.mxu0 %v12146_v0 }
 0x6f2   :  { %7954 = vmatpush3.bf16.msra.mxu0 %v10350_v36 }
 0x6f3   :  { %7955 = vmatprep.subr.bf16.mxu0 %v12146_v0 }
 0x6f6   :  { %7956 = vmatpush3.bf16.msra.mxu0 %v10357_v58 }
 0x6f7   :  { %7957 = vmatprep.subr.bf16.mxu0 %v12146_v0 }
 0x6fa   :  { %7958 = vmatpush3.bf16.msra.mxu0 %v10364_v19 }
 0x6fb   :  { %7959 = vmatprep.subr.bf16.mxu0 %v12146_v0 }
 0x6fe   :  { %7960 = vmatpush3.bf16.msra.mxu0 %v10372_v29 }
 0x6ff   :  { %7365 = vmatprep.subr.bf16.mxu0 %v10035_v6 }
 0x701   :  { %7962 = vmatmul.mubr.bf16.vlgmr.msra.gmra.mrb[72].mxu0 %v3217_v45 }
 0x702   :  { %7366 = vmatpush3.bf16.msra.mxu0 %v10041_v8 }
 0x703   :  { %7367 = vmatprep.subr.bf16.mxu0 %v10047_v23 }
 0x706   :  { %7368 = vmatpush3.bf16.msra.mxu0 %v10053_v7 }
 0x707   :  { %7369 = vmatprep.subr.bf16.mxu0 %v10059_v13 }
 0x70a   :  { %7370 = vmatpush3.bf16.msra.mxu0 %v10065_v39 }
 0x70b   :  { %7371 = vmatprep.subr.bf16.mxu0 %v10071_v42 }
 0x70e   :  { %7372 = vmatpush3.bf16.msra.mxu0 %v10077_v44 }
 0x70f   :  { %7373 = vmatprep.subr.bf16.mxu0 %v10083_v46 }
 0x712   :  { %7374 = vmatpush3.bf16.msra.mxu0 %v10089_v59 }
 0x713   :  { %7375 = vmatprep.subr.bf16.mxu0 %v10098_v54 }
 0x716   :  { %7376 = vmatpush3.bf16.msra.mxu0 %v10107_v60 }
 0x717   :  { %7377 = vmatprep.subr.bf16.mxu0 %v10113_v25 }
 0x71a   :  { %7378 = vmatpush3.bf16.msra.mxu0 %v12157_v22 }
 0x71b   :  { %7379 = vmatprep.subr.bf16.mxu0 %v12158_v32 }
 0x71e   :  { %7380 = vmatpush3.bf16.msra.mxu0 %v12159_v1 }
 0x71f   :  { %7965 = vmatprep.subr.bf16.mxu0 %v12146_v0 }
 0x77c   :  { %v2781_v43 = vpop.f32.mrb[72].mxu1 }
 0x77d   :  { %v10526_v37 = vadd.f32 %v2781_v43, %v10387_v10  ;;  %v2783_v20 = vpop.f32.mrb[73].mxu1  ;;  %v2914_v43 = vadd.f32 %v10144_v9, %v10462_v55  ;;  %v8354_v55 = vld [vmem:[%s12106_s3 + $0x3a8] ss:$16 sps:$4 sm:$0xff]  }
 0x77e   :  { %v10530_v11 = vadd.f32 %v2783_v20, %v10391_v41  ;;  %v2785_v30 = vpop.f32.mrb[74].mxu1 }
 0x77f   :  { %v2786_v31 = vpop.f32.mrb[75].mxu1 }
 0x78c   :  { %v2822_v10 = vpop.f32.mrb[76].mxu1 }
 0x78d   :  { %v10539_v53 = vadd.f32 %v2822_v10, %v10400_v47  ;;  %v2824_v41 = vpop.f32.mrb[77].mxu1  ;;  %v8351_v47 = vld [vmem:[%s12106_s3 + $0x388] ss:$16 sps:$4 sm:$0xff]   ;;  %v8356_v10 = vld [vmem:[%s12106_s3 + $0x3ac] ss:$16 sps:$4 sm:$0xff]  }
 0x78e   :  { %v10542_v51 = vadd.f32 %v2824_v41, %v10403_v49  ;;  %v2826_v62 = vpop.f32.mrb[78].mxu1  ;;  %v3226_v41 = vcombine.high %v10489_v26, %v10489_v26  ;;  %v3225_v26 = vcombine.high %v10492_v48, %v10492_v48 }
 0x78f   :  { %v2827_v34 = vpop.f32.mrb[79].mxu1 }
 0x790   :  { %v8364_v34 = vld [vmem:[%s12106_s3 + $0x400] ss:$16 sps:$4 sm:$0xff]  }
 0x7ac   :  { %v7297_v38 = vpop.f32.mrb[80].mxu1 }
 0x7ad   :  { %v7298_v45 = vpop.f32.mrb[81].mxu1 }
 0x7ae   :  { %v7299_v20 = vadd.f32 %v7298_v45, %v7297_v38  ;;  %v7300_v30 = vpop.f32.mrb[82].mxu1  ;;  %v8366_v38 = vld [vmem:[%s12106_s3 + $0x404] ss:$16 sps:$4 sm:$0xff]  }
 0x7af   :  { %v7301_v31 = vpop.f32.mrb[83].mxu1 }
 0x7b0   :  { %v2954_v1 = vadd.f32 %v7299_v20, %v2914_v43  ;;  %v8369_v43 = vld [vmem:[%s12106_s3 + $0x424] ss:$16 sps:$4 sm:$0xff]   ;;  %v8367_v31 = vld [vmem:[%s12106_s3 + $0x420] ss:$16 sps:$4 sm:$0xff]  }
 0x7b2   :  { %v2994_v32 = vadd.f32 %v10473_v52, %v2954_v1  ;;  %v8359_v52 = vld [vmem:[%s12106_s3 + $0x3cc] ss:$16 sps:$4 sm:$0xff]   ;;  %v8360_v1 = vld [vmem:[%s12106_s3 + $0x3e8] ss:$16 sps:$4 sm:$0xff]  }
 0x7b4   :  { %v2999_v22 = vmax.f32 %v2994_v32, 0.0  ;;  %v8362_v32 = vld [vmem:[%s12106_s3 + $0x3ec] ss:$16 sps:$4 sm:$0xff]   ;;  %v7328_v62 = vpop.f32.mrb[68].mxu0 }
 0x7b5   :  { %v7329_v45 = vpop.f32.mrb[69].mxu0 }
 0x7b6   :  { %v3000_v49 = vpack.c.bf16 %v2999_v22, %v2999_v22  ;;  %v8357_v22 = vld [vmem:[%s12106_s3 + $0x3c8] ss:$16 sps:$4 sm:$0xff]   ;;  %v10601_v48 = vadd.f32 %v7329_v45, %v7328_v62  ;;  %v7331_v20 = vpop.f32.mrb[70].mxu0 }
 0x7b7   :  { %v7332_v30 = vpop.f32.mrb[71].mxu0 }
 0x7b8   :  { %6702 = vmatmul.mubr.msk.bf16.vlgmr.msra.gmra.mrb[84].mxu1 %vm817_vm1, %v3000_v49 }
 0x7b9   :  { %3142 = vmatpush1.bf16.msra.mxu1 %v8351_v47  ;;  %3173 = vmatprep.mubr.bf16.mxu1 %v12145_v35  ;;  %v8372_v47 = vld [vmem:[%s12106_s3 + $0x444] ss:$16 sps:$4 sm:$0xff]  }
 0x7ba   :  { %3143 = vmatprep.subr.bf16.mxu1 %v8356_v10 }
 0x7bd   :  { %3144 = vmatpush1.bf16.msra.mxu1 %v8354_v55 }
 0x7be   :  { %3145 = vmatprep.subr.bf16.mxu1 %v8359_v52 }
 0x7c1   :  { %3146 = vmatpush1.bf16.msra.mxu1 %v8357_v22  ;;  %v8375_v22 = vld [vmem:[%s12106_s3 + $0x464] ss:$16 sps:$4 sm:$0xff]  }
 0x7c2   :  { %3147 = vmatprep.subr.bf16.mxu1 %v8362_v32 }
 0x7c5   :  { %3148 = vmatpush1.bf16.msra.mxu1 %v8360_v1  ;;  %v8373_v1 = vld [vmem:[%s12106_s3 + $0x460] ss:$16 sps:$4 sm:$0xff]  }
 0x7c6   :  { %7334 = vmatprep.subr.bf16.mxu1 %v10177_v61 }
 0x7c8   :  { %6703 = vmatmul.mubr.msk.bf16.vlgmr.msra.gmra.mrb[88].mxu1 %vm817_vm1, %v3000_v49  ;;  %v8370_v49 = vld [vmem:[%s12106_s3 + $0x440] ss:$16 sps:$4 sm:$0xff]  }
 0x7c9   :  { %7335 = vmatpush3.bf16.msra.mxu1 %v10184_v63  ;;  %3304 = vmatprep.mubr.bf16.mxu1 %v3226_v41  ;;  %v8378_v41 = vld [vmem:[%s12106_s3 + $0x40c] ss:$16 sps:$4 sm:$0xff]  }
 0x7ca   :  { %7336 = vmatprep.subr.bf16.mxu1 %v10190_v2 }
 0x7cd   :  { %7337 = vmatpush3.bf16.msra.mxu1 %v10196_v15 }
 0x7ce   :  { %7338 = vmatprep.subr.bf16.mxu1 %v10202_v16 }
 0x7d1   :  { %7339 = vmatpush3.bf16.msra.mxu1 %v10208_v57 }
 0x7d2   :  { %7340 = vmatprep.subr.bf16.mxu1 %v10214_v14 }
 0x7d4   :  { %v10612_v10 = vpop.f32.mrb[72].mxu0 }
 0x7d5   :  { %7341 = vmatpush3.bf16.msra.mxu1 %v10220_v27  ;;  %v7963_v55 = vpop.f32.mrb[73].mxu0 }
 0x7d6   :  { %7342 = vmatprep.subr.bf16.mxu1 %v10226_v28  ;;  %v3349_v52 = vpop.f32.mrb[74].mxu0 }
 0x7d7   :  { %v7964_v32 = vpop.f32.mrb[75].mxu0 }
 0x7d9   :  { %7343 = vmatpush3.bf16.msra.mxu1 %v10232_v33 }
 0x7da   :  { %7344 = vmatprep.subr.bf16.mxu1 %v10238_v3 }
 0x7dd   :  { %7345 = vmatpush3.bf16.msra.mxu1 %v10244_v4 }
 0x7de   :  { %7346 = vmatprep.subr.bf16.mxu1 %v10250_v5 }
 0x7e1   :  { %7347 = vmatpush3.bf16.msra.mxu1 %v10256_v50 }
 0x7e2   :  { %7348 = vmatprep.subr.bf16.mxu1 %v10262_v17 }
 0x7e5   :  { %7349 = vmatpush3.bf16.msra.mxu1 %v10270_v12 }
 0x7e6   :  { %3453 = vmatprep.subr.bf16.mxu1 %v8366_v38 }
 0x7e8   :  { %3305 = vmatmul.mubr.bf16.vlgmr.msra.gmra.mrb[92].mxu1 %v3225_v26  ;;  %v3539_v26 = vld [vmem:[%s12103_s0 + $0x2d] sm:$0x1f] }
 0x7e9   :  { %3485 = vmatprep.mubr.bf16.mxu1 %v12145_v35  ;;  %3454 = vmatpush1.bf16.msra.mxu1 %v8364_v34  ;;  %v3548_v62 = vrot.slane %v3539_v26, %v9055_v40 }
 0x7ea   :  { %3455 = vmatprep.subr.bf16.mxu1 %v8369_v43  ;;  %v3541_v43 = vcombine.high %v3539_v26, %v3539_v26  ;;  %v8381_v26 = vld [vmem:[%s12106_s3 + $0x42c] ss:$16 sps:$4 sm:$0xff]  }
 0x7eb   :  { %v3556_v34 = vcombine.high %v3548_v62, %v3548_v62  ;;  %v10631_v45 = vrot.slane %v3548_v62, %v9055_v40  ;;  %v8387_v62 = vld [vmem:[%s12106_s3 + $0x46c] ss:$16 sps:$4 sm:$0xff]  }
 0x7ec   :  { %v3555_v20 = vrot.slane %v3541_v43, %v9055_v40 }
 0x7ed   :  { %3456 = vmatpush1.bf16.msra.mxu1 %v8367_v31  ;;  %v10628_v38 = vrot.slane %v3556_v34, %v9055_v40  ;;  %v8385_v34 = vld [vmem:[%s12106_s3 + $0x468] ss:$16 sps:$4 sm:$0xff]  }
 0x7ee   :  { %3457 = vmatprep.subr.bf16.mxu1 %v8372_v47  ;;  %v3570_v30 = vrot.slane %v3555_v20, %v9055_v40  ;;  %v8403_v20 = vld [vmem:[%s12106_s3 + $0x48c] ss:$16 sps:$4 sm:$0xff]  }
 0x7ef   :  { %3617 = vmatprep.mubr.bf16.mxu0 %v10628_v38  ;;  %v3579_v43 = vcombine.high %v10628_v38, %v10628_v38 }
 0x7f0   :  { %3618 = vmatmul.mubr.bf16.vlgmr.msra.gmra.mrb[76].mxu0 %v10631_v45 }
 0x7f1   :  { %3458 = vmatpush1.bf16.msra.mxu1 %v8370_v49  ;;  %7966 = vmatpush3.bf16.msra.mxu0 %v10320_v21  ;;  %v3267_v49 = vadd.f32 %v10144_v9, %v10601_v48  ;;  %v8379_v9 = vld [vmem:[%s12106_s3 + $0x428] ss:$16 sps:$4 sm:$0xff]   ;;  %v8384_v48 = vld [vmem:[%s12106_s3 + $0x44c] ss:$16 sps:$4 sm:$0xff]  }
 0x7f2   :  { %3459 = vmatprep.subr.bf16.mxu1 %v8375_v22  ;;  %7981 = vmatprep.mubr.msk.bf16.mxu0 %vm8788_vm0, %v12146_v0 }
 0x7f3   :  { %7967 = vmatprep.subr.bf16.mxu0 %v12146_v0 }
 0x7f5   :  { %3460 = vmatpush1.bf16.msra.mxu1 %v8373_v1  ;;  %7968 = vmatpush3.bf16.msra.mxu0 %v10329_v18 }
 0x7f6   :  { %3494 = vmatprep.subr.bf16.mxu1 %v8378_v41  ;;  %7969 = vmatprep.subr.bf16.mxu0 %v12146_v0 }
 0x7f9   :  { %7970 = vmatpush3.bf16.msra.mxu0 %v10336_v56 }
 0x7fa   :  { %7971 = vmatprep.subr.bf16.mxu0 %v12146_v0 }
 0x7fd   :  { %7972 = vmatpush3.bf16.msra.mxu0 %v10343_v24 }
 0x7fe   :  { %7973 = vmatprep.subr.bf16.mxu0 %v12146_v0 }
 0x801   :  { %7974 = vmatpush3.bf16.msra.mxu0 %v10350_v36 }
 0x802   :  { %7975 = vmatprep.subr.bf16.mxu0 %v12146_v0 }
 0x805   :  { %7976 = vmatpush3.bf16.msra.mxu0 %v10357_v58 }
 0x806   :  { %7977 = vmatprep.subr.bf16.mxu0 %v12146_v0 }
 0x809   :  { %7978 = vmatpush3.bf16.msra.mxu0 %v10364_v19 }
 0x80a   :  { %7979 = vmatprep.subr.bf16.mxu0 %v12146_v0 }
 0x80d   :  { %7980 = vmatpush3.bf16.msra.mxu0 %v10372_v29 }
 0x80e   :  { %7418 = vmatprep.subr.bf16.mxu0 %v10035_v6 }
 0x810   :  { %7982 = vmatmul.mubr.bf16.vlgmr.msra.gmra.mrb[80].mxu0 %v3570_v30  ;;  %v3892_v30 = vld [vmem:[%s12103_s0 + $0x32] sm:$0x1f] }
 0x811   :  { %7419 = vmatpush3.bf16.msra.mxu0 %v10041_v8 }
 0x812   :  { %7420 = vmatprep.subr.bf16.mxu0 %v10047_v23 }
 0x815   :  { %7421 = vmatpush3.bf16.msra.mxu0 %v10053_v7 }
 0x816   :  { %7422 = vmatprep.subr.bf16.mxu0 %v10059_v13 }
 0x819   :  { %7423 = vmatpush3.bf16.msra.mxu0 %v10065_v39  ;;  %v12160_v39 = vld [vmem:[#allocation10_spill] sm:$0xff] }
 0x81a   :  { %7424 = vmatprep.subr.bf16.mxu0 %v10071_v42  ;;  %v12161_v42 = vld [vmem:[#allocation11_spill] sm:$0xff] }
 0x81d   :  { %7425 = vmatpush3.bf16.msra.mxu0 %v10077_v44  ;;  %v12162_v44 = vld [vmem:[#allocation7_spill] sm:$0xff] }
 0x81e   :  { %7426 = vmatprep.subr.bf16.mxu0 %v10083_v46 }
 0x821   :  { %7427 = vmatpush3.bf16.msra.mxu0 %v10089_v59 }
 0x822   :  { %7428 = vmatprep.subr.bf16.mxu0 %v10098_v54 }
 0x825   :  { %7429 = vmatpush3.bf16.msra.mxu0 %v10107_v60 }
 0x826   :  { %7430 = vmatprep.subr.bf16.mxu0 %v10113_v25 }
 0x829   :  { %7431 = vmatpush3.bf16.msra.mxu0 %v12160_v39  ;;  %v10826_v39 = vld [vmem:[%s12104_s1 + $0x10] sm:$0xff]  }
 0x82a   :  { %7432 = vmatprep.subr.bf16.mxu0 %v12161_v42  ;;  %v10832_v42 = vld [vmem:[%s12104_s1 + $0x58] sm:$0xff]  }
 0x82d   :  { %7433 = vmatpush3.bf16.msra.mxu0 %v12162_v44  ;;  %v10838_v44 = vld [vmem:[%s12104_s1 + $0x18] sm:$0xff]  }
 0x82e   :  { %7985 = vmatprep.subr.bf16.mxu0 %v12146_v0 }
 0x88b   :  { %v3134_v31 = vpop.f32.mrb[84].mxu1 }
 0x88c   :  { %v10665_v6 = vadd.f32 %v3134_v31, %v10526_v37  ;;  %v3136_v8 = vpop.f32.mrb[85].mxu1  ;;  %v3901_v31 = vrot.slane %v3892_v30, %v9055_v40 }
 0x88d   :  { %v10669_v23 = vadd.f32 %v3136_v8, %v10530_v11  ;;  %v3138_v7 = vpop.f32.mrb[86].mxu1 }
 0x88e   :  { %v3139_v13 = vpop.f32.mrb[87].mxu1  ;;  %v3909_v8 = vcombine.high %v3901_v31, %v3901_v31 }
 0x88f   :  { %v10770_v13 = vrot.slane %v3901_v31, %v9055_v40  ;;  %v10981_v31 = vld [vmem:[%s12104_s1 + $0x98] sm:$0xff]  }
 0x890   :  { %v10767_v7 = vrot.slane %v3909_v8, %v9055_v40  ;;  %v10987_v8 = vld [vmem:[%s12104_s1 + $0xe0] sm:$0xff]  }
 0x892   :  { %3970 = vmatprep.mubr.bf16.mxu0 %v10767_v7 }
 0x893   :  { %3971 = vmatmul.mubr.bf16.vlgmr.msra.gmra.mrb[84].mxu0 %v10770_v13 }
 0x894   :  { %7986 = vmatpush3.bf16.msra.mxu0 %v10320_v21  ;;  %8001 = vmatprep.mubr.msk.bf16.mxu0 %vm8788_vm0, %v12146_v0  ;;  %v3894_v21 = vcombine.high %v3892_v30, %v3892_v30  ;;  %v10975_v30 = vld [vmem:[%s12104_s1 + $0xd8] sm:$0xff]  }
 0x895   :  { %7987 = vmatprep.subr.bf16.mxu0 %v12146_v0 }
 0x898   :  { %7988 = vmatpush3.bf16.msra.mxu0 %v10329_v18  ;;  %v3908_v18 = vrot.slane %v3894_v21, %v9055_v40  ;;  %v10999_v21 = vld [vmem:[%s12104_s1 + $0xe8] sm:$0xff]  }
 0x899   :  { %7989 = vmatprep.subr.bf16.mxu0 %v12146_v0 }
 0x89b   :  { %v3175_v46 = vpop.f32.mrb[88].mxu1 }
 0x89c   :  { %v10678_v59 = vadd.f32 %v3175_v46, %v10539_v53  ;;  %v3177_v54 = vpop.f32.mrb[89].mxu1  ;;  %v8376_v53 = vld [vmem:[%s12106_s3 + $0x408] ss:$16 sps:$4 sm:$0xff]   ;;  %7990 = vmatpush3.bf16.msra.mxu0 %v10336_v56  ;;  %v3923_v56 = vrot.slane %v3908_v18, %v9055_v40  ;;  %v10844_v46 = vld [vmem:[%s12104_s1 + $0x60] sm:$0xff]  }
 0x89d   :  { %v10681_v37 = vadd.f32 %v3177_v54, %v10542_v51  ;;  %v3179_v11 = vpop.f32.mrb[90].mxu1  ;;  %7991 = vmatprep.subr.bf16.mxu0 %v12146_v0  ;;  %v11005_v18 = vld [vmem:[%s12104_s1 + $0xa8] sm:$0xff]  }
 0x89e   :  { %v3180_v60 = vpop.f32.mrb[91].mxu1  ;;  %v10850_v11 = vld [vmem:[%s12104_s1 + $0x20] sm:$0xff]  }
 0x8a0   :  { %7992 = vmatpush3.bf16.msra.mxu0 %v10343_v24  ;;  %v10796_v24 = vld [vmem:[%s12104_s1 + $0x40] sm:$0xff]  }
 0x8a1   :  { %7993 = vmatprep.subr.bf16.mxu0 %v12146_v0 }
 0x8a4   :  { %7994 = vmatpush3.bf16.msra.mxu0 %v10350_v36  ;;  %v10802_v36 = vld [vmem:[%s12104_s1] sm:$0xff]  }
 0x8a5   :  { %7995 = vmatprep.subr.bf16.mxu0 %v12146_v0 }
 0x8a8   :  { %7996 = vmatpush3.bf16.msra.mxu0 %v10357_v58  ;;  %v10808_v58 = vld [vmem:[%s12104_s1 + $0x48] sm:$0xff]  }
 0x8a9   :  { %7997 = vmatprep.subr.bf16.mxu0 %v12146_v0 }
 0x8ac   :  { %7998 = vmatpush3.bf16.msra.mxu0 %v10364_v19  ;;  %v10814_v19 = vld [vmem:[%s12104_s1 + $0x8] sm:$0xff]  }
 0x8ad   :  { %7999 = vmatprep.subr.bf16.mxu0 %v12146_v0 }
 0x8b0   :  { %8000 = vmatpush3.bf16.msra.mxu0 %v10372_v29  ;;  %v10820_v29 = vld [vmem:[%s12104_s1 + $0x50] sm:$0xff]  }
 0x8b1   :  { %7471 = vmatprep.subr.bf16.mxu0 %v10796_v24 }
 0x8b3   :  { %8002 = vmatmul.mubr.bf16.vlgmr.msra.gmra.mrb[88].mxu0 %v3923_v56  ;;  %v11011_v56 = vld [vmem:[%s12104_s1 + $0xf0] sm:$0xff]  }
 0x8b4   :  { %7472 = vmatpush3.bf16.msra.mxu0 %v10802_v36 }
 0x8b5   :  { %7473 = vmatprep.subr.bf16.mxu0 %v10808_v58 }
 0x8b8   :  { %7474 = vmatpush3.bf16.msra.mxu0 %v10814_v19 }
 0x8b9   :  { %7475 = vmatprep.subr.bf16.mxu0 %v10820_v29 }
 0x8bb   :  { %v7350_v47 = vpop.f32.mrb[92].mxu1 }
 0x8bc   :  { %v7351_v25 = vpop.f32.mrb[93].mxu1  ;;  %7476 = vmatpush3.bf16.msra.mxu0 %v10826_v39 }
 0x8bd   :  { %v7352_v55 = vadd.f32 %v7351_v25, %v7350_v47  ;;  %v7353_v52 = vpop.f32.mrb[94].mxu1  ;;  %7477 = vmatprep.subr.bf16.mxu0 %v10832_v42  ;;  %v10859_v25 = vld [vmem:[%s12104_s1 + $0x68] sm:$0xff]  }
 0x8be   :  { %v7354_v22 = vpop.f32.mrb[95].mxu1 }
 0x8bf   :  { %v3307_v32 = vadd.f32 %v7352_v55, %v3267_v49  ;;  %v10868_v22 = vld [vmem:[%s12104_s1 + $0x28] sm:$0xff]  }
 0x8c0   :  { %7478 = vmatpush3.bf16.msra.mxu0 %v10838_v44 }
 0x8c1   :  { %v3347_v1 = vadd.f32 %v10612_v10, %v3307_v32  ;;  %v8382_v10 = vld [vmem:[%s12106_s3 + $0x448] ss:$16 sps:$4 sm:$0xff]   ;;  %7479 = vmatprep.subr.bf16.mxu0 %v10844_v46 }
 0x8c2   :  { %v10886_v32 = vld [vmem:[%s12104_s1 + $0x78] sm:$0xff]  }
 0x8c3   :  { %v3352_v41 = vmax.f32 %v3347_v1, 0.0  ;;  %12164 = vst [vmem:[#allocation9_spill] sm:$0xff] %v10886_v32  ;;  %v10892_v1 = vld [vmem:[%s12104_s1 + $0x38] sm:$0xff]  }
 0x8c4   :  { %7480 = vmatpush3.bf16.msra.mxu0 %v10850_v11  ;;  %12165 = vst [vmem:[#allocation10_spill] sm:$0xff] %v10892_v1 }
 0x8c5   :  { %v3353_v51 = vpack.c.bf16 %v3352_v41, %v3352_v41  ;;  %7481 = vmatprep.subr.bf16.mxu0 %v10859_v25 }
 0x8c7   :  { %6720 = vmatmul.mubr.msk.bf16.vlgmr.msra.gmra.mrb[96].mxu1 %vm817_vm1, %v3353_v51 }
 0x8c8   :  { %3495 = vmatpush1.bf16.msra.mxu1 %v8376_v53  ;;  %3526 = vmatprep.mubr.bf16.mxu1 %v12145_v35 }
 0x8c9   :  { %3496 = vmatprep.subr.bf16.mxu1 %v8381_v26  ;;  %7482 = vmatpush3.bf16.msra.mxu0 %v10868_v22 }
 0x8cc   :  { %3497 = vmatpush1.bf16.msra.mxu1 %v8379_v9 }
 0x8cd   :  { %3498 = vmatprep.subr.bf16.mxu1 %v8384_v48 }
 0x8d0   :  { %3499 = vmatpush1.bf16.msra.mxu1 %v8382_v10 }
 0x8d1   :  { %3500 = vmatprep.subr.bf16.mxu1 %v8387_v62 }
 0x8d4   :  { %3501 = vmatpush1.bf16.msra.mxu1 %v8385_v34  ;;  %v10905_v34 = vld [vmem:[%s12105_s2] ss:$0 sm:$0xff] }
 0x8d5   :  { %7387 = vmatprep.subr.bf16.mxu1 %v10177_v61  ;;  %v3578_v61 = vcombine.high %v10631_v45, %v10631_v45  ;;  %v8398_v45 = vld [vmem:[%s12106_s3 + $0x4e0] ss:$16 sps:$4 sm:$0xff]  }
 0x8d7   :  { %6721 = vmatmul.mubr.msk.bf16.vlgmr.msra.gmra.mrb[100].mxu1 %vm817_vm1, %v3353_v51 }
 0x8d8   :  { %7388 = vmatpush3.bf16.msra.mxu1 %v10184_v63  ;;  %3657 = vmatprep.mubr.bf16.mxu1 %v3579_v43  ;;  %v7381_v63 = vpop.f32.mrb[76].mxu0 }
 0x8d9   :  { %7389 = vmatprep.subr.bf16.mxu1 %v10190_v2  ;;  %v8389_v2 = vld [vmem:[%s12106_s3 + $0x480] ss:$16 sps:$4 sm:$0xff]  }
 0x8dc   :  { %7390 = vmatpush3.bf16.msra.mxu1 %v10196_v15  ;;  %v8391_v15 = vld [vmem:[%s12106_s3 + $0x484] ss:$16 sps:$4 sm:$0xff]  }
 0x8dd   :  { %7391 = vmatprep.subr.bf16.mxu1 %v10202_v16  ;;  %v7382_v16 = vpop.f32.mrb[77].mxu0 }
 0x8e0   :  { %7392 = vmatpush3.bf16.msra.mxu1 %v10208_v57  ;;  %v8394_v57 = vld [vmem:[%s12106_s3 + $0x4a4] ss:$16 sps:$4 sm:$0xff]  }
 0x8e1   :  { %7393 = vmatprep.subr.bf16.mxu1 %v10214_v14  ;;  %v10740_v14 = vadd.f32 %v7382_v16, %v7381_v63  ;;  %v8401_v16 = vld [vmem:[%s12106_s3 + $0x488] ss:$16 sps:$4 sm:$0xff]  }
 0x8e3   :  { %v3620_v43 = vadd.f32 %v10905_v34, %v10740_v14  ;;  %v8404_v14 = vld [vmem:[%s12106_s3 + $0x4a8] ss:$16 sps:$4 sm:$0xff]  }
 0x8e4   :  { %7394 = vmatpush3.bf16.msra.mxu1 %v10220_v27  ;;  %v7384_v27 = vpop.f32.mrb[78].mxu0 }
 0x8e5   :  { %7395 = vmatprep.subr.bf16.mxu1 %v10226_v28  ;;  %v7385_v28 = vpop.f32.mrb[79].mxu0  ;;  %v8406_v27 = vld [vmem:[%s12106_s3 + $0x4ac] ss:$16 sps:$4 sm:$0xff]  }
 0x8e6   :  { %v8409_v28 = vld [vmem:[%s12106_s3 + $0x4cc] ss:$16 sps:$4 sm:$0xff]  }
 0x8e8   :  { %7396 = vmatpush3.bf16.msra.mxu1 %v10232_v33  ;;  %v8392_v33 = vld [vmem:[%s12106_s3 + $0x4a0] ss:$16 sps:$4 sm:$0xff]  }
 0x8e9   :  { %7397 = vmatprep.subr.bf16.mxu1 %v10238_v3  ;;  %v8397_v3 = vld [vmem:[%s12106_s3 + $0x4c4] ss:$16 sps:$4 sm:$0xff]  }
 0x8ec   :  { %7398 = vmatpush3.bf16.msra.mxu1 %v10244_v4  ;;  %v8395_v4 = vld [vmem:[%s12106_s3 + $0x4c0] ss:$16 sps:$4 sm:$0xff]  }
 0x8ed   :  { %7399 = vmatprep.subr.bf16.mxu1 %v10250_v5  ;;  %v10751_v5 = vpop.f32.mrb[80].mxu0 }
 0x8f0   :  { %7400 = vmatpush3.bf16.msra.mxu1 %v10256_v50  ;;  %v7983_v50 = vpop.f32.mrb[81].mxu0 }
 0x8f1   :  { %7401 = vmatprep.subr.bf16.mxu1 %v10262_v17  ;;  %v3702_v17 = vpop.f32.mrb[82].mxu0  ;;  %v10938_v50 = vld [vmem:[%s12104_s1 + $0xc0] sm:$0xff]  }
 0x8f2   :  { %v7984_v38 = vpop.f32.mrb[83].mxu0  ;;  %v10945_v17 = vld [vmem:[%s12104_s1 + $0x80] sm:$0xff]  }
 0x8f3   :  { %v10957_v38 = vld [vmem:[%s12104_s1 + $0x88] sm:$0xff]  }
 0x8f4   :  { %7402 = vmatpush3.bf16.msra.mxu1 %v10270_v12  ;;  %v8400_v12 = vld [vmem:[%s12106_s3 + $0x4e4] ss:$16 sps:$4 sm:$0xff]  }
 0x8f5   :  { %3806 = vmatprep.subr.bf16.mxu1 %v8391_v15 }
 0x8f7   :  { %3658 = vmatmul.mubr.bf16.vlgmr.msra.gmra.mrb[104].mxu1 %v3578_v61 }
 0x8f8   :  { %3838 = vmatprep.mubr.bf16.mxu1 %v12145_v35  ;;  %3807 = vmatpush1.bf16.msra.mxu1 %v8389_v2 }
 0x8f9   :  { %3808 = vmatprep.subr.bf16.mxu1 %v8394_v57 }
 0x8fc   :  { %3809 = vmatpush1.bf16.msra.mxu1 %v8392_v33  ;;  %v8407_v33 = vld [vmem:[%s12106_s3 + $0x4c8] ss:$16 sps:$4 sm:$0xff]  }
 0x8fd   :  { %3810 = vmatprep.subr.bf16.mxu1 %v8397_v3  ;;  %v8412_v3 = vld [vmem:[%s12106_s3 + $0x4ec] ss:$16 sps:$4 sm:$0xff]  }
 0x900   :  { %3811 = vmatpush1.bf16.msra.mxu1 %v8395_v4  ;;  %v8410_v4 = vld [vmem:[%s12106_s3 + $0x4e8] ss:$16 sps:$4 sm:$0xff]  }
 0x901   :  { %3812 = vmatprep.subr.bf16.mxu1 %v8400_v12  ;;  %v10951_v12 = vld [vmem:[%s12104_s1 + $0xc8] sm:$0xff]  }
 0x904   :  { %3813 = vmatpush1.bf16.msra.mxu1 %v8398_v45  ;;  %v10963_v45 = vld [vmem:[%s12104_s1 + $0xd0] sm:$0xff]  }
 0x905   :  { %3847 = vmatprep.subr.bf16.mxu1 %v8403_v20  ;;  %v10969_v20 = vld [vmem:[%s12104_s1 + $0x90] sm:$0xff]  }
 0x99a   :  { %v3487_v54 = vpop.f32.mrb[96].mxu1 }
 0x99b   :  { %v10854_v60 = vadd.f32 %v3487_v54, %v10665_v6  ;;  %v3489_v47 = vpop.f32.mrb[97].mxu1  ;;  %v10874_v6 = vld [vmem:[%s12104_s1 + $0x70] sm:$0xff]  }
 0x99c   :  { %v10863_v49 = vadd.f32 %v3489_v47, %v10669_v23  ;;  %v3491_v55 = vpop.f32.mrb[98].mxu1  ;;  %7483 = vmatprep.subr.bf16.mxu0 %v10874_v6  ;;  %v10880_v23 = vld [vmem:[%s12104_s1 + $0x30] sm:$0xff]   ;;  %v11023_v47 = vld [vmem:[%s12104_s1 + $0xf8] sm:$0xff]  }
 0x99d   :  { %v3492_v52 = vpop.f32.mrb[99].mxu1  ;;  %12163 = vst [vmem:[#allocation8_spill] sm:$0xff] %v10880_v23  ;;  %7484 = vmatpush3.bf16.msra.mxu0 %v10880_v23  ;;  %v11017_v54 = vld [vmem:[%s12104_s1 + $0xb0] sm:$0xff]   ;;  %v3931_v55 = vcombine.high %v10770_v13, %v10770_v13 }
 0x99e   :  { %7485 = vmatprep.subr.bf16.mxu0 %v10886_v32  ;;  %v11031_v52 = vld [vmem:[%s12104_s1 + $0xb8] sm:$0xff]  }
 0x9a1   :  { %7486 = vmatpush3.bf16.msra.mxu0 %v10892_v1 }
 0x9a2   :  { %8005 = vmatprep.subr.bf16.mxu0 %v12146_v0 }
 0x9aa   :  { %v3528_v41 = vpop.f32.mrb[100].mxu1 }
 0x9ab   :  { %v10897_v53 = vadd.f32 %v3528_v41, %v10678_v59  ;;  %v3530_v51 = vpop.f32.mrb[101].mxu1  ;;  %v7434_v41 = vpop.f32.mrb[84].mxu0 }
 0x9ac   :  { %v10900_v26 = vadd.f32 %v3530_v51, %v10681_v37  ;;  %v3532_v9 = vpop.f32.mrb[102].mxu1  ;;  %v8414_v51 = vld [vmem:[%s12106_s3 + $0x500] ss:$16 sps:$4 sm:$0xff]   ;;  %v7435_v13 = vpop.f32.mrb[85].mxu0 }
 0x9ad   :  { %v3533_v48 = vpop.f32.mrb[103].mxu1  ;;  %v8416_v9 = vld [vmem:[%s12106_s3 + $0x504] ss:$16 sps:$4 sm:$0xff]  }
 0x9ae   :  { %v8419_v48 = vld [vmem:[%s12106_s3 + $0x524] ss:$16 sps:$4 sm:$0xff]  }
 0x9ca   :  { %v7403_v10 = vpop.f32.mrb[104].mxu1 }
 0x9cb   :  { %v7404_v62 = vpop.f32.mrb[105].mxu1 }
 0x9cc   :  { %v7405_v61 = vadd.f32 %v7404_v62, %v7403_v10  ;;  %v7406_v63 = vpop.f32.mrb[106].mxu1  ;;  %v11044_v10 = vadd.f32 %v7435_v13, %v7434_v41  ;;  %v7437_v62 = vpop.f32.mrb[86].mxu0  ;;  %v11090_v41 = vld [vmem:[%s12104_s1 + $0x108] sm:$0xff]   ;;  %v11111_v13 = vld [vmem:[%s12104_s1 + $0x120] sm:$0xff]  }
 0x9cd   :  { %v7407_v59 = vpop.f32.mrb[107].mxu1  ;;  %v8422_v63 = vld [vmem:[%s12106_s3 + $0x544] ss:$16 sps:$4 sm:$0xff]  }
 0x9ce   :  { %v3660_v2 = vadd.f32 %v7405_v61, %v3620_v43  ;;  %v7438_v43 = vpop.f32.mrb[87].mxu0  ;;  %v8417_v61 = vld [vmem:[%s12106_s3 + $0x520] ss:$16 sps:$4 sm:$0xff]  }
 0x9cf   :  { %v8420_v59 = vld [vmem:[%s12106_s3 + $0x540] ss:$16 sps:$4 sm:$0xff]  }
 0x9d0   :  { %v3700_v15 = vadd.f32 %v10751_v5, %v3660_v2  ;;  %v3932_v5 = vcombine.high %v10767_v7, %v10767_v7  ;;  %v10993_v7 = vld [vmem:[%s12104_s1 + $0xa0] sm:$0xff]   ;;  %v11055_v2 = vpop.f32.mrb[88].mxu0  ;;  %v11125_v43 = vld [vmem:[%s12104_s1 + $0x130] sm:$0xff]  }
 0x9d2   :  { %v3705_v37 = vmax.f32 %v3700_v15, 0.0  ;;  %v8003_v15 = vpop.f32.mrb[89].mxu0 }
 0x9d4   :  { %v3706_v57 = vpack.c.bf16 %v3705_v37, %v3705_v37  ;;  %v4055_v37 = vpop.f32.mrb[90].mxu0 }
 0x9d6   :  { %6738 = vmatmul.mubr.msk.bf16.vlgmr.msra.gmra.mrb[108].mxu1 %vm817_vm1, %v3706_v57 }
 0x9d7   :  { %3848 = vmatpush1.bf16.msra.mxu1 %v8401_v16  ;;  %3879 = vmatprep.mubr.bf16.mxu1 %v12145_v35  ;;  %v8425_v16 = vld [vmem:[%s12106_s3 + $0x564] ss:$16 sps:$4 sm:$0xff]  }
 0x9d8   :  { %3849 = vmatprep.subr.bf16.mxu1 %v8406_v27  ;;  %v8423_v27 = vld [vmem:[%s12106_s3 + $0x560] ss:$16 sps:$4 sm:$0xff]  }
 0x9db   :  { %3850 = vmatpush1.bf16.msra.mxu1 %v8404_v14  ;;  %v8428_v14 = vld [vmem:[%s12106_s3 + $0x50c] ss:$16 sps:$4 sm:$0xff]  }
 0x9dc   :  { %3851 = vmatprep.subr.bf16.mxu1 %v8409_v28  ;;  %v4245_v28 = vld [vmem:[%s12103_s0 + $0x37] sm:$0x1f] }
 0x9dd   :  { %v4247_v62 = vcombine.high %v4245_v28, %v4245_v28 }
 0x9df   :  { %3852 = vmatpush1.bf16.msra.mxu1 %v8407_v33  ;;  %v4254_v33 = vrot.slane %v4245_v28, %v9055_v40 }
 0x9e0   :  { %3853 = vmatprep.subr.bf16.mxu1 %v8412_v3 }
 0x9e1   :  { %v4262_v3 = vcombine.high %v4254_v33, %v4254_v33 }
 0x9e3   :  { %3854 = vmatpush1.bf16.msra.mxu1 %v8410_v4  ;;  %v11071_v4 = vrot.slane %v4262_v3, %v9055_v40 }
 0x9e4   :  { %7440 = vmatprep.subr.bf16.mxu1 %v10938_v50 }
 0x9e5   :  { %4323 = vmatprep.mubr.bf16.mxu0 %v11071_v4 }
 0x9e6   :  { %6739 = vmatmul.mubr.msk.bf16.vlgmr.msra.gmra.mrb[112].mxu1 %vm817_vm1, %v3706_v57  ;;  %v8004_v57 = vpop.f32.mrb[91].mxu0 }
 0x9e7   :  { %7441 = vmatpush3.bf16.msra.mxu1 %v10945_v17  ;;  %4010 = vmatprep.mubr.bf16.mxu1 %v3932_v5  ;;  %v11074_v5 = vrot.slane %v4254_v33, %v9055_v40 }
 0x9e8   :  { %7442 = vmatprep.subr.bf16.mxu1 %v10951_v12 }
 0x9e9   :  { %4324 = vmatmul.mubr.bf16.vlgmr.msra.gmra.mrb[92].mxu0 %v11074_v5 }
 0x9ea   :  { %8021 = vmatprep.mubr.msk.bf16.mxu0 %vm8788_vm0, %v12146_v0 }
 0x9eb   :  { %7443 = vmatpush3.bf16.msra.mxu1 %v10957_v38 }
 0x9ec   :  { %7444 = vmatprep.subr.bf16.mxu1 %v10963_v45 }
 0x9ef   :  { %7445 = vmatpush3.bf16.msra.mxu1 %v10969_v20 }
 0x9f0   :  { %7446 = vmatprep.subr.bf16.mxu1 %v10975_v30 }
 0x9f3   :  { %7447 = vmatpush3.bf16.msra.mxu1 %v10981_v31 }
 0x9f4   :  { %7448 = vmatprep.subr.bf16.mxu1 %v10987_v8 }
 0x9f7   :  { %7449 = vmatpush3.bf16.msra.mxu1 %v10993_v7 }
 0x9f8   :  { %7450 = vmatprep.subr.bf16.mxu1 %v10999_v21 }
 0x9fb   :  { %7451 = vmatpush3.bf16.msra.mxu1 %v11005_v18 }
 0x9fc   :  { %7452 = vmatprep.subr.bf16.mxu1 %v11011_v56 }
 0x9ff   :  { %7453 = vmatpush3.bf16.msra.mxu1 %v11017_v54 }
 0xa00   :  { %7454 = vmatprep.subr.bf16.mxu1 %v11023_v47 }
 0xa03   :  { %7455 = vmatpush3.bf16.msra.mxu1 %v11031_v52 }
 0xa04   :  { %4159 = vmatprep.subr.bf16.mxu1 %v8416_v9  ;;  %v11104_v9 = vld [vmem:[%s12104_s1 + $0x118] sm:$0xff]  }
 0xa06   :  { %4011 = vmatmul.mubr.bf16.vlgmr.msra.gmra.mrb[116].mxu1 %v3931_v55  ;;  %v11081_v55 = vld [vmem:[%s12104_s1 + $0x100] sm:$0xff]  }
 0xa07   :  { %4191 = vmatprep.mubr.bf16.mxu1 %v12145_v35  ;;  %4160 = vmatpush1.bf16.msra.mxu1 %v8414_v51  ;;  %v11097_v51 = vld [vmem:[%s12104_s1 + $0x110] sm:$0xff]  }
 0xa08   :  { %4161 = vmatprep.subr.bf16.mxu1 %v8419_v48  ;;  %8006 = vmatpush3.bf16.msra.mxu0 %v11081_v55  ;;  %v11118_v48 = vld [vmem:[%s12104_s1 + $0x128] sm:$0xff]  }
 0xa09   :  { %8007 = vmatprep.subr.bf16.mxu0 %v12146_v0 }
 0xa0b   :  { %4162 = vmatpush1.bf16.msra.mxu1 %v8417_v61  ;;  %v4261_v61 = vrot.slane %v4247_v62, %v9055_v40 }
 0xa0c   :  { %4163 = vmatprep.subr.bf16.mxu1 %v8422_v63  ;;  %8008 = vmatpush3.bf16.msra.mxu0 %v11090_v41  ;;  %v11133_v63 = vld [vmem:[%s12104_s1 + $0x138] sm:$0xff]  }
 0xa0d   :  { %8009 = vmatprep.subr.bf16.mxu0 %v12146_v0 }
 0xa0f   :  { %4164 = vmatpush1.bf16.msra.mxu1 %v8420_v59  ;;  %v4276_v59 = vrot.slane %v4261_v61, %v9055_v40 }
 0xa10   :  { %4165 = vmatprep.subr.bf16.mxu1 %v8425_v16  ;;  %8010 = vmatpush3.bf16.msra.mxu0 %v11097_v51 }
 0xa11   :  { %8011 = vmatprep.subr.bf16.mxu0 %v12146_v0 }
 0xa13   :  { %4166 = vmatpush1.bf16.msra.mxu1 %v8423_v27 }
 0xa14   :  { %4200 = vmatprep.subr.bf16.mxu1 %v8428_v14  ;;  %8012 = vmatpush3.bf16.msra.mxu0 %v11104_v9 }
 0xa15   :  { %8013 = vmatprep.subr.bf16.mxu0 %v12146_v0 }
 0xa18   :  { %8014 = vmatpush3.bf16.msra.mxu0 %v11111_v13 }
 0xa19   :  { %8015 = vmatprep.subr.bf16.mxu0 %v12146_v0 }
 0xa1c   :  { %8016 = vmatpush3.bf16.msra.mxu0 %v11118_v48 }
 0xa1d   :  { %8017 = vmatprep.subr.bf16.mxu0 %v12146_v0 }
 0xa20   :  { %8018 = vmatpush3.bf16.msra.mxu0 %v11125_v43 }
 0xa21   :  { %8019 = vmatprep.subr.bf16.mxu0 %v12146_v0 }
 0xa24   :  { %8020 = vmatpush3.bf16.msra.mxu0 %v11133_v63 }
 0xa25   :  { %7524 = vmatprep.subr.bf16.mxu0 %v10796_v24 }
 0xa27   :  { %8022 = vmatmul.mubr.bf16.vlgmr.msra.gmra.mrb[96].mxu0 %v4276_v59 }
 0xa28   :  { %7525 = vmatpush3.bf16.msra.mxu0 %v10802_v36 }
 0xa29   :  { %7526 = vmatprep.subr.bf16.mxu0 %v10808_v58 }
 0xa2c   :  { %7527 = vmatpush3.bf16.msra.mxu0 %v10814_v19 }
 0xa2d   :  { %7528 = vmatprep.subr.bf16.mxu0 %v10820_v29 }
 0xa30   :  { %7529 = vmatpush3.bf16.msra.mxu0 %v10826_v39 }
 0xa31   :  { %7530 = vmatprep.subr.bf16.mxu0 %v10832_v42 }
 0xa34   :  { %7531 = vmatpush3.bf16.msra.mxu0 %v10838_v44 }
 0xa35   :  { %7532 = vmatprep.subr.bf16.mxu0 %v10844_v46 }
 0xa38   :  { %7533 = vmatpush3.bf16.msra.mxu0 %v10850_v11 }
 0xa39   :  { %7534 = vmatprep.subr.bf16.mxu0 %v10859_v25 }
 0xa3c   :  { %7535 = vmatpush3.bf16.msra.mxu0 %v10868_v22 }
 0xa3d   :  { %7536 = vmatprep.subr.bf16.mxu0 %v10874_v6 }
 0xa40   :  { %7537 = vmatpush3.bf16.msra.mxu0 %v10880_v23 }
 0xa41   :  { %7538 = vmatprep.subr.bf16.mxu0 %v10886_v32 }
 0xa44   :  { %7539 = vmatpush3.bf16.msra.mxu0 %v10892_v1 }
 0xa45   :  { %8025 = vmatprep.subr.bf16.mxu0 %v12146_v0 }
 0xaa9   :  { %v3840_v15 = vpop.f32.mrb[108].mxu1 }
 0xaaa   :  { %v11148_v37 = vadd.f32 %v3840_v15, %v10854_v60  ;;  %v3842_v16 = vpop.f32.mrb[109].mxu1  ;;  %v3973_v15 = vadd.f32 %v10905_v34, %v11044_v10  ;;  %v8429_v10 = vld [vmem:[%s12106_s3 + $0x528] ss:$16 sps:$4 sm:$0xff]  }
 0xaab   :  { %v11152_v57 = vadd.f32 %v3842_v16, %v10863_v49  ;;  %v3844_v27 = vpop.f32.mrb[110].mxu1 }
 0xaac   :  { %v3845_v14 = vpop.f32.mrb[111].mxu1 }
 0xab9   :  { %v3881_v60 = vpop.f32.mrb[112].mxu1 }
 0xaba   :  { %v11161_v28 = vadd.f32 %v3881_v60, %v10897_v53  ;;  %v3883_v49 = vpop.f32.mrb[113].mxu1  ;;  %v8426_v53 = vld [vmem:[%s12106_s3 + $0x508] ss:$16 sps:$4 sm:$0xff]   ;;  %v8431_v60 = vld [vmem:[%s12106_s3 + $0x52c] ss:$16 sps:$4 sm:$0xff]  }
 0xabb   :  { %v11164_v33 = vadd.f32 %v3883_v49, %v10900_v26  ;;  %v3885_v3 = vpop.f32.mrb[114].mxu1  ;;  %v4285_v49 = vcombine.high %v11071_v4, %v11071_v4  ;;  %v4284_v4 = vcombine.high %v11074_v5, %v11074_v5 }
 0xabc   :  { %v3886_v62 = vpop.f32.mrb[115].mxu1  ;;  %v7487_v3 = vpop.f32.mrb[92].mxu0 }
 0xabd   :  { %v8439_v62 = vld [vmem:[%s12106_s3 + $0x580] ss:$16 sps:$4 sm:$0xff]  }
 0xad9   :  { %v7456_v61 = vpop.f32.mrb[116].mxu1 }
 0xada   :  { %v7457_v59 = vpop.f32.mrb[117].mxu1 }
 0xadb   :  { %v7458_v16 = vadd.f32 %v7457_v59, %v7456_v61  ;;  %v7459_v27 = vpop.f32.mrb[118].mxu1  ;;  %v8441_v61 = vld [vmem:[%s12106_s3 + $0x584] ss:$16 sps:$4 sm:$0xff]   ;;  %v7488_v59 = vpop.f32.mrb[93].mxu0 }
 0xadc   :  { %v7460_v14 = vpop.f32.mrb[119].mxu1  ;;  %v11223_v5 = vadd.f32 %v7488_v59, %v7487_v3 }
 0xadd   :  { %v4013_v1 = vadd.f32 %v7458_v16, %v3973_v15  ;;  %v8444_v15 = vld [vmem:[%s12106_s3 + $0x5a4] ss:$16 sps:$4 sm:$0xff]   ;;  %v7490_v16 = vpop.f32.mrb[94].mxu0  ;;  %v8442_v14 = vld [vmem:[%s12106_s3 + $0x5a0] ss:$16 sps:$4 sm:$0xff]  }
 0xade   :  { %v7491_v27 = vpop.f32.mrb[95].mxu0 }
 0xadf   :  { %v4053_v32 = vadd.f32 %v11055_v2, %v4013_v1  ;;  %v8437_v1 = vld [vmem:[%s12106_s3 + $0x56c] ss:$16 sps:$4 sm:$0xff]   ;;  %v8435_v2 = vld [vmem:[%s12106_s3 + $0x568] ss:$16 sps:$4 sm:$0xff]  }
 0xae1   :  { %v4058_v23 = vmax.f32 %v4053_v32, 0.0  ;;  %v8434_v32 = vld [vmem:[%s12106_s3 + $0x54c] ss:$16 sps:$4 sm:$0xff]  }
 0xae3   :  { %v4059_v26 = vpack.c.bf16 %v4058_v23, %v4058_v23  ;;  %v8432_v23 = vld [vmem:[%s12106_s3 + $0x548] ss:$16 sps:$4 sm:$0xff]  }
 0xae5   :  { %6756 = vmatmul.mubr.msk.bf16.vlgmr.msra.gmra.mrb[120].mxu1 %vm817_vm1, %v4059_v26 }
 0xae6   :  { %4201 = vmatpush1.bf16.msra.mxu1 %v8426_v53  ;;  %4232 = vmatprep.mubr.bf16.mxu1 %v12145_v35  ;;  %v8447_v53 = vld [vmem:[%s12106_s3 + $0x5c4] ss:$16 sps:$4 sm:$0xff]  }
 0xae7   :  { %4202 = vmatprep.subr.bf16.mxu1 %v8431_v60 }
 0xaea   :  { %4203 = vmatpush1.bf16.msra.mxu1 %v8429_v10 }
 0xaeb   :  { %4204 = vmatprep.subr.bf16.mxu1 %v8434_v32 }
 0xaee   :  { %4205 = vmatpush1.bf16.msra.mxu1 %v8432_v23  ;;  %v8450_v23 = vld [vmem:[%s12106_s3 + $0x5e4] ss:$16 sps:$4 sm:$0xff]  }
 0xaef   :  { %4206 = vmatprep.subr.bf16.mxu1 %v8437_v1 }
 0xaf2   :  { %4207 = vmatpush1.bf16.msra.mxu1 %v8435_v2  ;;  %v8448_v2 = vld [vmem:[%s12106_s3 + $0x5e0] ss:$16 sps:$4 sm:$0xff]  }
 0xaf3   :  { %7493 = vmatprep.subr.bf16.mxu1 %v10938_v50 }
 0xaf5   :  { %6757 = vmatmul.mubr.msk.bf16.vlgmr.msra.gmra.mrb[124].mxu1 %vm817_vm1, %v4059_v26  ;;  %v8445_v26 = vld [vmem:[%s12106_s3 + $0x5c0] ss:$16 sps:$4 sm:$0xff]  }
 0xaf6   :  { %7494 = vmatpush3.bf16.msra.mxu1 %v10945_v17  ;;  %4363 = vmatprep.mubr.bf16.mxu1 %v4285_v49  ;;  %v8453_v49 = vld [vmem:[%s12106_s3 + $0x58c] ss:$16 sps:$4 sm:$0xff]  }
 0xaf7   :  { %7495 = vmatprep.subr.bf16.mxu1 %v10951_v12 }
 0xafa   :  { %7496 = vmatpush3.bf16.msra.mxu1 %v10957_v38  ;;  %v11234_v60 = vpop.f32.mrb[96].mxu0 }
 0xafb   :  { %7497 = vmatprep.subr.bf16.mxu1 %v10963_v45  ;;  %v8023_v10 = vpop.f32.mrb[97].mxu0 }
 0xafc   :  { %v4408_v32 = vpop.f32.mrb[98].mxu0 }
 0xafd   :  { %v8024_v1 = vpop.f32.mrb[99].mxu0 }
 0xafe   :  { %7498 = vmatpush3.bf16.msra.mxu1 %v10969_v20  ;;  %v12166_v1 = vld [vmem:[#allocation8_spill] sm:$0xff] }
 0xaff   :  { %7499 = vmatprep.subr.bf16.mxu1 %v10975_v30 }
 0xb02   :  { %7500 = vmatpush3.bf16.msra.mxu1 %v10981_v31 }
 0xb03   :  { %7501 = vmatprep.subr.bf16.mxu1 %v10987_v8 }
 0xb06   :  { %7502 = vmatpush3.bf16.msra.mxu1 %v10993_v7 }
 0xb07   :  { %7503 = vmatprep.subr.bf16.mxu1 %v10999_v21 }
 0xb0a   :  { %7504 = vmatpush3.bf16.msra.mxu1 %v11005_v18 }
 0xb0b   :  { %7505 = vmatprep.subr.bf16.mxu1 %v11011_v56 }
 0xb0e   :  { %7506 = vmatpush3.bf16.msra.mxu1 %v11017_v54 }
 0xb0f   :  { %7507 = vmatprep.subr.bf16.mxu1 %v11023_v47 }
 0xb12   :  { %7508 = vmatpush3.bf16.msra.mxu1 %v11031_v52 }
 0xb13   :  { %4512 = vmatprep.subr.bf16.mxu1 %v8441_v61 }
 0xb15   :  { %4364 = vmatmul.mubr.bf16.vlgmr.msra.gmra.mrb[128].mxu1 %v4284_v4  ;;  %v4598_v4 = vld [vmem:[%s12103_s0 + $0x3c] sm:$0x1f] }
 0xb16   :  { %4544 = vmatprep.mubr.bf16.mxu1 %v12145_v35  ;;  %4513 = vmatpush1.bf16.msra.mxu1 %v8439_v62  ;;  %v4607_v3 = vrot.slane %v4598_v4, %v9055_v40 }
 0xb17   :  { %4514 = vmatprep.subr.bf16.mxu1 %v8444_v15  ;;  %v4600_v15 = vcombine.high %v4598_v4, %v4598_v4 }
 0xb18   :  { %v4615_v62 = vcombine.high %v4607_v3, %v4607_v3  ;;  %v11253_v59 = vrot.slane %v4607_v3, %v9055_v40 }
 0xb19   :  { %v4614_v16 = vrot.slane %v4600_v15, %v9055_v40 }
 0xb1a   :  { %4515 = vmatpush1.bf16.msra.mxu1 %v8442_v14  ;;  %v11250_v61 = vrot.slane %v4615_v62, %v9055_v40 }
 0xb1b   :  { %4516 = vmatprep.subr.bf16.mxu1 %v8447_v53  ;;  %v4629_v27 = vrot.slane %v4614_v16, %v9055_v40 }
 0xb1c   :  { %4676 = vmatprep.mubr.bf16.mxu0 %v11250_v61 }
 0xb1d   :  { %4677 = vmatmul.mubr.bf16.vlgmr.msra.gmra.mrb[100].mxu0 %v11253_v59 }
 0xb1e   :  { %4517 = vmatpush1.bf16.msra.mxu1 %v8445_v26  ;;  %8026 = vmatpush3.bf16.msra.mxu0 %v11081_v55 }
 0xb1f   :  { %4518 = vmatprep.subr.bf16.mxu1 %v8450_v23  ;;  %8041 = vmatprep.mubr.msk.bf16.mxu0 %vm8788_vm0, %v12146_v0 }
 0xb20   :  { %8027 = vmatprep.subr.bf16.mxu0 %v12146_v0 }
 0xb22   :  { %4519 = vmatpush1.bf16.msra.mxu1 %v8448_v2  ;;  %8028 = vmatpush3.bf16.msra.mxu0 %v11090_v41  ;;  %v12167_v2 = vld [vmem:[#allocation9_spill] sm:$0xff] }
 0xb23   :  { %4553 = vmatprep.subr.bf16.mxu1 %v8453_v49  ;;  %8029 = vmatprep.subr.bf16.mxu0 %v12146_v0  ;;  %v12168_v49 = vld [vmem:[#allocation10_spill] sm:$0xff] }
 0xb26   :  { %8030 = vmatpush3.bf16.msra.mxu0 %v11097_v51 }
 0xb27   :  { %8031 = vmatprep.subr.bf16.mxu0 %v12146_v0 }
 0xb2a   :  { %8032 = vmatpush3.bf16.msra.mxu0 %v11104_v9 }
 0xb2b   :  { %8033 = vmatprep.subr.bf16.mxu0 %v12146_v0 }
 0xb2e   :  { %8034 = vmatpush3.bf16.msra.mxu0 %v11111_v13 }
 0xb2f   :  { %8035 = vmatprep.subr.bf16.mxu0 %v12146_v0 }
 0xb32   :  { %8036 = vmatpush3.bf16.msra.mxu0 %v11118_v48 }
 0xb33   :  { %8037 = vmatprep.subr.bf16.mxu0 %v12146_v0 }
 0xb36   :  { %8038 = vmatpush3.bf16.msra.mxu0 %v11125_v43 }
 0xb37   :  { %8039 = vmatprep.subr.bf16.mxu0 %v12146_v0 }
 0xb3a   :  { %8040 = vmatpush3.bf16.msra.mxu0 %v11133_v63 }
 0xb3b   :  { %7577 = vmatprep.subr.bf16.mxu0 %v10796_v24 }
 0xb3d   :  { %8042 = vmatmul.mubr.bf16.vlgmr.msra.gmra.mrb[104].mxu0 %v4629_v27 }
 0xb3e   :  { %7578 = vmatpush3.bf16.msra.mxu0 %v10802_v36 }
 0xb3f   :  { %7579 = vmatprep.subr.bf16.mxu0 %v10808_v58 }
 0xb42   :  { %7580 = vmatpush3.bf16.msra.mxu0 %v10814_v19 }
 0xb43   :  { %7581 = vmatprep.subr.bf16.mxu0 %v10820_v29 }
 0xb46   :  { %7582 = vmatpush3.bf16.msra.mxu0 %v10826_v39 }
 0xb47   :  { %7583 = vmatprep.subr.bf16.mxu0 %v10832_v42 }
 0xb4a   :  { %7584 = vmatpush3.bf16.msra.mxu0 %v10838_v44 }
 0xb4b   :  { %7585 = vmatprep.subr.bf16.mxu0 %v10844_v46 }
 0xb4e   :  { %7586 = vmatpush3.bf16.msra.mxu0 %v10850_v11 }
 0xb4f   :  { %7587 = vmatprep.subr.bf16.mxu0 %v10859_v25 }
 0xb52   :  { %7588 = vmatpush3.bf16.msra.mxu0 %v10868_v22 }
 0xb53   :  { %7589 = vmatprep.subr.bf16.mxu0 %v10874_v6 }
 0xb56   :  { %7590 = vmatpush3.bf16.msra.mxu0 %v12166_v1 }
 0xb57   :  { %7591 = vmatprep.subr.bf16.mxu0 %v12167_v2 }
 0xb5a   :  { %7592 = vmatpush3.bf16.msra.mxu0 %v12168_v49 }
 0xb5b   :  { %8045 = vmatprep.subr.bf16.mxu0 %v12146_v0 }
 0xbb8   :  { %v4193_v14 = vpop.f32.mrb[120].mxu1 }
 0xbb9   :  { %v11287_v53 = vadd.f32 %v4193_v14, %v11148_v37  ;;  %v4195_v26 = vpop.f32.mrb[121].mxu1  ;;  %v4326_v14 = vadd.f32 %v10905_v34, %v11223_v5  ;;  %v8454_v5 = vld [vmem:[%s12106_s3 + $0x5a8] ss:$16 sps:$4 sm:$0xff]  }
 0xbba   :  { %v11291_v10 = vadd.f32 %v4195_v26, %v11152_v57  ;;  %v4197_v32 = vpop.f32.mrb[122].mxu1 }
 0xbbb   :  { %v4198_v23 = vpop.f32.mrb[123].mxu1 }
 0xbc8   :  { %v4234_v37 = vpop.f32.mrb[124].mxu1 }
 0xbc9   :  { %v11300_v4 = vadd.f32 %v4234_v37, %v11161_v28  ;;  %v4236_v57 = vpop.f32.mrb[125].mxu1  ;;  %v8451_v28 = vld [vmem:[%s12106_s3 + $0x588] ss:$16 sps:$4 sm:$0xff]   ;;  %v8456_v37 = vld [vmem:[%s12106_s3 + $0x5ac] ss:$16 sps:$4 sm:$0xff]  }
 0xbca   :  { %v11303_v3 = vadd.f32 %v4236_v57, %v11164_v33  ;;  %v4238_v62 = vpop.f32.mrb[126].mxu1  ;;  %v4638_v57 = vcombine.high %v11250_v61, %v11250_v61  ;;  %v4637_v61 = vcombine.high %v11253_v59, %v11253_v59 }
 0xbcb   :  { %v4239_v15 = vpop.f32.mrb[127].mxu1 }
 0xbcc   :  { %v8464_v15 = vld [vmem:[%s12106_s3 + $0x600] ss:$16 sps:$4 sm:$0xff]  }
 0xbe8   :  { %v7509_v16 = vpop.f32.mrb[128].mxu1 }
 0xbe9   :  { %v7510_v27 = vpop.f32.mrb[129].mxu1 }
 0xbea   :  { %v7511_v26 = vadd.f32 %v7510_v27, %v7509_v16  ;;  %v7512_v32 = vpop.f32.mrb[130].mxu1  ;;  %v8466_v16 = vld [vmem:[%s12106_s3 + $0x604] ss:$16 sps:$4 sm:$0xff]  }
 0xbeb   :  { %v7513_v23 = vpop.f32.mrb[131].mxu1 }
 0xbec   :  { %v4366_v49 = vadd.f32 %v7511_v26, %v4326_v14  ;;  %v8469_v14 = vld [vmem:[%s12106_s3 + $0x624] ss:$16 sps:$4 sm:$0xff]   ;;  %v8467_v23 = vld [vmem:[%s12106_s3 + $0x620] ss:$16 sps:$4 sm:$0xff]  }
 0xbee   :  { %v4406_v2 = vadd.f32 %v11234_v60, %v4366_v49  ;;  %v8459_v60 = vld [vmem:[%s12106_s3 + $0x5cc] ss:$16 sps:$4 sm:$0xff]   ;;  %v8460_v49 = vld [vmem:[%s12106_s3 + $0x5e8] ss:$16 sps:$4 sm:$0xff]  }
 0xbf0   :  { %v4411_v1 = vmax.f32 %v4406_v2, 0.0  ;;  %v8462_v2 = vld [vmem:[%s12106_s3 + $0x5ec] ss:$16 sps:$4 sm:$0xff]   ;;  %v7540_v62 = vpop.f32.mrb[100].mxu0 }
 0xbf1   :  { %v7541_v27 = vpop.f32.mrb[101].mxu0 }
 0xbf2   :  { %v4412_v33 = vpack.c.bf16 %v4411_v1, %v4411_v1  ;;  %v8457_v1 = vld [vmem:[%s12106_s3 + $0x5c8] ss:$16 sps:$4 sm:$0xff]   ;;  %v11362_v59 = vadd.f32 %v7541_v27, %v7540_v62  ;;  %v7543_v26 = vpop.f32.mrb[102].mxu0 }
 0xbf3   :  { %v7544_v32 = vpop.f32.mrb[103].mxu0 }
 0xbf4   :  { %6774 = vmatmul.mubr.msk.bf16.vlgmr.msra.gmra.mrb[132].mxu1 %vm817_vm1, %v4412_v33 }
 0xbf5   :  { %4554 = vmatpush1.bf16.msra.mxu1 %v8451_v28  ;;  %4585 = vmatprep.mubr.bf16.mxu1 %v12145_v35  ;;  %v8472_v28 = vld [vmem:[%s12106_s3 + $0x644] ss:$16 sps:$4 sm:$0xff]  }
 0xbf6   :  { %4555 = vmatprep.subr.bf16.mxu1 %v8456_v37 }
 0xbf9   :  { %4556 = vmatpush1.bf16.msra.mxu1 %v8454_v5 }
 0xbfa   :  { %4557 = vmatprep.subr.bf16.mxu1 %v8459_v60 }
 0xbfd   :  { %4558 = vmatpush1.bf16.msra.mxu1 %v8457_v1  ;;  %v8475_v1 = vld [vmem:[%s12106_s3 + $0x664] ss:$16 sps:$4 sm:$0xff]  }
 0xbfe   :  { %4559 = vmatprep.subr.bf16.mxu1 %v8462_v2 }
 0xc01   :  { %4560 = vmatpush1.bf16.msra.mxu1 %v8460_v49  ;;  %v8473_v49 = vld [vmem:[%s12106_s3 + $0x660] ss:$16 sps:$4 sm:$0xff]  }
 0xc02   :  { %7546 = vmatprep.subr.bf16.mxu1 %v10938_v50 }
 0xc04   :  { %6775 = vmatmul.mubr.msk.bf16.vlgmr.msra.gmra.mrb[136].mxu1 %vm817_vm1, %v4412_v33  ;;  %v8470_v33 = vld [vmem:[%s12106_s3 + $0x640] ss:$16 sps:$4 sm:$0xff]  }
 0xc05   :  { %7547 = vmatpush3.bf16.msra.mxu1 %v10945_v17  ;;  %4716 = vmatprep.mubr.bf16.mxu1 %v4638_v57  ;;  %v8478_v57 = vld [vmem:[%s12106_s3 + $0x60c] ss:$16 sps:$4 sm:$0xff]  }
 0xc06   :  { %7548 = vmatprep.subr.bf16.mxu1 %v10951_v12 }
 0xc09   :  { %7549 = vmatpush3.bf16.msra.mxu1 %v10957_v38 }
 0xc0a   :  { %7550 = vmatprep.subr.bf16.mxu1 %v10963_v45 }
 0xc0d   :  { %7551 = vmatpush3.bf16.msra.mxu1 %v10969_v20 }
 0xc0e   :  { %7552 = vmatprep.subr.bf16.mxu1 %v10975_v30 }
 0xc10   :  { %v11373_v37 = vpop.f32.mrb[104].mxu0 }
 0xc11   :  { %7553 = vmatpush3.bf16.msra.mxu1 %v10981_v31  ;;  %v8043_v5 = vpop.f32.mrb[105].mxu0 }
 0xc12   :  { %7554 = vmatprep.subr.bf16.mxu1 %v10987_v8  ;;  %v4761_v60 = vpop.f32.mrb[106].mxu0 }
 0xc13   :  { %v8044_v2 = vpop.f32.mrb[107].mxu0 }
 0xc15   :  { %7555 = vmatpush3.bf16.msra.mxu1 %v10993_v7 }
 0xc16   :  { %7556 = vmatprep.subr.bf16.mxu1 %v10999_v21 }
 0xc19   :  { %7557 = vmatpush3.bf16.msra.mxu1 %v11005_v18 }
 0xc1a   :  { %7558 = vmatprep.subr.bf16.mxu1 %v11011_v56 }
 0xc1d   :  { %7559 = vmatpush3.bf16.msra.mxu1 %v11017_v54 }
 0xc1e   :  { %7560 = vmatprep.subr.bf16.mxu1 %v11023_v47 }
 0xc21   :  { %7561 = vmatpush3.bf16.msra.mxu1 %v11031_v52 }
 0xc22   :  { %4865 = vmatprep.subr.bf16.mxu1 %v8466_v16 }
 0xc24   :  { %4717 = vmatmul.mubr.bf16.vlgmr.msra.gmra.mrb[140].mxu1 %v4637_v61  ;;  %v4951_v61 = vld [vmem:[%s12103_s0 + $0x41] sm:$0x1f] }
 0xc25   :  { %4897 = vmatprep.mubr.bf16.mxu1 %v12145_v35  ;;  %4866 = vmatpush1.bf16.msra.mxu1 %v8464_v15  ;;  %v4960_v62 = vrot.slane %v4951_v61, %v9055_v40 }
 0xc26   :  { %4867 = vmatprep.subr.bf16.mxu1 %v8469_v14  ;;  %v4953_v14 = vcombine.high %v4951_v61, %v4951_v61  ;;  %v8481_v61 = vld [vmem:[%s12106_s3 + $0x62c] ss:$16 sps:$4 sm:$0xff]  }
 0xc27   :  { %v4968_v15 = vcombine.high %v4960_v62, %v4960_v62  ;;  %v11392_v27 = vrot.slane %v4960_v62, %v9055_v40  ;;  %v8487_v62 = vld [vmem:[%s12106_s3 + $0x66c] ss:$16 sps:$4 sm:$0xff]  }
 0xc28   :  { %v4967_v26 = vrot.slane %v4953_v14, %v9055_v40 }
 0xc29   :  { %4868 = vmatpush1.bf16.msra.mxu1 %v8467_v23  ;;  %v11389_v16 = vrot.slane %v4968_v15, %v9055_v40  ;;  %v8485_v15 = vld [vmem:[%s12106_s3 + $0x668] ss:$16 sps:$4 sm:$0xff]  }
 0xc2a   :  { %4869 = vmatprep.subr.bf16.mxu1 %v8472_v28  ;;  %v4982_v32 = vrot.slane %v4967_v26, %v9055_v40  ;;  %v8503_v26 = vld [vmem:[%s12106_s3 + $0x68c] ss:$16 sps:$4 sm:$0xff]  }
 0xc2b   :  { %5029 = vmatprep.mubr.bf16.mxu0 %v11389_v16  ;;  %v4991_v14 = vcombine.high %v11389_v16, %v11389_v16 }
 0xc2c   :  { %5030 = vmatmul.mubr.bf16.vlgmr.msra.gmra.mrb[108].mxu0 %v11392_v27 }
 0xc2d   :  { %4870 = vmatpush1.bf16.msra.mxu1 %v8470_v33  ;;  %8046 = vmatpush3.bf16.msra.mxu0 %v11081_v55  ;;  %v4679_v33 = vadd.f32 %v10905_v34, %v11362_v59  ;;  %v8479_v34 = vld [vmem:[%s12106_s3 + $0x628] ss:$16 sps:$4 sm:$0xff]   ;;  %v8484_v59 = vld [vmem:[%s12106_s3 + $0x64c] ss:$16 sps:$4 sm:$0xff]  }
 0xc2e   :  { %4871 = vmatprep.subr.bf16.mxu1 %v8475_v1  ;;  %8061 = vmatprep.mubr.msk.bf16.mxu0 %vm8788_vm0, %v12146_v0 }
 0xc2f   :  { %8047 = vmatprep.subr.bf16.mxu0 %v12146_v0 }
 0xc31   :  { %4872 = vmatpush1.bf16.msra.mxu1 %v8473_v49  ;;  %8048 = vmatpush3.bf16.msra.mxu0 %v11090_v41 }
 0xc32   :  { %4906 = vmatprep.subr.bf16.mxu1 %v8478_v57  ;;  %8049 = vmatprep.subr.bf16.mxu0 %v12146_v0 }
 0xc35   :  { %8050 = vmatpush3.bf16.msra.mxu0 %v11097_v51 }
 0xc36   :  { %8051 = vmatprep.subr.bf16.mxu0 %v12146_v0 }
 0xc39   :  { %8052 = vmatpush3.bf16.msra.mxu0 %v11104_v9 }
 0xc3a   :  { %8053 = vmatprep.subr.bf16.mxu0 %v12146_v0 }
 0xc3d   :  { %8054 = vmatpush3.bf16.msra.mxu0 %v11111_v13 }
 0xc3e   :  { %8055 = vmatprep.subr.bf16.mxu0 %v12146_v0 }
 0xc41   :  { %8056 = vmatpush3.bf16.msra.mxu0 %v11118_v48 }
 0xc42   :  { %8057 = vmatprep.subr.bf16.mxu0 %v12146_v0 }
 0xc45   :  { %8058 = vmatpush3.bf16.msra.mxu0 %v11125_v43 }
 0xc46   :  { %8059 = vmatprep.subr.bf16.mxu0 %v12146_v0 }
 0xc49   :  { %8060 = vmatpush3.bf16.msra.mxu0 %v11133_v63 }
 0xc4a   :  { %7630 = vmatprep.subr.bf16.mxu0 %v10796_v24 }
 0xc4c   :  { %8062 = vmatmul.mubr.bf16.vlgmr.msra.gmra.mrb[112].mxu0 %v4982_v32  ;;  %v5304_v32 = vld [vmem:[%s12103_s0 + $0x46] sm:$0x1f] }
 0xc4d   :  { %7631 = vmatpush3.bf16.msra.mxu0 %v10802_v36 }
 0xc4e   :  { %7632 = vmatprep.subr.bf16.mxu0 %v10808_v58 }
 0xc51   :  { %7633 = vmatpush3.bf16.msra.mxu0 %v10814_v19 }
 0xc52   :  { %7634 = vmatprep.subr.bf16.mxu0 %v10820_v29 }
 0xc55   :  { %7635 = vmatpush3.bf16.msra.mxu0 %v10826_v39  ;;  %v12169_v39 = vld [vmem:[#allocation8_spill] sm:$0xff] }
 0xc56   :  { %7636 = vmatprep.subr.bf16.mxu0 %v10832_v42  ;;  %v12170_v42 = vld [vmem:[#allocation9_spill] sm:$0xff] }
 0xc59   :  { %7637 = vmatpush3.bf16.msra.mxu0 %v10838_v44  ;;  %v12171_v44 = vld [vmem:[#allocation10_spill] sm:$0xff] }
 0xc5a   :  { %7638 = vmatprep.subr.bf16.mxu0 %v10844_v46 }
 0xc5d   :  { %7639 = vmatpush3.bf16.msra.mxu0 %v10850_v11 }
 0xc5e   :  { %7640 = vmatprep.subr.bf16.mxu0 %v10859_v25 }
 0xc61   :  { %7641 = vmatpush3.bf16.msra.mxu0 %v10868_v22 }
 0xc62   :  { %7642 = vmatprep.subr.bf16.mxu0 %v10874_v6 }
 0xc65   :  { %7643 = vmatpush3.bf16.msra.mxu0 %v12169_v39  ;;  %v8726_v39 = vld [vmem:[%s12104_s1 + $0x10] sm:$0xff]  }
 0xc66   :  { %7644 = vmatprep.subr.bf16.mxu0 %v12170_v42  ;;  %v8727_v42 = vld [vmem:[%s12104_s1 + $0x58] sm:$0xff]  }
 0xc69   :  { %7645 = vmatpush3.bf16.msra.mxu0 %v12171_v44  ;;  %v8728_v44 = vld [vmem:[%s12104_s1 + $0x18] sm:$0xff]  }
 0xc6a   :  { %8065 = vmatprep.subr.bf16.mxu0 %v12146_v0 }
 0xcc7   :  { %v4546_v23 = vpop.f32.mrb[132].mxu1 }
 0xcc8   :  { %v11426_v24 = vadd.f32 %v4546_v23, %v11287_v53  ;;  %v4548_v36 = vpop.f32.mrb[133].mxu1  ;;  %v5313_v23 = vrot.slane %v5304_v32, %v9055_v40 }
 0xcc9   :  { %v11430_v58 = vadd.f32 %v4548_v36, %v11291_v10  ;;  %v4550_v19 = vpop.f32.mrb[134].mxu1 }
 0xcca   :  { %v4551_v29 = vpop.f32.mrb[135].mxu1  ;;  %v5321_v36 = vcombine.high %v5313_v23, %v5313_v23 }
 0xccb   :  { %v11531_v29 = vrot.slane %v5313_v23, %v9055_v40  ;;  %v11694_v23 = vld [vmem:[%s12104_s1 + $0x98] sm:$0xff]  }
 0xccc   :  { %v11528_v19 = vrot.slane %v5321_v36, %v9055_v40  ;;  %v11700_v36 = vld [vmem:[%s12104_s1 + $0xe0] sm:$0xff]  }
 0xcce   :  { %5382 = vmatprep.mubr.bf16.mxu0 %v11528_v19 }
 0xccf   :  { %5383 = vmatmul.mubr.bf16.vlgmr.msra.gmra.mrb[116].mxu0 %v11531_v29 }
 0xcd0   :  { %8066 = vmatpush3.bf16.msra.mxu0 %v11081_v55  ;;  %8081 = vmatprep.mubr.msk.bf16.mxu0 %vm8788_vm0, %v12146_v0  ;;  %v5306_v55 = vcombine.high %v5304_v32, %v5304_v32  ;;  %v11688_v32 = vld [vmem:[%s12104_s1 + $0xd8] sm:$0xff]  }
 0xcd1   :  { %8067 = vmatprep.subr.bf16.mxu0 %v12146_v0 }
 0xcd4   :  { %8068 = vmatpush3.bf16.msra.mxu0 %v11090_v41  ;;  %v5320_v41 = vrot.slane %v5306_v55, %v9055_v40  ;;  %v11712_v55 = vld [vmem:[%s12104_s1 + $0xe8] sm:$0xff]  }
 0xcd5   :  { %8069 = vmatprep.subr.bf16.mxu0 %v12146_v0 }
 0xcd7   :  { %v4587_v46 = vpop.f32.mrb[136].mxu1 }
 0xcd8   :  { %v11439_v11 = vadd.f32 %v4587_v46, %v11300_v4  ;;  %v4589_v25 = vpop.f32.mrb[137].mxu1  ;;  %v8476_v4 = vld [vmem:[%s12106_s3 + $0x608] ss:$16 sps:$4 sm:$0xff]   ;;  %8070 = vmatpush3.bf16.msra.mxu0 %v11097_v51  ;;  %v5335_v51 = vrot.slane %v5320_v41, %v9055_v40  ;;  %v8729_v46 = vld [vmem:[%s12104_s1 + $0x60] sm:$0xff]  }
 0xcd9   :  { %v11442_v53 = vadd.f32 %v4589_v25, %v11303_v3  ;;  %v4591_v10 = vpop.f32.mrb[138].mxu1  ;;  %8071 = vmatprep.subr.bf16.mxu0 %v12146_v0  ;;  %v11718_v41 = vld [vmem:[%s12104_s1 + $0xa8] sm:$0xff]  }
 0xcda   :  { %v4592_v22 = vpop.f32.mrb[139].mxu1  ;;  %v8730_v10 = vld [vmem:[%s12104_s1 + $0x20] sm:$0xff]  }
 0xcdc   :  { %8072 = vmatpush3.bf16.msra.mxu0 %v11104_v9  ;;  %v8721_v9 = vld [vmem:[%s12104_s1 + $0x40] sm:$0xff]  }
 0xcdd   :  { %8073 = vmatprep.subr.bf16.mxu0 %v12146_v0 }
 0xce0   :  { %8074 = vmatpush3.bf16.msra.mxu0 %v11111_v13  ;;  %v8722_v13 = vld [vmem:[%s12104_s1] sm:$0xff]  }
 0xce1   :  { %8075 = vmatprep.subr.bf16.mxu0 %v12146_v0 }
 0xce4   :  { %8076 = vmatpush3.bf16.msra.mxu0 %v11118_v48  ;;  %v8723_v48 = vld [vmem:[%s12104_s1 + $0x48] sm:$0xff]  }
 0xce5   :  { %8077 = vmatprep.subr.bf16.mxu0 %v12146_v0 }
 0xce8   :  { %8078 = vmatpush3.bf16.msra.mxu0 %v11125_v43  ;;  %v8724_v43 = vld [vmem:[%s12104_s1 + $0x8] sm:$0xff]  }
 0xce9   :  { %8079 = vmatprep.subr.bf16.mxu0 %v12146_v0 }
 0xcec   :  { %8080 = vmatpush3.bf16.msra.mxu0 %v11133_v63  ;;  %v8725_v63 = vld [vmem:[%s12104_s1 + $0x50] sm:$0xff]  }
 0xced   :  { %7683 = vmatprep.subr.bf16.mxu0 %v8721_v9  ;;  %v11730_v9 = vld [vmem:[%s12104_s1 + $0xb0] sm:$0xff]  }
 0xcef   :  { %8082 = vmatmul.mubr.bf16.vlgmr.msra.gmra.mrb[120].mxu0 %v5335_v51  ;;  %v11724_v51 = vld [vmem:[%s12104_s1 + $0xf0] sm:$0xff]  }
 0xcf0   :  { %7684 = vmatpush3.bf16.msra.mxu0 %v8722_v13  ;;  %v11736_v13 = vld [vmem:[%s12104_s1 + $0xf8] sm:$0xff]  }
 0xcf1   :  { %7685 = vmatprep.subr.bf16.mxu0 %v8723_v48  ;;  %v5343_v48 = vcombine.high %v11531_v29, %v11531_v29 }
 0xcf4   :  { %7686 = vmatpush3.bf16.msra.mxu0 %v8724_v43  ;;  %v11744_v43 = vld [vmem:[%s12104_s1 + $0xb8] sm:$0xff]  }
 0xcf5   :  { %7687 = vmatprep.subr.bf16.mxu0 %v8725_v63 }
 0xcf7   :  { %v7562_v28 = vpop.f32.mrb[140].mxu1 }
 0xcf8   :  { %v7563_v6 = vpop.f32.mrb[141].mxu1  ;;  %7688 = vmatpush3.bf16.msra.mxu0 %v8726_v39  ;;  %v8514_v39 = vld [vmem:[%s12106_s3 + $0x700] ss:$16 sps:$4 sm:$0xff]  }
 0xcf9   :  { %v7564_v5 = vadd.f32 %v7563_v6, %v7562_v28  ;;  %v7565_v60 = vpop.f32.mrb[142].mxu1  ;;  %7689 = vmatprep.subr.bf16.mxu0 %v8727_v42  ;;  %v8731_v6 = vld [vmem:[%s12104_s1 + $0x68] sm:$0xff]   ;;  %v8516_v42 = vld [vmem:[%s12106_s3 + $0x704] ss:$16 sps:$4 sm:$0xff]  }
 0xcfa   :  { %v7566_v1 = vpop.f32.mrb[143].mxu1 }
 0xcfb   :  { %v4719_v2 = vadd.f32 %v7564_v5, %v4679_v33  ;;  %v8732_v1 = vld [vmem:[%s12104_s1 + $0x28] sm:$0xff]  }
 0xcfc   :  { %7690 = vmatpush3.bf16.msra.mxu0 %v8728_v44  ;;  %v8519_v44 = vld [vmem:[%s12106_s3 + $0x724] ss:$16 sps:$4 sm:$0xff]  }
 0xcfd   :  { %v4759_v49 = vadd.f32 %v11373_v37, %v4719_v2  ;;  %v8482_v37 = vld [vmem:[%s12106_s3 + $0x648] ss:$16 sps:$4 sm:$0xff]   ;;  %7691 = vmatprep.subr.bf16.mxu0 %v8729_v46  ;;  %v8734_v2 = vld [vmem:[%s12104_s1 + $0x30] sm:$0xff]  }
 0xcff   :  { %v4764_v57 = vmax.f32 %v4759_v49, 0.0  ;;  %v8736_v49 = vld [vmem:[%s12104_s1 + $0x38] sm:$0xff]  }
 0xd00   :  { %7692 = vmatpush3.bf16.msra.mxu0 %v8730_v10 }
 0xd01   :  { %v4765_v3 = vpack.c.bf16 %v4764_v57, %v4764_v57  ;;  %7693 = vmatprep.subr.bf16.mxu0 %v8731_v6  ;;  %v8522_v6 = vld [vmem:[%s12106_s3 + $0x744] ss:$16 sps:$4 sm:$0xff]  }
 0xd03   :  { %6792 = vmatmul.mubr.msk.bf16.vlgmr.msra.gmra.mrb[144].mxu1 %vm817_vm1, %v4765_v3 }
 0xd04   :  { %4907 = vmatpush1.bf16.msra.mxu1 %v8476_v4  ;;  %4938 = vmatprep.mubr.bf16.mxu1 %v12145_v35 }
 0xd05   :  { %4908 = vmatprep.subr.bf16.mxu1 %v8481_v61  ;;  %7694 = vmatpush3.bf16.msra.mxu0 %v8732_v1 }
 0xd08   :  { %4909 = vmatpush1.bf16.msra.mxu1 %v8479_v34 }
 0xd09   :  { %4910 = vmatprep.subr.bf16.mxu1 %v8484_v59 }
 0xd0c   :  { %4911 = vmatpush1.bf16.msra.mxu1 %v8482_v37 }
 0xd0d   :  { %4912 = vmatprep.subr.bf16.mxu1 %v8487_v62 }
 0xd10   :  { %4913 = vmatpush1.bf16.msra.mxu1 %v8485_v15  ;;  %v11618_v15 = vld [vmem:[%s12105_s2] ss:$0 sm:$0xff] }
 0xd11   :  { %7599 = vmatprep.subr.bf16.mxu1 %v10938_v50  ;;  %v4990_v50 = vcombine.high %v11392_v27, %v11392_v27  ;;  %v8498_v27 = vld [vmem:[%s12106_s3 + $0x6e0] ss:$16 sps:$4 sm:$0xff]  }
 0xd13   :  { %6793 = vmatmul.mubr.msk.bf16.vlgmr.msra.gmra.mrb[148].mxu1 %vm817_vm1, %v4765_v3 }
 0xd14   :  { %7600 = vmatpush3.bf16.msra.mxu1 %v10945_v17  ;;  %5069 = vmatprep.mubr.bf16.mxu1 %v4991_v14  ;;  %v7593_v17 = vpop.f32.mrb[108].mxu0 }
 0xd15   :  { %7601 = vmatprep.subr.bf16.mxu1 %v10951_v12  ;;  %v8489_v12 = vld [vmem:[%s12106_s3 + $0x680] ss:$16 sps:$4 sm:$0xff]  }
 0xd18   :  { %7602 = vmatpush3.bf16.msra.mxu1 %v10957_v38  ;;  %v8491_v38 = vld [vmem:[%s12106_s3 + $0x684] ss:$16 sps:$4 sm:$0xff]  }
 0xd19   :  { %7603 = vmatprep.subr.bf16.mxu1 %v10963_v45  ;;  %v7594_v45 = vpop.f32.mrb[109].mxu0 }
 0xd1c   :  { %7604 = vmatpush3.bf16.msra.mxu1 %v10969_v20  ;;  %v8494_v20 = vld [vmem:[%s12106_s3 + $0x6a4] ss:$16 sps:$4 sm:$0xff]  }
 0xd1d   :  { %7605 = vmatprep.subr.bf16.mxu1 %v10975_v30  ;;  %v11501_v30 = vadd.f32 %v7594_v45, %v7593_v17  ;;  %v8501_v45 = vld [vmem:[%s12106_s3 + $0x688] ss:$16 sps:$4 sm:$0xff]  }
 0xd1f   :  { %v5032_v14 = vadd.f32 %v11618_v15, %v11501_v30  ;;  %v8504_v30 = vld [vmem:[%s12106_s3 + $0x6a8] ss:$16 sps:$4 sm:$0xff]  }
 0xd20   :  { %7606 = vmatpush3.bf16.msra.mxu1 %v10981_v31  ;;  %v7596_v31 = vpop.f32.mrb[110].mxu0 }
 0xd21   :  { %7607 = vmatprep.subr.bf16.mxu1 %v10987_v8  ;;  %v7597_v8 = vpop.f32.mrb[111].mxu0  ;;  %v8506_v31 = vld [vmem:[%s12106_s3 + $0x6ac] ss:$16 sps:$4 sm:$0xff]  }
 0xd22   :  { %v8509_v8 = vld [vmem:[%s12106_s3 + $0x6cc] ss:$16 sps:$4 sm:$0xff]  }
 0xd24   :  { %7608 = vmatpush3.bf16.msra.mxu1 %v10993_v7  ;;  %v8492_v7 = vld [vmem:[%s12106_s3 + $0x6a0] ss:$16 sps:$4 sm:$0xff]  }
 0xd25   :  { %7609 = vmatprep.subr.bf16.mxu1 %v10999_v21  ;;  %v8497_v21 = vld [vmem:[%s12106_s3 + $0x6c4] ss:$16 sps:$4 sm:$0xff]  }
 0xd28   :  { %7610 = vmatpush3.bf16.msra.mxu1 %v11005_v18  ;;  %v8495_v18 = vld [vmem:[%s12106_s3 + $0x6c0] ss:$16 sps:$4 sm:$0xff]  }
 0xd29   :  { %7611 = vmatprep.subr.bf16.mxu1 %v11011_v56  ;;  %v11512_v56 = vpop.f32.mrb[112].mxu0 }
 0xd2c   :  { %7612 = vmatpush3.bf16.msra.mxu1 %v11017_v54  ;;  %v8063_v54 = vpop.f32.mrb[113].mxu0 }
 0xd2d   :  { %7613 = vmatprep.subr.bf16.mxu1 %v11023_v47  ;;  %v5114_v47 = vpop.f32.mrb[114].mxu0  ;;  %v11651_v54 = vld [vmem:[%s12104_s1 + $0xc0] sm:$0xff]  }
 0xd2e   :  { %v8064_v16 = vpop.f32.mrb[115].mxu0  ;;  %v11658_v47 = vld [vmem:[%s12104_s1 + $0x80] sm:$0xff]  }
 0xd2f   :  { %v11670_v16 = vld [vmem:[%s12104_s1 + $0x88] sm:$0xff]  }
 0xd30   :  { %7614 = vmatpush3.bf16.msra.mxu1 %v11031_v52  ;;  %v8500_v52 = vld [vmem:[%s12106_s3 + $0x6e4] ss:$16 sps:$4 sm:$0xff]  }
 0xd31   :  { %5218 = vmatprep.subr.bf16.mxu1 %v8491_v38 }
 0xd33   :  { %5070 = vmatmul.mubr.bf16.vlgmr.msra.gmra.mrb[152].mxu1 %v4990_v50 }
 0xd34   :  { %5250 = vmatprep.mubr.bf16.mxu1 %v12145_v35  ;;  %5219 = vmatpush1.bf16.msra.mxu1 %v8489_v12 }
 0xd35   :  { %5220 = vmatprep.subr.bf16.mxu1 %v8494_v20 }
 0xd38   :  { %5221 = vmatpush1.bf16.msra.mxu1 %v8492_v7  ;;  %v8507_v7 = vld [vmem:[%s12106_s3 + $0x6c8] ss:$16 sps:$4 sm:$0xff]  }
 0xd39   :  { %5222 = vmatprep.subr.bf16.mxu1 %v8497_v21  ;;  %v8512_v21 = vld [vmem:[%s12106_s3 + $0x6ec] ss:$16 sps:$4 sm:$0xff]  }
 0xd3c   :  { %5223 = vmatpush1.bf16.msra.mxu1 %v8495_v18  ;;  %v8510_v18 = vld [vmem:[%s12106_s3 + $0x6e8] ss:$16 sps:$4 sm:$0xff]  }
 0xd3d   :  { %5224 = vmatprep.subr.bf16.mxu1 %v8500_v52  ;;  %v11664_v52 = vld [vmem:[%s12104_s1 + $0xc8] sm:$0xff]  }
 0xd40   :  { %5225 = vmatpush1.bf16.msra.mxu1 %v8498_v27  ;;  %v11676_v27 = vld [vmem:[%s12104_s1 + $0xd0] sm:$0xff]  }
 0xd41   :  { %5259 = vmatprep.subr.bf16.mxu1 %v8503_v26  ;;  %v11682_v26 = vld [vmem:[%s12104_s1 + $0x90] sm:$0xff]  }
 0xda2   :  { %v7646_v63 = vpop.f32.mrb[116].mxu0 }
 0xda3   :  { %v7647_v29 = vpop.f32.mrb[117].mxu0 }
 0xda4   :  { %v11757_v46 = vadd.f32 %v7647_v29, %v7646_v63 }
 0xdd6   :  { %v4899_v25 = vpop.f32.mrb[144].mxu1 }
 0xdd7   :  { %v11585_v22 = vadd.f32 %v4899_v25, %v11426_v24  ;;  %v4901_v28 = vpop.f32.mrb[145].mxu1  ;;  %v8733_v24 = vld [vmem:[%s12104_s1 + $0x70] sm:$0xff]   ;;  %v7649_v25 = vpop.f32.mrb[118].mxu0 }
 0xdd8   :  { %v11591_v33 = vadd.f32 %v4901_v28, %v11430_v58  ;;  %v4903_v5 = vpop.f32.mrb[146].mxu1  ;;  %7695 = vmatprep.subr.bf16.mxu0 %v8733_v24  ;;  %v8735_v58 = vld [vmem:[%s12104_s1 + $0x78] sm:$0xff]   ;;  %v7650_v10 = vpop.f32.mrb[119].mxu0  ;;  %v8517_v28 = vld [vmem:[%s12106_s3 + $0x720] ss:$16 sps:$4 sm:$0xff]  }
 0xdd9   :  { %v4904_v60 = vpop.f32.mrb[147].mxu1  ;;  %7696 = vmatpush3.bf16.msra.mxu0 %v8734_v2  ;;  %v8520_v5 = vld [vmem:[%s12106_s3 + $0x740] ss:$16 sps:$4 sm:$0xff]   ;;  %v8525_v2 = vld [vmem:[%s12106_s3 + $0x764] ss:$16 sps:$4 sm:$0xff]  }
 0xdda   :  { %7697 = vmatprep.subr.bf16.mxu0 %v8735_v58  ;;  %v11768_v60 = vpop.f32.mrb[120].mxu0 }
 0xddb   :  { %v8083_v1 = vpop.f32.mrb[121].mxu0 }
 0xddc   :  { %v5467_v24 = vpop.f32.mrb[122].mxu0 }
 0xddd   :  { %7698 = vmatpush3.bf16.msra.mxu0 %v8736_v49  ;;  %v8084_v58 = vpop.f32.mrb[123].mxu0  ;;  %v8523_v49 = vld [vmem:[%s12106_s3 + $0x760] ss:$16 sps:$4 sm:$0xff]  }
 0xdde   :  { %8085 = vmatprep.subr.bf16.mxu0 %v12146_v0  ;;  %v8532_v58 = vld [vmem:[%s12106_s3 + $0x748] ss:$16 sps:$4 sm:$0xff]  }
 0xde6   :  { %v4940_v57 = vpop.f32.mrb[148].mxu1 }
 0xde7   :  { %v11610_v4 = vadd.f32 %v4940_v57, %v11439_v11  ;;  %v4942_v3 = vpop.f32.mrb[149].mxu1  ;;  %v8528_v57 = vld [vmem:[%s12106_s3 + $0x70c] ss:$16 sps:$4 sm:$0xff]  }
 0xde8   :  { %v11613_v61 = vadd.f32 %v4942_v3, %v11442_v53  ;;  %v4944_v34 = vpop.f32.mrb[150].mxu1  ;;  %v5657_v3 = vld [vmem:[%s12103_s0 + $0x4b] sm:$0x1f] }
 0xde9   :  { %v4945_v59 = vpop.f32.mrb[151].mxu1  ;;  %v5666_v34 = vrot.slane %v5657_v3, %v9055_v40 }
 0xdeb   :  { %v5674_v59 = vcombine.high %v5666_v34, %v5666_v34 }
 0xe06   :  { %v7615_v37 = vpop.f32.mrb[152].mxu1 }
 0xe07   :  { %v7616_v62 = vpop.f32.mrb[153].mxu1 }
 0xe08   :  { %v7617_v50 = vadd.f32 %v7616_v62, %v7615_v37  ;;  %v7618_v17 = vpop.f32.mrb[154].mxu1  ;;  %v11784_v37 = vrot.slane %v5674_v59, %v9055_v40  ;;  %v11787_v62 = vrot.slane %v5666_v34, %v9055_v40  ;;  %v8548_v59 = vld [vmem:[%s12106_s3 + $0x7e0] ss:$16 sps:$4 sm:$0xff]  }
 0xe09   :  { %v7619_v11 = vpop.f32.mrb[155].mxu1  ;;  %v8756_v17 = vld [vmem:[%s12104_s1 + $0x110] sm:$0xff]  }
 0xe0a   :  { %v5072_v12 = vadd.f32 %v7617_v50, %v5032_v14  ;;  %5735 = vmatprep.mubr.bf16.mxu0 %v11784_v37  ;;  %v8754_v14 = vld [vmem:[%s12104_s1 + $0x100] sm:$0xff]   ;;  %v8755_v50 = vld [vmem:[%s12104_s1 + $0x108] sm:$0xff]   ;;  %v8757_v11 = vld [vmem:[%s12104_s1 + $0x118] sm:$0xff]  }
 0xe0b   :  { %5736 = vmatmul.mubr.bf16.vlgmr.msra.gmra.mrb[124].mxu0 %v11787_v62 }
 0xe0c   :  { %v5112_v38 = vadd.f32 %v11512_v56, %v5072_v12  ;;  %v5344_v56 = vcombine.high %v11528_v19, %v11528_v19  ;;  %v11706_v19 = vld [vmem:[%s12104_s1 + $0xa0] sm:$0xff]   ;;  %8086 = vmatpush3.bf16.msra.mxu0 %v8754_v14  ;;  %8101 = vmatprep.mubr.msk.bf16.mxu0 %vm8788_vm0, %v12146_v0 }
 0xe0d   :  { %8087 = vmatprep.subr.bf16.mxu0 %v12146_v0  ;;  %v8758_v12 = vld [vmem:[%s12104_s1 + $0x120] sm:$0xff]  }
 0xe0e   :  { %v5117_v53 = vmax.f32 %v5112_v38, 0.0  ;;  %v8759_v38 = vld [vmem:[%s12104_s1 + $0x128] sm:$0xff]   ;;  %v8564_v14 = vld [vmem:[%s12108_s5] sm:$0xff]  }
 0xe10   :  { %v5118_v20 = vpack.c.bf16 %v5117_v53, %v5117_v53  ;;  %8088 = vmatpush3.bf16.msra.mxu0 %v8755_v50  ;;  %v5659_v53 = vcombine.high %v5657_v3, %v5657_v3  ;;  %v5697_v3 = vcombine.high %v11784_v37, %v11784_v37  ;;  %v8553_v37 = vld [vmem:[%s12106_s3 + $0x78c] ss:$16 sps:$4 sm:$0xff]  }
 0xe11   :  { %8089 = vmatprep.subr.bf16.mxu0 %v12146_v0  ;;  %v8565_v50 = vld [vmem:[%s12108_s5 + $0x48] sm:$0xff]  }
 0xe12   :  { %6810 = vmatmul.mubr.msk.bf16.vlgmr.msra.gmra.mrb[156].mxu1 %vm817_vm1, %v5118_v20 }
 0xe13   :  { %5260 = vmatpush1.bf16.msra.mxu1 %v8501_v45  ;;  %5291 = vmatprep.mubr.bf16.mxu1 %v12145_v35  ;;  %v8760_v45 = vld [vmem:[%s12104_s1 + $0x130] sm:$0xff]  }
 0xe14   :  { %5261 = vmatprep.subr.bf16.mxu1 %v8506_v31  ;;  %8090 = vmatpush3.bf16.msra.mxu0 %v8756_v17  ;;  %v8761_v31 = vld [vmem:[%s12104_s1 + $0x138] sm:$0xff]   ;;  %v8566_v17 = vld [vmem:[%s12108_s5 + $0x8] sm:$0xff]  }
 0xe15   :  { %8091 = vmatprep.subr.bf16.mxu0 %v12146_v0 }
 0xe17   :  { %5262 = vmatpush1.bf16.msra.mxu1 %v8504_v30 }
 0xe18   :  { %5263 = vmatprep.subr.bf16.mxu1 %v8509_v8  ;;  %8092 = vmatpush3.bf16.msra.mxu0 %v8757_v11  ;;  %v8567_v11 = vld [vmem:[%s12108_s5 + $0x50] sm:$0xff]  }
 0xe19   :  { %8093 = vmatprep.subr.bf16.mxu0 %v12146_v0 }
 0xe1b   :  { %5264 = vmatpush1.bf16.msra.mxu1 %v8507_v7 }
 0xe1c   :  { %5265 = vmatprep.subr.bf16.mxu1 %v8512_v21  ;;  %8094 = vmatpush3.bf16.msra.mxu0 %v8758_v12  ;;  %v8568_v12 = vld [vmem:[%s12108_s5 + $0x10] sm:$0xff]  }
 0xe1d   :  { %8095 = vmatprep.subr.bf16.mxu0 %v12146_v0 }
 0xe1f   :  { %5266 = vmatpush1.bf16.msra.mxu1 %v8510_v18 }
 0xe20   :  { %7652 = vmatprep.subr.bf16.mxu1 %v11651_v54  ;;  %8096 = vmatpush3.bf16.msra.mxu0 %v8759_v38  ;;  %v8569_v38 = vld [vmem:[%s12108_s5 + $0x58] sm:$0xff]  }
 0xe21   :  { %8097 = vmatprep.subr.bf16.mxu0 %v12146_v0 }
 0xe22   :  { %6811 = vmatmul.mubr.msk.bf16.vlgmr.msra.gmra.mrb[160].mxu1 %vm817_vm1, %v5118_v20  ;;  %v5673_v20 = vrot.slane %v5659_v53, %v9055_v40  ;;  %v8570_v53 = vld [vmem:[%s12108_s5 + $0x18] sm:$0xff]  }
 0xe23   :  { %7653 = vmatpush3.bf16.msra.mxu1 %v11658_v47  ;;  %5422 = vmatprep.mubr.bf16.mxu1 %v5344_v56 }
 0xe24   :  { %7654 = vmatprep.subr.bf16.mxu1 %v11664_v52  ;;  %8098 = vmatpush3.bf16.msra.mxu0 %v8760_v45  ;;  %v5688_v30 = vrot.slane %v5673_v20, %v9055_v40  ;;  %v8572_v45 = vld [vmem:[%s12108_s5 + $0x60] sm:$0xff]  }
 0xe25   :  { %8099 = vmatprep.subr.bf16.mxu0 %v12146_v0  ;;  %v8574_v20 = vld [vmem:[%s12108_s5 + $0x20] sm:$0xff]  }
 0xe27   :  { %7655 = vmatpush3.bf16.msra.mxu1 %v11670_v16 }
 0xe28   :  { %7656 = vmatprep.subr.bf16.mxu1 %v11676_v27  ;;  %8100 = vmatpush3.bf16.msra.mxu0 %v8761_v31  ;;  %v8576_v31 = vld [vmem:[%s12108_s5 + $0x68] sm:$0xff]  }
 0xe2b   :  { %7657 = vmatpush3.bf16.msra.mxu1 %v11682_v26  ;;  %8102 = vmatmul.mubr.bf16.vlgmr.msra.gmra.mrb[128].mxu0 %v5688_v30 }
 0xe2c   :  { %7658 = vmatprep.subr.bf16.mxu1 %v11688_v32 }
 0xe2f   :  { %7659 = vmatpush3.bf16.msra.mxu1 %v11694_v23 }
 0xe30   :  { %7660 = vmatprep.subr.bf16.mxu1 %v11700_v36 }
 0xe33   :  { %7661 = vmatpush3.bf16.msra.mxu1 %v11706_v19 }
 0xe34   :  { %7662 = vmatprep.subr.bf16.mxu1 %v11712_v55 }
 0xe37   :  { %7663 = vmatpush3.bf16.msra.mxu1 %v11718_v41 }
 0xe38   :  { %7664 = vmatprep.subr.bf16.mxu1 %v11724_v51 }
 0xe3b   :  { %7665 = vmatpush3.bf16.msra.mxu1 %v11730_v9 }
 0xe3c   :  { %7666 = vmatprep.subr.bf16.mxu1 %v11736_v13 }
 0xe3f   :  { %7667 = vmatpush3.bf16.msra.mxu1 %v11744_v43 }
 0xe40   :  { %5571 = vmatprep.subr.bf16.mxu1 %v8516_v42 }
 0xe42   :  { %5423 = vmatmul.mubr.bf16.vlgmr.msra.gmra.mrb[164].mxu1 %v5343_v48 }
 0xe43   :  { %5603 = vmatprep.mubr.bf16.mxu1 %v12145_v35  ;;  %5572 = vmatpush1.bf16.msra.mxu1 %v8514_v39 }
 0xe44   :  { %5573 = vmatprep.subr.bf16.mxu1 %v8519_v44 }
 0xe47   :  { %5574 = vmatpush1.bf16.msra.mxu1 %v8517_v28 }
 0xe48   :  { %5575 = vmatprep.subr.bf16.mxu1 %v8522_v6 }
 0xe4b   :  { %5576 = vmatpush1.bf16.msra.mxu1 %v8520_v5 }
 0xe4c   :  { %5577 = vmatprep.subr.bf16.mxu1 %v8525_v2  ;;  %v8531_v2 = vld [vmem:[%s12106_s3 + $0x72c] ss:$16 sps:$4 sm:$0xff]  }
 0xe4f   :  { %5578 = vmatpush1.bf16.msra.mxu1 %v8523_v49  ;;  %v8537_v49 = vld [vmem:[%s12106_s3 + $0x76c] ss:$16 sps:$4 sm:$0xff]  }
 0xe50   :  { %5612 = vmatprep.subr.bf16.mxu1 %v8528_v57  ;;  %v8535_v57 = vld [vmem:[%s12106_s3 + $0x768] ss:$16 sps:$4 sm:$0xff]  }
 0xee5   :  { %v5252_v8 = vpop.f32.mrb[156].mxu1 }
 0xee6   :  { %v11827_v7 = vadd.f32 %v5252_v8, %v11585_v22  ;;  %v5254_v21 = vpop.f32.mrb[157].mxu1  ;;  %v5385_v22 = vadd.f32 %v11618_v15, %v11757_v46  ;;  %v8529_v46 = vld [vmem:[%s12106_s3 + $0x728] ss:$16 sps:$4 sm:$0xff]  }
 0xee7   :  { %v11830_v18 = vadd.f32 %v5254_v21, %v11591_v33  ;;  %v5256_v56 = vpop.f32.mrb[158].mxu1 }
 0xee8   :  { %v5257_v48 = vpop.f32.mrb[159].mxu1 }
 0xef5   :  { %v5293_v63 = vpop.f32.mrb[160].mxu1 }
 0xef6   :  { %v11833_v39 = vadd.f32 %v5293_v63, %v11610_v4  ;;  %v5295_v42 = vpop.f32.mrb[161].mxu1  ;;  %v8526_v4 = vld [vmem:[%s12106_s3 + $0x708] ss:$16 sps:$4 sm:$0xff]  }
 0xef7   :  { %v11836_v29 = vadd.f32 %v5295_v42, %v11613_v61  ;;  %v5297_v40 = vpop.f32.mrb[162].mxu1 }
 0xef8   :  { %v5298_v44 = vpop.f32.mrb[163].mxu1 }
 0xf15   :  { %v7668_v25 = vpop.f32.mrb[164].mxu1 }
 0xf16   :  { %v7669_v10 = vpop.f32.mrb[165].mxu1 }
 0xf17   :  { %v7670_v28 = vadd.f32 %v7669_v10, %v7668_v25  ;;  %v7671_v33 = vpop.f32.mrb[166].mxu1 }
 0xf18   :  { %v7672_v6 = vpop.f32.mrb[167].mxu1 }
 0xf19   :  { %v5425_v5 = vadd.f32 %v7670_v28, %v5385_v22 }
 0xf1b   :  { %v5465_v1 = vadd.f32 %v11768_v60, %v5425_v5  ;;  %v8534_v60 = vld [vmem:[%s12106_s3 + $0x74c] ss:$16 sps:$4 sm:$0xff]  }
 0xf1d   :  { %v5470_v24 = vmax.f32 %v5465_v1, 0.0 }
 0xf1f   :  { %v5471_v61 = vpack.c.bf16 %v5470_v24, %v5470_v24 }
 0xf21   :  { %6828 = vmatmul.mubr.msk.bf16.vlgmr.msra.gmra.mrb[168].mxu1 %vm817_vm1, %v5471_v61 }
 0xf22   :  { %5613 = vmatpush1.bf16.msra.mxu1 %v8526_v4  ;;  %5644 = vmatprep.mubr.bf16.mxu1 %v12145_v35 }
 0xf23   :  { %5614 = vmatprep.subr.bf16.mxu1 %v8531_v2  ;;  %v8559_v2 = vld [vmem:[%s12106_s3 + $0x7cc] ss:$16 sps:$4 sm:$0xff]  }
 0xf26   :  { %5615 = vmatpush1.bf16.msra.mxu1 %v8529_v46  ;;  %v8557_v46 = vld [vmem:[%s12106_s3 + $0x7c8] ss:$16 sps:$4 sm:$0xff]  }
 0xf27   :  { %5616 = vmatprep.subr.bf16.mxu1 %v8534_v60  ;;  %v8562_v60 = vld [vmem:[%s12106_s3 + $0x7ec] ss:$16 sps:$4 sm:$0xff]  }
 0xf2a   :  { %5617 = vmatpush1.bf16.msra.mxu1 %v8532_v58  ;;  %v8571_v58 = vld [vmem:[%s12108_s5 + $0xc0] sm:$0xff]  }
 0xf2b   :  { %5618 = vmatprep.subr.bf16.mxu1 %v8537_v49  ;;  %v8573_v49 = vld [vmem:[%s12108_s5 + $0x80] sm:$0xff]  }
 0xf2e   :  { %5619 = vmatpush1.bf16.msra.mxu1 %v8535_v57  ;;  %v8575_v57 = vld [vmem:[%s12108_s5 + $0xc8] sm:$0xff]  }
 0xf2f   :  { %7705 = vmatprep.subr.bf16.mxu1 %v11651_v54  ;;  %v5696_v54 = vcombine.high %v11787_v62, %v11787_v62  ;;  %v8563_v62 = vld [vmem:[%s12108_s5 + $0x40] sm:$0xff]  }
 0xf30   :  { %7736 = vmatprep.subr.bf16.mxu0 %v8563_v62  ;;  %v6010_v62 = vld [vmem:[%s12107_s4] sm:$0xf] }
 0xf31   :  { %6829 = vmatmul.mubr.msk.bf16.vlgmr.msra.gmra.mrb[172].mxu1 %vm817_vm1, %v5471_v61  ;;  %7737 = vmatpush3.bf16.msra.mxu0 %v8564_v14 }
 0xf32   :  { %7706 = vmatpush3.bf16.msra.mxu1 %v11658_v47  ;;  %5775 = vmatprep.mubr.bf16.mxu1 %v5697_v3  ;;  %v7699_v47 = vpop.f32.mrb[124].mxu0  ;;  %v8577_v3 = vld [vmem:[%s12108_s5 + $0x88] sm:$0xff]  }
 0xf33   :  { %7707 = vmatprep.subr.bf16.mxu1 %v11664_v52  ;;  %v8539_v52 = vld [vmem:[%s12106_s3 + $0x780] ss:$16 sps:$4 sm:$0xff]   ;;  %7738 = vmatprep.subr.bf16.mxu0 %v8565_v50 }
 0xf35   :  { %7739 = vmatpush3.bf16.msra.mxu0 %v8566_v17 }
 0xf36   :  { %7708 = vmatpush3.bf16.msra.mxu1 %v11670_v16  ;;  %v8541_v16 = vld [vmem:[%s12106_s3 + $0x784] ss:$16 sps:$4 sm:$0xff]   ;;  %7740 = vmatprep.subr.bf16.mxu0 %v8567_v11 }
 0xf37   :  { %7709 = vmatprep.subr.bf16.mxu1 %v11676_v27  ;;  %v7700_v27 = vpop.f32.mrb[125].mxu0 }
 0xf39   :  { %7741 = vmatpush3.bf16.msra.mxu0 %v8568_v12 }
 0xf3a   :  { %7710 = vmatpush3.bf16.msra.mxu1 %v11682_v26  ;;  %v8544_v26 = vld [vmem:[%s12106_s3 + $0x7a4] ss:$16 sps:$4 sm:$0xff]   ;;  %7742 = vmatprep.subr.bf16.mxu0 %v8569_v38 }
 0xf3b   :  { %7711 = vmatprep.subr.bf16.mxu1 %v11688_v32  ;;  %v7701_v32 = vadd.f32 %v7700_v27, %v7699_v47  ;;  %v8579_v47 = vld [vmem:[%s12108_s5 + $0xd0] sm:$0xff]  }
 0xf3c   :  { %v8582_v27 = vld [vmem:[%s12108_s5 + $0x30] sm:$0xff]  }
 0xf3d   :  { %7743 = vmatpush3.bf16.msra.mxu0 %v8570_v53 }
 0xf3e   :  { %7712 = vmatpush3.bf16.msra.mxu1 %v11694_v23  ;;  %v7702_v23 = vpop.f32.mrb[126].mxu0  ;;  %7744 = vmatprep.subr.bf16.mxu0 %v8572_v45 }
 0xf3f   :  { %7713 = vmatprep.subr.bf16.mxu1 %v11700_v36  ;;  %v7703_v36 = vpop.f32.mrb[127].mxu0  ;;  %v8585_v23 = vld [vmem:[%s12108_s5 + $0x98] sm:$0xff]  }
 0xf40   :  { %v8586_v36 = vld [vmem:[%s12108_s5 + $0x38] sm:$0xff]  }
 0xf41   :  { %7745 = vmatpush3.bf16.msra.mxu0 %v8574_v20 }
 0xf42   :  { %7714 = vmatpush3.bf16.msra.mxu1 %v11706_v19  ;;  %v8542_v19 = vld [vmem:[%s12106_s3 + $0x7a0] ss:$16 sps:$4 sm:$0xff]   ;;  %7746 = vmatprep.subr.bf16.mxu0 %v8576_v31 }
 0xf43   :  { %7715 = vmatprep.subr.bf16.mxu1 %v11712_v55  ;;  %v8547_v55 = vld [vmem:[%s12106_s3 + $0x7c4] ss:$16 sps:$4 sm:$0xff]  }
 0xf46   :  { %7716 = vmatpush3.bf16.msra.mxu1 %v11718_v41  ;;  %v8545_v41 = vld [vmem:[%s12106_s3 + $0x7c0] ss:$16 sps:$4 sm:$0xff]  }
 0xf47   :  { %7717 = vmatprep.subr.bf16.mxu1 %v11724_v51  ;;  %v5817_v51 = vpop.f32.mrb[128].mxu0 }
 0xf4a   :  { %7718 = vmatpush3.bf16.msra.mxu1 %v11730_v9  ;;  %v8103_v9 = vpop.f32.mrb[129].mxu0 }
 0xf4b   :  { %7719 = vmatprep.subr.bf16.mxu1 %v11736_v13  ;;  %v5820_v13 = vpop.f32.mrb[130].mxu0  ;;  %v8591_v9 = vld [vmem:[%s12108_s5 + $0xf0] sm:$0xff]  }
 0xf4c   :  { %v8104_v34 = vpop.f32.mrb[131].mxu0  ;;  %v8592_v13 = vld [vmem:[%s12108_s5 + $0xb0] sm:$0xff]  }
 0xf4d   :  { %v8594_v34 = vld [vmem:[%s12108_s5 + $0xb8] sm:$0xff]  }
 0xf4e   :  { %7720 = vmatpush3.bf16.msra.mxu1 %v11744_v43  ;;  %v8550_v43 = vld [vmem:[%s12106_s3 + $0x7e4] ss:$16 sps:$4 sm:$0xff]  }
 0xf4f   :  { %5924 = vmatprep.subr.bf16.mxu1 %v8541_v16  ;;  %v8581_v16 = vld [vmem:[%s12108_s5 + $0x90] sm:$0xff]  }
 0xf51   :  { %5776 = vmatmul.mubr.bf16.vlgmr.msra.gmra.mrb[176].mxu1 %v5696_v54  ;;  %v8578_v54 = vld [vmem:[%s12108_s5 + $0x28] sm:$0xff]  }
 0xf52   :  { %5956 = vmatprep.mubr.bf16.mxu1 %v12145_v35  ;;  %5925 = vmatpush1.bf16.msra.mxu1 %v8539_v52  ;;  %v8580_v52 = vld [vmem:[%s12108_s5 + $0x70] sm:$0xff]  }
 0xf53   :  { %5926 = vmatprep.subr.bf16.mxu1 %v8544_v26  ;;  %7747 = vmatpush3.bf16.msra.mxu0 %v8578_v54  ;;  %v8583_v26 = vld [vmem:[%s12108_s5 + $0xd8] sm:$0xff]  }
 0xf54   :  { %7748 = vmatprep.subr.bf16.mxu0 %v8580_v52 }
 0xf56   :  { %5927 = vmatpush1.bf16.msra.mxu1 %v8542_v19  ;;  %v8587_v19 = vld [vmem:[%s12108_s5 + $0xe0] sm:$0xff]  }
 0xf57   :  { %5928 = vmatprep.subr.bf16.mxu1 %v8547_v55  ;;  %7749 = vmatpush3.bf16.msra.mxu0 %v8582_v27  ;;  %v8588_v55 = vld [vmem:[%s12108_s5 + $0xa0] sm:$0xff]  }
 0xf5a   :  { %5929 = vmatpush1.bf16.msra.mxu1 %v8545_v41  ;;  %v8589_v41 = vld [vmem:[%s12108_s5 + $0xe8] sm:$0xff]  }
 0xf5b   :  { %5930 = vmatprep.subr.bf16.mxu1 %v8550_v43  ;;  %v8593_v43 = vld [vmem:[%s12108_s5 + $0xf8] sm:$0xff]  }
 0xf5e   :  { %5931 = vmatpush1.bf16.msra.mxu1 %v8548_v59  ;;  %v12172_v59 = vld [vmem:[#allocation6_spill] sm:$0xff] }
 0xf5f   :  { %5965 = vmatprep.subr.bf16.mxu1 %v8553_v37  ;;  %v6014_v37 = vsub.s32 0, %v12172_v59  ;;  %v6018_v14 = vsub.s32 1, %v12172_v59 }
 0xf61   :  { %v6015_v50 = vrot.slane %v6010_v62, %v6014_v37  ;;  %v6019_v11 = vrot.slane %v6010_v62, %v6018_v14  ;;  %v12173_v14 = vlaneseq }
 0xff4   :  { %v5605_v30 = vpop.f32.mrb[168].mxu1 }
 0xff5   :  { %v11947_v8 = vadd.f32 %v5605_v30, %v11827_v7  ;;  %v5607_v21 = vpop.f32.mrb[169].mxu1  ;;  %v5738_v7 = vadd.f32 %v11618_v15, %v7701_v32  ;;  %v8554_v15 = vld [vmem:[%s12106_s3 + $0x7a8] ss:$16 sps:$4 sm:$0xff]  }
 0xff6   :  { %v11950_v56 = vadd.f32 %v5607_v21, %v11830_v18  ;;  %v5609_v48 = vpop.f32.mrb[170].mxu1  ;;  %v8584_v32 = vld [vmem:[%s12108_s5 + $0x78] sm:$0xff]  }
 0xff7   :  { %v5610_v63 = vpop.f32.mrb[171].mxu1  ;;  %7750 = vmatprep.subr.bf16.mxu0 %v8584_v32  ;;  %v6881_v32 = vld [vmem:[%s12111_s8] ss:$0 sm:$0xff]  ;;  %s8790_s8 = smov [#allocation3]  }
 0xff8   :  { %7751 = vmatpush3.bf16.msra.mxu0 %v8586_v36  ;;  %s6511_s24 = sshll.u32 %s8790_s8, 4  ;;  %s6512_s24 = int_to_ptr.vmem [resolvable:$true] %s6511_s24 }
 0xff9   :  { %8105 = vmatprep.subr.bf16.mxu0 %v12146_v0  ;;  %p8767_p1 = scmp.lt.s32.totalorder %s6512_s24, %s6512_s24 }
0x1004   :  { %v5646_v42 = vpop.f32.mrb[172].mxu1 }
0x1005   :  { %v11953_v40 = vadd.f32 %v5646_v42, %v11833_v39  ;;  %v5648_v44 = vpop.f32.mrb[173].mxu1  ;;  %v8551_v39 = vld [vmem:[%s12106_s3 + $0x788] ss:$16 sps:$4 sm:$0xff]  }
0x1006   :  { %v11956_v25 = vadd.f32 %v5648_v44, %v11836_v29  ;;  %v5650_v10 = vpop.f32.mrb[174].mxu1  ;;  %v8556_v29 = vld [vmem:[%s12106_s3 + $0x7ac] ss:$16 sps:$4 sm:$0xff]   ;;  %v6022_v44 = vsub.s32 2, %v12172_v59 }
0x1007   :  { %v5651_v22 = vpop.f32.mrb[175].mxu1  ;;  %v6026_v10 = vsub.s32 3, %v12172_v59 }
0x1024   :  { %v7721_v28 = vpop.f32.mrb[176].mxu1 }
0x1025   :  { %v7722_v33 = vpop.f32.mrb[177].mxu1 }
0x1026   :  { %v7723_v6 = vadd.f32 %v7722_v33, %v7721_v28  ;;  %v7724_v5 = vpop.f32.mrb[178].mxu1 }
0x1027   :  { %v7725_v18 = vpop.f32.mrb[179].mxu1 }
0x1028   :  { %v5778_v1 = vadd.f32 %v7723_v6, %v5738_v7 }
0x102a   :  { %v5818_v24 = vadd.f32 %v5817_v51, %v5778_v1  ;;  %v8590_v51 = vld [vmem:[%s12108_s5 + $0xa8] sm:$0xff]  }
0x102c   :  { %v5823_v4 = vmax.f32 %v5818_v24, 0.0 }
0x102e   :  { %v5824_v61 = vpack.c.bf16 %v5823_v4, %v5823_v4 }
0x1030   :  { %6846 = vmatmul.mubr.msk.bf16.vlgmr.msra.gmra.mrb[180].mxu1 %vm817_vm1, %v5824_v61 }
0x1031   :  { %5966 = vmatpush1.bf16.msra.mxu1 %v8551_v39  ;;  %5997 = vmatprep.mubr.bf16.mxu1 %v12145_v35  ;;  %v8560_v35 = vld [vmem:[%s12106_s3 + $0x7e8] ss:$16 sps:$4 sm:$0xff]   ;;  %s8766_s3 = scalar_lea.vmem %s6512_s24, 32 }
0x1032   :  { %5967 = vmatprep.subr.bf16.mxu1 %v8556_v29  ;;  %v8595_v29 = vld [vmem:[%s12110_s7] sm:$0xff]  }
0x1035   :  { %5968 = vmatpush1.bf16.msra.mxu1 %v8554_v15  ;;  %v8598_v15 = vld [vmem:[%s12110_s7 + $0x18] sm:$0xff]  }
0x1036   :  { %5969 = vmatprep.subr.bf16.mxu1 %v8559_v2 }
0x1039   :  { %5970 = vmatpush1.bf16.msra.mxu1 %v8557_v46 }
0x103a   :  { %5971 = vmatprep.subr.bf16.mxu1 %v8562_v60 }
0x103d   :  { %5972 = vmatpush1.bf16.msra.mxu1 %v8560_v35 }
0x103e   :  { %7758 = vmatprep.subr.bf16.mxu1 %v8571_v58 }
0x1040   :  { %6847 = vmatmul.mubr.msk.bf16.vlgmr.msra.gmra.mrb[184].mxu1 %vm817_vm1, %v5824_v61 }
0x1041   :  { %7759 = vmatpush3.bf16.msra.mxu1 %v8573_v49  ;;  %v6848_v49 = vld [vmem:[%s12109_s6] ss:$0 sm:$0xff] }
0x1042   :  { %7760 = vmatprep.subr.bf16.mxu1 %v8575_v57 }
0x1045   :  { %7761 = vmatpush3.bf16.msra.mxu1 %v8577_v3 }
0x1046   :  { %7762 = vmatprep.subr.bf16.mxu1 %v8579_v47 }
0x1049   :  { %7763 = vmatpush3.bf16.msra.mxu1 %v8581_v16 }
0x104a   :  { %7764 = vmatprep.subr.bf16.mxu1 %v8583_v26 }
0x104d   :  { %7765 = vmatpush3.bf16.msra.mxu1 %v8585_v23 }
0x104e   :  { %7766 = vmatprep.subr.bf16.mxu1 %v8587_v19 }
0x1051   :  { %7767 = vmatpush3.bf16.msra.mxu1 %v8588_v55 }
0x1052   :  { %7768 = vmatprep.subr.bf16.mxu1 %v8589_v41  ;;  %v6887_v41 = vld [vmem:[%s12112_s9] ss:$0 sm:$0xff]  ;;  %s8762_s9 = scalar_lea.vmem %s6512_s24, 16 }
0x1053   :  { %p8763_p0 = scmp.ne.s32.totalorder %s6512_s24, %s8762_s9  ;;  %p8768_p2 = scmp.lt.s32.totalorder %s8766_s3, %s8762_s9 }
0x1055   :  { %7769 = vmatpush3.bf16.msra.mxu1 %v8590_v51  ;;  %p8769_p3 = por %p8768_p2, %p8767_p1 }
0x1056   :  { %7770 = vmatprep.subr.bf16.mxu1 %v8591_v9 }
0x1057   :  { %p8770_p4 = pnand %p8769_p3, %p8763_p0 }
0x1059   :  { %7771 = vmatpush3.bf16.msra.mxu1 %v8592_v13 }
0x105a   :  { %7772 = vmatprep.subr.bf16.mxu1 %v8593_v43 }
0x105d   :  { %7773 = vmatpush3.bf16.msra.mxu1 %v8594_v34  ;;  %v6484_v34 = vld [vmem:[#allocation2] sm:$0x1] }
0x1103   :  { %v5958_v17 = vpop.f32.mrb[180].mxu1 }
0x1104   :  { %v6006_v12 = vadd.f32 %v5958_v17, %v11947_v8  ;;  %v5960_v38 = vpop.f32.mrb[181].mxu1  ;;  %v6023_v8 = vrot.slane %v6010_v62, %v6022_v44 }
0x1105   :  { %v6007_v53 = vadd.f32 %v5960_v38, %v11950_v56  ;;  %v5962_v45 = vpop.f32.mrb[182].mxu1  ;;  %v6027_v56 = vrot.slane %v6010_v62, %v6026_v10 }
0x1106   :  { %v6032_v20 = vadd.f32 %v6015_v50, %v6006_v12  ;;  %v5963_v31 = vpop.f32.mrb[183].mxu1  ;;  %v6497_v50 = vand.u32 127, %v12173_v14 }
0x1107   :  { %v6033_v30 = vadd.f32 %v6019_v11, %v6007_v53 }
0x1108   :  { %v6036_v21 = vmax.f32 %v6032_v20, 0.0  ;;  %v6500_v12 = vsub.s32 %v6497_v50, %v12172_v59 }
0x1109   :  { %v6037_v48 = vmax.f32 %v6033_v30, 0.0 }
0x110a   :  { %v6040_v42 = vpack.c.bf16 %v6036_v21, %v6036_v21 }
0x110b   :  { %v6041_v63 = vpack.c.bf16 %v6037_v48, %v6037_v48 }
0x110d   :  { %6339 = vmatprep.mubr.bf16.mxu0 %v6041_v63 }
0x110e   :  { %6340 = vmatmul.mubr.bf16.vlgmr.msra.gmra.mrb[132].mxu0 %v6040_v42 }
0x110f   :  { %8113 = vmatprep.mubr.msk.bf16.mxu0 %vm8788_vm0, %v12146_v0  ;;  %8106 = vmatpush3.bf16.msra.mxu0 %v8595_v29 }
0x1110   :  { %8107 = vmatprep.subr.bf16.mxu0 %v12146_v0 }
0x1113   :  { %v5999_v22 = vpop.f32.mrb[184].mxu1 }
0x1114   :  { %v6008_v28 = vadd.f32 %v5999_v22, %v11953_v40  ;;  %v6001_v33 = vpop.f32.mrb[185].mxu1  ;;  %v8596_v40 = vld [vmem:[%s12110_s7 + $0x8] sm:$0xff]  }
0x1115   :  { %v6009_v7 = vadd.f32 %v6001_v33, %v11956_v25  ;;  %v6003_v6 = vpop.f32.mrb[186].mxu1  ;;  %8108 = vmatpush3.bf16.msra.mxu0 %v8596_v40  ;;  %v8597_v25 = vld [vmem:[%s12110_s7 + $0x10] sm:$0xff]  }
0x1116   :  { %v6034_v5 = vadd.f32 %v6023_v8, %v6008_v28  ;;  %v6004_v18 = vpop.f32.mrb[187].mxu1  ;;  %8109 = vmatprep.subr.bf16.mxu0 %v12146_v0 }
0x1117   :  { %v6035_v1 = vadd.f32 %v6027_v56, %v6009_v7 }
0x1118   :  { %v6038_v24 = vmax.f32 %v6034_v5, 0.0 }
0x1119   :  { %v6039_v4 = vmax.f32 %v6035_v1, 0.0  ;;  %8110 = vmatpush3.bf16.msra.mxu0 %v8597_v25 }
0x111a   :  { %v6042_v61 = vpack.c.bf16 %v6038_v24, %v6038_v24  ;;  %8111 = vmatprep.subr.bf16.mxu0 %v12146_v0 }
0x111b   :  { %v6043_v39 = vpack.c.bf16 %v6039_v4, %v6039_v4 }
0x111d   :  { %6379 = vmatprep.mubr.bf16.mxu1 %v6043_v39  ;;  %8112 = vmatpush3.bf16.msra.mxu0 %v8598_v15 }
0x111e   :  { %6380 = vmatmul.mubr.bf16.vlgmr.msra.gmra.mrb[188].mxu1 %v6042_v61 }
0x11e1   :  { %v7752_v2 = vpop.f32.mrb[132].mxu0 }
0x11e2   :  { %v7753_v46 = vpop.f32.mrb[133].mxu0 }
0x11e3   :  { %v7754_v60 = vadd.f32 %v7753_v46, %v7752_v2  ;;  %v7755_v35 = vpop.f32.mrb[134].mxu0 }
0x11e4   :  { %v7756_v58 = vpop.f32.mrb[135].mxu0 }
0x11e5   :  { %v6342_v54 = vadd.f32 %v7754_v60, %v6848_v49 }
0x11f1   :  { %v7774_v57 = vpop.f32.mrb[188].mxu1 }
0x11f2   :  { %v7775_v3 = vpop.f32.mrb[189].mxu1 }
0x11f3   :  { %v7776_v47 = vadd.f32 %v7775_v3, %v7774_v57  ;;  %v7777_v52 = vpop.f32.mrb[190].mxu1 }
0x11f4   :  { %v7778_v0 = vpop.f32.mrb[191].mxu1 }
0x11f5   :  { %v6382_v16 = vadd.f32 %v7776_v47, %v6342_v54 }
0x11f7   :  { %v6387_v27 = vmax.f32 %v6382_v16, 0.0 }
0x11f9   :  { %v6388_v26 = vpack.c.bf16 %v6387_v27, %v6387_v27 }
0x11fb   :  { %8114 = vmatmul.mubr.msk.bf16.vlgmr.msra.gmra.mrb[136].mxu0 %vm817_vm1, %v6388_v26 }
0x12ce   :  { %v6465_v23 = vpop.f32.mrb[136].mxu0 }
0x12cf   :  { %v6466_v36 = vadd.f32 %v6881_v32, %v6465_v23  ;;  %v8115_v19 = vpop.f32.mrb[137].mxu0 }
0x12d0   :  { %v6468_v55 = vpop.f32.mrb[138].mxu0 }
0x12d1   :  { %v6471_v51 = vmax.f32 %v6466_v36, 0.0  ;;  %v8116_v9 = vpop.f32.mrb[139].mxu0 }
0x12d3   :  { %v6479_v13 = vmul.f32 %v6887_v41, %v6471_v51 }
0x12d5   :  { %v6481_v43 = vsel %vm6480_vm2, %v6479_v13, 0.0 }
0x12d6   :  { %6482 = vadd.xlane.f32.xlu0 %v6481_v43 }
0x12ec   :  { %6487 = vperm.xlu0 %8122, %v6484_v34  }
0x1363   :  { %v6483_v62 = vpop.xlane.xlu0 %6482 }
0x136b   :  { %v6488_v17 = vpop.permute.xlu0 %6487 }
0x136c   :  { %v6493_v11 = vrot.slane %v6488_v17, %v6014_v37 }
0x136e   :  { %v6494_v38 = vadd.f32 %v6493_v11, %v6483_v62 }
0x1370   :  { %v6501_v53 = vrot.slane %v6494_v38, %v6500_v12 }
0x1372   :  { %6504 = vst.msk [vmem:[#allocation3] sm:$0x1] %vm6503_vm3, %v6501_v53 }
0x1373   :  { %8773 = shalt.err (!%p8770_p4)
}
0x1374   :  { %s8774_s2 = scalar_lea.hbm %s12114_s11, 16 }
0x1375   :  { %p8775_p5 = scmp.ne.s32.totalorder %s12114_s11, %s8774_s2  ;;  %p8778_p6 = scmp.lt.u32.totalorder %s8774_s2, %s12114_s11 }
0x1377   :  { %p8780_p7 = pnand %p8778_p6, %p8775_p5 }
0x1379   :  { %8783 = shalt.err (!%p8780_p7)
}
0x137a   :  { %6514 = dma.vmem_to_hbm [thread:$0]  %s6512_s24, 16, %s12114_s11, [#allocation4]  }
0x137b   :  { %8784 = dma.done.wait [#allocation4], 16  }
0x137c   :  { %8785 = vsyncadd [#allocation4], 4294967280 }
0x137d   :  { %6518 = vsyncpa [#allocation4], 1 }

</bundles_post_ra>
